<compile_context>
chip_gen: v7x
topology: tpu7x:2x2x1
jax: 0.10.0
libtpu: 0.0.40
codegen_flags: <defaults>
</compile_context>

<pallas_src>
import functools

import numpy as np
import jax
import jax.numpy as jnp
from jax.experimental import pallas as pl
from jax.experimental.pallas import tpu as pltpu

N_FILTERS = 32


# ----------------------------------------------------------------------------
# Constant 0/1 selection matrices: im2col expressed as matmul.
# For kernel offset o = ki*KW + kj:
#   sel[o, p*OW+q, r*IW+c] = 1  with r = p*stride + ki - pad, c = q*stride + kj - pad
# Rows that map to padded positions stay all-zero -> zero padding for free.
# ----------------------------------------------------------------------------
@functools.lru_cache(maxsize=None)
def _selection_matrices(ih, iw, kh, kw, stride, pad):
    oh = (ih + 2 * pad - kh) // stride + 1
    ow = (iw + 2 * pad - kw) // stride + 1
    sel = np.zeros((kh * kw, oh * ow, ih * iw), np.float32)
    for ki in range(kh):
        for kj in range(kw):
            o = ki * kw + kj
            for p in range(oh):
                r = p * stride + ki - pad
                if not (0 <= r < ih):
                    continue
                for q in range(ow):
                    c = q * stride + kj - pad
                    if 0 <= c < iw:
                        sel[o, p * ow + q, r * iw + c] = 1.0
    return sel, oh, ow


# ----------------------------------------------------------------------------
# Fused kernel (one grid step == one sample; everything stays in VMEM)
# ----------------------------------------------------------------------------
def _leaky_relu(x):
    return jnp.where(x >= 0, x, 0.2 * x)


def _conv_via_offsets(x_bf16, sel_ref, w_ref):
    """Convolution as sum over kernel offsets of (Sel_o @ x) @ W_o.

    x_bf16 : (IH*IW, Cin) bf16 activation (spatial rows, channel lanes)
    sel_ref: (KH*KW, OH*OW, IH*IW) bf16 0/1 selection matrices
    w_ref  : (KH*KW, Cin, Cout)    bf16 per-offset weight slices
    returns (OH*OW, Cout) f32 pre-activation.
    """
    n_off, ohw, _ = sel_ref.shape
    cout = w_ref.shape[-1]
    acc = jnp.zeros((ohw, cout), jnp.float32)
    for o in range(n_off):
        # Exact row-gather on the MXU (each Sel row is one-hot or zero).
        gathered = jnp.dot(sel_ref[o], x_bf16, preferred_element_type=jnp.float32)
        acc = acc + jnp.dot(gathered.astype(jnp.bfloat16), w_ref[o],
                            preferred_element_type=jnp.float32)
    return acc


def _instance_norm_lrelu(a):
    # a: (spatial, channels) f32; InstanceNorm2d stats are per channel over
    # spatial -> reduce over the sublane axis.  eps=1e-5, biased var, no affine.
    mean = jnp.mean(a, axis=0, keepdims=True)
    var = jnp.mean(jnp.square(a - mean), axis=0, keepdims=True)
    y = (a - mean) * jax.lax.rsqrt(var + 1e-5)
    return _leaky_relu(y)


def _disc_kernel(p1_ref, w1_ref, sel2_ref, w2_ref, sel3_ref, w3_ref, w4_ref,
                 o_ref):
    # conv1 (im2col GEMM) + LeakyReLU                       -> (196, 32)
    a = jnp.dot(p1_ref[0], w1_ref[...], preferred_element_type=jnp.float32)
    a = _leaky_relu(a).astype(jnp.bfloat16)

    # conv2 + InstanceNorm + LeakyReLU                      -> (49, 64)
    a = _conv_via_offsets(a, sel2_ref, w2_ref)
    a = _instance_norm_lrelu(a).astype(jnp.bfloat16)

    # conv3 + InstanceNorm + LeakyReLU                      -> (16, 128)
    a = _conv_via_offsets(a, sel3_ref, w3_ref)
    a = _instance_norm_lrelu(a)                             # keep f32 epilogue

    # conv4 (4x4 valid conv, Cout=1 == full dot) + Sigmoid  -> (1, 1)
    t = a * w4_ref[...]                                     # (16, 128) f32
    s = jnp.sum(t, axis=1, keepdims=True)                   # cross-lane reduce
    s = jnp.sum(s, axis=0, keepdims=True)                   # cross-sublane reduce
    sig = 1.0 / (1.0 + jnp.exp(-s))                         # f32, safe in [0, 1]
    o_ref[...] = sig.reshape(1, 1, 1)


# ----------------------------------------------------------------------------
# Wrapper
# ----------------------------------------------------------------------------
def _im2col(x, kh, kw, stride, pad):
    """x: (N, C, H, W) -> (N, OH*OW, C*KH*KW) patches (cheap XLA glue, layer 1 only)."""
    n, c, h, w = x.shape
    if pad > 0:
        x = jnp.pad(x, ((0, 0), (0, 0), (pad, pad), (pad, pad)))
    oh = (h + 2 * pad - kh) // stride + 1
    ow = (w + 2 * pad - kw) // stride + 1
    cols = []
    for i in range(kh):
        for j in range(kw):
            cols.append(x[:, :, i:i + stride * oh:stride, j:j + stride * ow:stride])
    cols = jnp.stack(cols, axis=0).reshape(kh, kw, n, c, oh, ow)
    cols = jnp.transpose(cols, (2, 4, 5, 3, 0, 1)).reshape(n, oh * ow, c * kh * kw)
    return cols, oh, ow


def discriminator_forward(params, x):
    w1, w2, w3, w4 = params
    n = x.shape[0]
    c1, c2, c3 = w1.shape[0], w2.shape[0], w3.shape[0]          # 32, 64, 128

    # --- layer-1 patches (Cin=1, ~12 KB) prepared by XLA, bf16 MXU operand ---
    p1, oh1, ow1 = _im2col(x, w1.shape[2], w1.shape[3], 2, 1)   # (N, 196, 16)
    p1 = p1.astype(jnp.bfloat16)

    # --- constant selection matrices for the in-kernel im2col of layers 2/3 ---
    sel2_np, oh2, ow2 = _selection_matrices(oh1, ow1, w2.shape[2], w2.shape[3], 2, 1)
    sel3_np, oh3, ow3 = _selection_matrices(oh2, ow2, w3.shape[2], w3.shape[3], 2, 1)
    sel2 = jnp.asarray(sel2_np, jnp.bfloat16)                   # (16, 49, 196)
    sel3 = jnp.asarray(sel3_np, jnp.bfloat16)                   # (9, 16, 49)

    # conv4 is a 4x4 valid conv on a 4x4 map -> pure dot product.
    assert (oh3, ow3) == (w4.shape[2], w4.shape[3])

    # --- weights rearranged to the kernel's layouts (bf16 MXU operands) ---
    w1m = jnp.transpose(w1.reshape(c1, -1)).astype(jnp.bfloat16)            # (16, 32)
    w2m = jnp.transpose(w2, (2, 3, 1, 0)).reshape(
        w2.shape[2] * w2.shape[3], c1, c2).astype(jnp.bfloat16)             # (16, 32, 64)
    w3m = jnp.transpose(w3, (2, 3, 1, 0)).reshape(
        w3.shape[2] * w3.shape[3], c2, c3).astype(jnp.bfloat16)             # (9, 64, 128)
    w4m = jnp.transpose(w4[0], (1, 2, 0)).reshape(oh3 * ow3, c3)            # (16, 128) f32

    spatial1, k1 = p1.shape[1], p1.shape[2]

    out = pl.pallas_call(
        _disc_kernel,
        grid=(n,),
        in_specs=[
            pl.BlockSpec((1, spatial1, k1), lambda i: (i, 0, 0)),   # per-sample patches
            pl.BlockSpec(w1m.shape, lambda i: (0, 0)),              # VMEM-resident weights
            pl.BlockSpec(sel2.shape, lambda i: (0, 0, 0)),
            pl.BlockSpec(w2m.shape, lambda i: (0, 0, 0)),
            pl.BlockSpec(sel3.shape, lambda i: (0, 0, 0)),
            pl.BlockSpec(w3m.shape, lambda i: (0, 0, 0)),
            pl.BlockSpec(w4m.shape, lambda i: (0, 0)),
        ],
        out_specs=pl.BlockSpec((1, 1, 1), lambda i: (i, 0, 0)),
        out_shape=jax.ShapeDtypeStruct((n, 1, 1), jnp.float32),
        compiler_params=pltpu.CompilerParams(
            dimension_semantics=("parallel",),          # shard batch across v7x's 2 TCs
            vmem_limit_bytes=32 * 1024 * 1024,
        ),
    )(p1, w1m, sel2, w2m, sel3, w3m, w4m)

    # output.view(-1, 1).squeeze(0)
    out = out.reshape(-1, 1)
    if out.shape[0] == 1:
        out = jnp.squeeze(out, axis=0)
    return out


# ----------------------------------------------------------------------------
# Params + pure-JAX reference (for validation)
# ----------------------------------------------------------------------------
def init_params(key, n_filters=N_FILTERS):
    """Deterministic init matching PyTorch Conv2d default (uniform +/- 1/sqrt(fan_in))."""
    shapes = [
        (n_filters, 1, 4, 4),
        (n_filters * 2, n_filters, 4, 4),
        (n_filters * 4, n_filters * 2, 3, 3),
        (1, n_filters * 4, 4, 4),
    ]
    params = []
    for i, shp in enumerate(shapes):
        k = jax.random.fold_in(key, i)
        fan_in = shp[1] * shp[2] * shp[3]
        bound = 1.0 / jnp.sqrt(jnp.float32(fan_in))
        params.append(jax.random.uniform(k, shp, jnp.float32, -bound, bound))
    return params


def _reference_forward(params, x):
    """Plain-JAX reference mirroring the PyTorch module (bias=False convs)."""
    w1, w2, w3, w4 = params

    def conv(h, w, stride, pad):
        return jax.lax.conv_general_dilated(
            h, w, (stride, stride), [(pad, pad), (pad, pad)],
            dimension_numbers=("NCHW", "OIHW", "NCHW"))

    def inorm_lrelu(h):
        mean = jnp.mean(h, axis=(2, 3), keepdims=True)
        var = jnp.mean(jnp.square(h - mean), axis=(2, 3), keepdims=True)
        h = (h - mean) * jax.lax.rsqrt(var + 1e-5)
        return jnp.where(h >= 0, h, 0.2 * h)

    h = conv(x, w1, 2, 1)
    h = jnp.where(h >= 0, h, 0.2 * h)
    h = inorm_lrelu(conv(h, w2, 2, 1))
    h = inorm_lrelu(conv(h, w3, 2, 1))
    h = conv(h, w4, 1, 0)
    h = 1.0 / (1.0 + jnp.exp(-h))
    out = h.reshape(-1, 1)
    if out.shape[0] == 1:
        out = jnp.squeeze(out, axis=0)
    return out


if __name__ == "__main__":
    key = jax.random.PRNGKey(0)
    pkey, xkey = jax.random.split(key)

    params = init_params(pkey, N_FILTERS)
    # MNIST-shaped input, small batch: (N=2, C=1, H=28, W=28), NCHW.
    x = jax.random.normal(xkey, (2, 1, 28, 28), dtype=jnp.float32)

    out = jax.block_until_ready(discriminator_forward(params, x))

    assert out.shape == (2, 1), out.shape
    assert bool(jnp.all(jnp.isfinite(out)))
    assert bool(jnp.all((out >= 0.0) & (out <= 1.0)))      # sigmoid range

    ref = jax.block_until_ready(_reference_forward(params, x))
    max_err = float(jnp.max(jnp.abs(out - ref)))
    assert max_err < 5e-2, f"mismatch vs reference: {max_err}"

    print("KERNEL_OK")
</pallas_src>

<mosaic_0001>
module attributes {stable_mosaic.version = 11 : i64} {
  func.func @_disc_kernel(%arg0: i32, %arg1: memref<1x196x16xbf16, #tpu.memory_space<vmem>>, %arg2: memref<16x32xbf16, #tpu.memory_space<vmem>>, %arg3: memref<16x49x196xbf16, #tpu.memory_space<vmem>>, %arg4: memref<16x32x64xbf16, #tpu.memory_space<vmem>>, %arg5: memref<9x16x49xbf16, #tpu.memory_space<vmem>>, %arg6: memref<9x64x128xbf16, #tpu.memory_space<vmem>>, %arg7: memref<16x128xf32, #tpu.memory_space<vmem>>, %arg8: memref<1x1x1xf32, #tpu.memory_space<vmem>>) attributes {dimension_semantics = [#tpu.dimension_semantics<parallel>], iteration_bounds = array<i64: 2>, scalar_prefetch = 0 : i64, scratch_operands = 0 : i64, tpu.core_type = #tpu.core_type<tc>, window_params = [{transform_indices = @transform_0, window_bounds = array<i64: 1, 196, 16>}, {pipeline_mode = #tpu.pipeline_mode<synchronous>, transform_indices = @transform_1, window_bounds = array<i64: 16, 32>}, {pipeline_mode = #tpu.pipeline_mode<synchronous>, transform_indices = @transform_2, window_bounds = array<i64: 16, 49, 196>}, {pipeline_mode = #tpu.pipeline_mode<synchronous>, transform_indices = @transform_3, window_bounds = array<i64: 16, 32, 64>}, {pipeline_mode = #tpu.pipeline_mode<synchronous>, transform_indices = @transform_4, window_bounds = array<i64: 9, 16, 49>}, {pipeline_mode = #tpu.pipeline_mode<synchronous>, transform_indices = @transform_5, window_bounds = array<i64: 9, 64, 128>}, {pipeline_mode = #tpu.pipeline_mode<synchronous>, transform_indices = @transform_6, window_bounds = array<i64: 16, 128>}, {transform_indices = @transform_7, window_bounds = array<i64: 1, 1, 1>}]} {
    %c0 = arith.constant 0 : index
    %c0_0 = arith.constant 0 : index
    %c0_1 = arith.constant 0 : index
    %0 = vector.load %arg1[%c0, %c0_0, %c0_1] : memref<1x196x16xbf16, #tpu.memory_space<vmem>>, vector<1x196x16xbf16>
    %1 = vector.shape_cast %0 : vector<1x196x16xbf16> to vector<196x16xbf16>
    %c0_2 = arith.constant 0 : index
    %c0_3 = arith.constant 0 : index
    %2 = vector.load %arg2[%c0_2, %c0_3] : memref<16x32xbf16, #tpu.memory_space<vmem>>, vector<16x32xbf16>
    %cst = arith.constant dense<0.000000e+00> : vector<196x32xf32>
    %3 = tpu.matmul %1, %2, %cst {dimension_numbers = #tpu.dot_dimension_numbers<[1], [0], [0], [1], [0, 0, 1, 1], [], []>} : vector<196x16xbf16>, vector<16x32xbf16>, vector<196x32xf32> -> vector<196x32xf32>
    %cst_4 = arith.constant 0.000000e+00 : f32
    %4 = vector.broadcast %cst_4 : f32 to vector<196x32xf32>
    %5 = arith.cmpf oge, %3, %4 : vector<196x32xf32>
    %cst_5 = arith.constant 2.000000e-01 : f32
    %6 = vector.broadcast %cst_5 : f32 to vector<196x32xf32>
    %7 = arith.mulf %6, %3 : vector<196x32xf32>
    %8 = arith.select %5, %3, %7 : vector<196x32xi1>, vector<196x32xf32>
    %9 = arith.truncf %8 : vector<196x32xf32> to vector<196x32xbf16>
    %cst_6 = arith.constant 0.000000e+00 : f32
    %10 = vector.broadcast %cst_6 : f32 to vector<49x64xf32>
    %c0_7 = arith.constant 0 : index
    %c0_8 = arith.constant 0 : index
    %c0_9 = arith.constant 0 : index
    %11 = vector.load %arg3[%c0_7, %c0_8, %c0_9] : memref<16x49x196xbf16, #tpu.memory_space<vmem>>, vector<1x49x196xbf16>
    %12 = vector.shape_cast %11 : vector<1x49x196xbf16> to vector<49x196xbf16>
    %cst_10 = arith.constant dense<0.000000e+00> : vector<49x32xf32>
    %13 = tpu.matmul %12, %9, %cst_10 {dimension_numbers = #tpu.dot_dimension_numbers<[1], [0], [0], [1], [0, 0, 1, 1], [], []>} : vector<49x196xbf16>, vector<196x32xbf16>, vector<49x32xf32> -> vector<49x32xf32>
    %14 = arith.truncf %13 : vector<49x32xf32> to vector<49x32xbf16>
    %c0_11 = arith.constant 0 : index
    %c0_12 = arith.constant 0 : index
    %c0_13 = arith.constant 0 : index
    %15 = vector.load %arg4[%c0_11, %c0_12, %c0_13] : memref<16x32x64xbf16, #tpu.memory_space<vmem>>, vector<1x32x64xbf16>
    %16 = vector.shape_cast %15 : vector<1x32x64xbf16> to vector<32x64xbf16>
    %cst_14 = arith.constant dense<0.000000e+00> : vector<49x64xf32>
    %17 = tpu.matmul %14, %16, %cst_14 {dimension_numbers = #tpu.dot_dimension_numbers<[1], [0], [0], [1], [0, 0, 1, 1], [], []>} : vector<49x32xbf16>, vector<32x64xbf16>, vector<49x64xf32> -> vector<49x64xf32>
    %18 = arith.addf %10, %17 : vector<49x64xf32>
    %c1 = arith.constant 1 : index
    %c0_15 = arith.constant 0 : index
    %c0_16 = arith.constant 0 : index
    %19 = vector.load %arg3[%c1, %c0_15, %c0_16] : memref<16x49x196xbf16, #tpu.memory_space<vmem>>, vector<1x49x196xbf16>
    %20 = vector.shape_cast %19 : vector<1x49x196xbf16> to vector<49x196xbf16>
    %cst_17 = arith.constant dense<0.000000e+00> : vector<49x32xf32>
    %21 = tpu.matmul %20, %9, %cst_17 {dimension_numbers = #tpu.dot_dimension_numbers<[1], [0], [0], [1], [0, 0, 1, 1], [], []>} : vector<49x196xbf16>, vector<196x32xbf16>, vector<49x32xf32> -> vector<49x32xf32>
    %22 = arith.truncf %21 : vector<49x32xf32> to vector<49x32xbf16>
    %c1_18 = arith.constant 1 : index
    %c0_19 = arith.constant 0 : index
    %c0_20 = arith.constant 0 : index
    %23 = vector.load %arg4[%c1_18, %c0_19, %c0_20] : memref<16x32x64xbf16, #tpu.memory_space<vmem>>, vector<1x32x64xbf16>
    %24 = vector.shape_cast %23 : vector<1x32x64xbf16> to vector<32x64xbf16>
    %cst_21 = arith.constant dense<0.000000e+00> : vector<49x64xf32>
    %25 = tpu.matmul %22, %24, %cst_21 {dimension_numbers = #tpu.dot_dimension_numbers<[1], [0], [0], [1], [0, 0, 1, 1], [], []>} : vector<49x32xbf16>, vector<32x64xbf16>, vector<49x64xf32> -> vector<49x64xf32>
    %26 = arith.addf %18, %25 : vector<49x64xf32>
    %c2 = arith.constant 2 : index
    %c0_22 = arith.constant 0 : index
    %c0_23 = arith.constant 0 : index
    %27 = vector.load %arg3[%c2, %c0_22, %c0_23] : memref<16x49x196xbf16, #tpu.memory_space<vmem>>, vector<1x49x196xbf16>
    %28 = vector.shape_cast %27 : vector<1x49x196xbf16> to vector<49x196xbf16>
    %cst_24 = arith.constant dense<0.000000e+00> : vector<49x32xf32>
    %29 = tpu.matmul %28, %9, %cst_24 {dimension_numbers = #tpu.dot_dimension_numbers<[1], [0], [0], [1], [0, 0, 1, 1], [], []>} : vector<49x196xbf16>, vector<196x32xbf16>, vector<49x32xf32> -> vector<49x32xf32>
    %30 = arith.truncf %29 : vector<49x32xf32> to vector<49x32xbf16>
    %c2_25 = arith.constant 2 : index
    %c0_26 = arith.constant 0 : index
    %c0_27 = arith.constant 0 : index
    %31 = vector.load %arg4[%c2_25, %c0_26, %c0_27] : memref<16x32x64xbf16, #tpu.memory_space<vmem>>, vector<1x32x64xbf16>
    %32 = vector.shape_cast %31 : vector<1x32x64xbf16> to vector<32x64xbf16>
    %cst_28 = arith.constant dense<0.000000e+00> : vector<49x64xf32>
    %33 = tpu.matmul %30, %32, %cst_28 {dimension_numbers = #tpu.dot_dimension_numbers<[1], [0], [0], [1], [0, 0, 1, 1], [], []>} : vector<49x32xbf16>, vector<32x64xbf16>, vector<49x64xf32> -> vector<49x64xf32>
    %34 = arith.addf %26, %33 : vector<49x64xf32>
    %c3 = arith.constant 3 : index
    %c0_29 = arith.constant 0 : index
    %c0_30 = arith.constant 0 : index
    %35 = vector.load %arg3[%c3, %c0_29, %c0_30] : memref<16x49x196xbf16, #tpu.memory_space<vmem>>, vector<1x49x196xbf16>
    %36 = vector.shape_cast %35 : vector<1x49x196xbf16> to vector<49x196xbf16>
    %cst_31 = arith.constant dense<0.000000e+00> : vector<49x32xf32>
    %37 = tpu.matmul %36, %9, %cst_31 {dimension_numbers = #tpu.dot_dimension_numbers<[1], [0], [0], [1], [0, 0, 1, 1], [], []>} : vector<49x196xbf16>, vector<196x32xbf16>, vector<49x32xf32> -> vector<49x32xf32>
    %38 = arith.truncf %37 : vector<49x32xf32> to vector<49x32xbf16>
    %c3_32 = arith.constant 3 : index
    %c0_33 = arith.constant 0 : index
    %c0_34 = arith.constant 0 : index
    %39 = vector.load %arg4[%c3_32, %c0_33, %c0_34] : memref<16x32x64xbf16, #tpu.memory_space<vmem>>, vector<1x32x64xbf16>
    %40 = vector.shape_cast %39 : vector<1x32x64xbf16> to vector<32x64xbf16>
    %cst_35 = arith.constant dense<0.000000e+00> : vector<49x64xf32>
    %41 = tpu.matmul %38, %40, %cst_35 {dimension_numbers = #tpu.dot_dimension_numbers<[1], [0], [0], [1], [0, 0, 1, 1], [], []>} : vector<49x32xbf16>, vector<32x64xbf16>, vector<49x64xf32> -> vector<49x64xf32>
    %42 = arith.addf %34, %41 : vector<49x64xf32>
    %c4 = arith.constant 4 : index
    %c0_36 = arith.constant 0 : index
    %c0_37 = arith.constant 0 : index
    %43 = vector.load %arg3[%c4, %c0_36, %c0_37] : memref<16x49x196xbf16, #tpu.memory_space<vmem>>, vector<1x49x196xbf16>
    %44 = vector.shape_cast %43 : vector<1x49x196xbf16> to vector<49x196xbf16>
    %cst_38 = arith.constant dense<0.000000e+00> : vector<49x32xf32>
    %45 = tpu.matmul %44, %9, %cst_38 {dimension_numbers = #tpu.dot_dimension_numbers<[1], [0], [0], [1], [0, 0, 1, 1], [], []>} : vector<49x196xbf16>, vector<196x32xbf16>, vector<49x32xf32> -> vector<49x32xf32>
    %46 = arith.truncf %45 : vector<49x32xf32> to vector<49x32xbf16>
    %c4_39 = arith.constant 4 : index
    %c0_40 = arith.constant 0 : index
    %c0_41 = arith.constant 0 : index
    %47 = vector.load %arg4[%c4_39, %c0_40, %c0_41] : memref<16x32x64xbf16, #tpu.memory_space<vmem>>, vector<1x32x64xbf16>
    %48 = vector.shape_cast %47 : vector<1x32x64xbf16> to vector<32x64xbf16>
    %cst_42 = arith.constant dense<0.000000e+00> : vector<49x64xf32>
    %49 = tpu.matmul %46, %48, %cst_42 {dimension_numbers = #tpu.dot_dimension_numbers<[1], [0], [0], [1], [0, 0, 1, 1], [], []>} : vector<49x32xbf16>, vector<32x64xbf16>, vector<49x64xf32> -> vector<49x64xf32>
    %50 = arith.addf %42, %49 : vector<49x64xf32>
    %c5 = arith.constant 5 : index
    %c0_43 = arith.constant 0 : index
    %c0_44 = arith.constant 0 : index
    %51 = vector.load %arg3[%c5, %c0_43, %c0_44] : memref<16x49x196xbf16, #tpu.memory_space<vmem>>, vector<1x49x196xbf16>
    %52 = vector.shape_cast %51 : vector<1x49x196xbf16> to vector<49x196xbf16>
    %cst_45 = arith.constant dense<0.000000e+00> : vector<49x32xf32>
    %53 = tpu.matmul %52, %9, %cst_45 {dimension_numbers = #tpu.dot_dimension_numbers<[1], [0], [0], [1], [0, 0, 1, 1], [], []>} : vector<49x196xbf16>, vector<196x32xbf16>, vector<49x32xf32> -> vector<49x32xf32>
    %54 = arith.truncf %53 : vector<49x32xf32> to vector<49x32xbf16>
    %c5_46 = arith.constant 5 : index
    %c0_47 = arith.constant 0 : index
    %c0_48 = arith.constant 0 : index
    %55 = vector.load %arg4[%c5_46, %c0_47, %c0_48] : memref<16x32x64xbf16, #tpu.memory_space<vmem>>, vector<1x32x64xbf16>
    %56 = vector.shape_cast %55 : vector<1x32x64xbf16> to vector<32x64xbf16>
    %cst_49 = arith.constant dense<0.000000e+00> : vector<49x64xf32>
    %57 = tpu.matmul %54, %56, %cst_49 {dimension_numbers = #tpu.dot_dimension_numbers<[1], [0], [0], [1], [0, 0, 1, 1], [], []>} : vector<49x32xbf16>, vector<32x64xbf16>, vector<49x64xf32> -> vector<49x64xf32>
    %58 = arith.addf %50, %57 : vector<49x64xf32>
    %c6 = arith.constant 6 : index
    %c0_50 = arith.constant 0 : index
    %c0_51 = arith.constant 0 : index
    %59 = vector.load %arg3[%c6, %c0_50, %c0_51] : memref<16x49x196xbf16, #tpu.memory_space<vmem>>, vector<1x49x196xbf16>
    %60 = vector.shape_cast %59 : vector<1x49x196xbf16> to vector<49x196xbf16>
    %cst_52 = arith.constant dense<0.000000e+00> : vector<49x32xf32>
    %61 = tpu.matmul %60, %9, %cst_52 {dimension_numbers = #tpu.dot_dimension_numbers<[1], [0], [0], [1], [0, 0, 1, 1], [], []>} : vector<49x196xbf16>, vector<196x32xbf16>, vector<49x32xf32> -> vector<49x32xf32>
    %62 = arith.truncf %61 : vector<49x32xf32> to vector<49x32xbf16>
    %c6_53 = arith.constant 6 : index
    %c0_54 = arith.constant 0 : index
    %c0_55 = arith.constant 0 : index
    %63 = vector.load %arg4[%c6_53, %c0_54, %c0_55] : memref<16x32x64xbf16, #tpu.memory_space<vmem>>, vector<1x32x64xbf16>
    %64 = vector.shape_cast %63 : vector<1x32x64xbf16> to vector<32x64xbf16>
    %cst_56 = arith.constant dense<0.000000e+00> : vector<49x64xf32>
    %65 = tpu.matmul %62, %64, %cst_56 {dimension_numbers = #tpu.dot_dimension_numbers<[1], [0], [0], [1], [0, 0, 1, 1], [], []>} : vector<49x32xbf16>, vector<32x64xbf16>, vector<49x64xf32> -> vector<49x64xf32>
    %66 = arith.addf %58, %65 : vector<49x64xf32>
    %c7 = arith.constant 7 : index
    %c0_57 = arith.constant 0 : index
    %c0_58 = arith.constant 0 : index
    %67 = vector.load %arg3[%c7, %c0_57, %c0_58] : memref<16x49x196xbf16, #tpu.memory_space<vmem>>, vector<1x49x196xbf16>
    %68 = vector.shape_cast %67 : vector<1x49x196xbf16> to vector<49x196xbf16>
    %cst_59 = arith.constant dense<0.000000e+00> : vector<49x32xf32>
    %69 = tpu.matmul %68, %9, %cst_59 {dimension_numbers = #tpu.dot_dimension_numbers<[1], [0], [0], [1], [0, 0, 1, 1], [], []>} : vector<49x196xbf16>, vector<196x32xbf16>, vector<49x32xf32> -> vector<49x32xf32>
    %70 = arith.truncf %69 : vector<49x32xf32> to vector<49x32xbf16>
    %c7_60 = arith.constant 7 : index
    %c0_61 = arith.constant 0 : index
    %c0_62 = arith.constant 0 : index
    %71 = vector.load %arg4[%c7_60, %c0_61, %c0_62] : memref<16x32x64xbf16, #tpu.memory_space<vmem>>, vector<1x32x64xbf16>
    %72 = vector.shape_cast %71 : vector<1x32x64xbf16> to vector<32x64xbf16>
    %cst_63 = arith.constant dense<0.000000e+00> : vector<49x64xf32>
    %73 = tpu.matmul %70, %72, %cst_63 {dimension_numbers = #tpu.dot_dimension_numbers<[1], [0], [0], [1], [0, 0, 1, 1], [], []>} : vector<49x32xbf16>, vector<32x64xbf16>, vector<49x64xf32> -> vector<49x64xf32>
    %74 = arith.addf %66, %73 : vector<49x64xf32>
    %c8 = arith.constant 8 : index
    %c0_64 = arith.constant 0 : index
    %c0_65 = arith.constant 0 : index
    %75 = vector.load %arg3[%c8, %c0_64, %c0_65] : memref<16x49x196xbf16, #tpu.memory_space<vmem>>, vector<1x49x196xbf16>
    %76 = vector.shape_cast %75 : vector<1x49x196xbf16> to vector<49x196xbf16>
    %cst_66 = arith.constant dense<0.000000e+00> : vector<49x32xf32>
    %77 = tpu.matmul %76, %9, %cst_66 {dimension_numbers = #tpu.dot_dimension_numbers<[1], [0], [0], [1], [0, 0, 1, 1], [], []>} : vector<49x196xbf16>, vector<196x32xbf16>, vector<49x32xf32> -> vector<49x32xf32>
    %78 = arith.truncf %77 : vector<49x32xf32> to vector<49x32xbf16>
    %c8_67 = arith.constant 8 : index
    %c0_68 = arith.constant 0 : index
    %c0_69 = arith.constant 0 : index
    %79 = vector.load %arg4[%c8_67, %c0_68, %c0_69] : memref<16x32x64xbf16, #tpu.memory_space<vmem>>, vector<1x32x64xbf16>
    %80 = vector.shape_cast %79 : vector<1x32x64xbf16> to vector<32x64xbf16>
    %cst_70 = arith.constant dense<0.000000e+00> : vector<49x64xf32>
    %81 = tpu.matmul %78, %80, %cst_70 {dimension_numbers = #tpu.dot_dimension_numbers<[1], [0], [0], [1], [0, 0, 1, 1], [], []>} : vector<49x32xbf16>, vector<32x64xbf16>, vector<49x64xf32> -> vector<49x64xf32>
    %82 = arith.addf %74, %81 : vector<49x64xf32>
    %c9 = arith.constant 9 : index
    %c0_71 = arith.constant 0 : index
    %c0_72 = arith.constant 0 : index
    %83 = vector.load %arg3[%c9, %c0_71, %c0_72] : memref<16x49x196xbf16, #tpu.memory_space<vmem>>, vector<1x49x196xbf16>
    %84 = vector.shape_cast %83 : vector<1x49x196xbf16> to vector<49x196xbf16>
    %cst_73 = arith.constant dense<0.000000e+00> : vector<49x32xf32>
    %85 = tpu.matmul %84, %9, %cst_73 {dimension_numbers = #tpu.dot_dimension_numbers<[1], [0], [0], [1], [0, 0, 1, 1], [], []>} : vector<49x196xbf16>, vector<196x32xbf16>, vector<49x32xf32> -> vector<49x32xf32>
    %86 = arith.truncf %85 : vector<49x32xf32> to vector<49x32xbf16>
    %c9_74 = arith.constant 9 : index
    %c0_75 = arith.constant 0 : index
    %c0_76 = arith.constant 0 : index
    %87 = vector.load %arg4[%c9_74, %c0_75, %c0_76] : memref<16x32x64xbf16, #tpu.memory_space<vmem>>, vector<1x32x64xbf16>
    %88 = vector.shape_cast %87 : vector<1x32x64xbf16> to vector<32x64xbf16>
    %cst_77 = arith.constant dense<0.000000e+00> : vector<49x64xf32>
    %89 = tpu.matmul %86, %88, %cst_77 {dimension_numbers = #tpu.dot_dimension_numbers<[1], [0], [0], [1], [0, 0, 1, 1], [], []>} : vector<49x32xbf16>, vector<32x64xbf16>, vector<49x64xf32> -> vector<49x64xf32>
    %90 = arith.addf %82, %89 : vector<49x64xf32>
    %c10 = arith.constant 10 : index
    %c0_78 = arith.constant 0 : index
    %c0_79 = arith.constant 0 : index
    %91 = vector.load %arg3[%c10, %c0_78, %c0_79] : memref<16x49x196xbf16, #tpu.memory_space<vmem>>, vector<1x49x196xbf16>
    %92 = vector.shape_cast %91 : vector<1x49x196xbf16> to vector<49x196xbf16>
    %cst_80 = arith.constant dense<0.000000e+00> : vector<49x32xf32>
    %93 = tpu.matmul %92, %9, %cst_80 {dimension_numbers = #tpu.dot_dimension_numbers<[1], [0], [0], [1], [0, 0, 1, 1], [], []>} : vector<49x196xbf16>, vector<196x32xbf16>, vector<49x32xf32> -> vector<49x32xf32>
    %94 = arith.truncf %93 : vector<49x32xf32> to vector<49x32xbf16>
    %c10_81 = arith.constant 10 : index
    %c0_82 = arith.constant 0 : index
    %c0_83 = arith.constant 0 : index
    %95 = vector.load %arg4[%c10_81, %c0_82, %c0_83] : memref<16x32x64xbf16, #tpu.memory_space<vmem>>, vector<1x32x64xbf16>
    %96 = vector.shape_cast %95 : vector<1x32x64xbf16> to vector<32x64xbf16>
    %cst_84 = arith.constant dense<0.000000e+00> : vector<49x64xf32>
    %97 = tpu.matmul %94, %96, %cst_84 {dimension_numbers = #tpu.dot_dimension_numbers<[1], [0], [0], [1], [0, 0, 1, 1], [], []>} : vector<49x32xbf16>, vector<32x64xbf16>, vector<49x64xf32> -> vector<49x64xf32>
    %98 = arith.addf %90, %97 : vector<49x64xf32>
    %c11 = arith.constant 11 : index
    %c0_85 = arith.constant 0 : index
    %c0_86 = arith.constant 0 : index
    %99 = vector.load %arg3[%c11, %c0_85, %c0_86] : memref<16x49x196xbf16, #tpu.memory_space<vmem>>, vector<1x49x196xbf16>
    %100 = vector.shape_cast %99 : vector<1x49x196xbf16> to vector<49x196xbf16>
    %cst_87 = arith.constant dense<0.000000e+00> : vector<49x32xf32>
    %101 = tpu.matmul %100, %9, %cst_87 {dimension_numbers = #tpu.dot_dimension_numbers<[1], [0], [0], [1], [0, 0, 1, 1], [], []>} : vector<49x196xbf16>, vector<196x32xbf16>, vector<49x32xf32> -> vector<49x32xf32>
    %102 = arith.truncf %101 : vector<49x32xf32> to vector<49x32xbf16>
    %c11_88 = arith.constant 11 : index
    %c0_89 = arith.constant 0 : index
    %c0_90 = arith.constant 0 : index
    %103 = vector.load %arg4[%c11_88, %c0_89, %c0_90] : memref<16x32x64xbf16, #tpu.memory_space<vmem>>, vector<1x32x64xbf16>
    %104 = vector.shape_cast %103 : vector<1x32x64xbf16> to vector<32x64xbf16>
    %cst_91 = arith.constant dense<0.000000e+00> : vector<49x64xf32>
    %105 = tpu.matmul %102, %104, %cst_91 {dimension_numbers = #tpu.dot_dimension_numbers<[1], [0], [0], [1], [0, 0, 1, 1], [], []>} : vector<49x32xbf16>, vector<32x64xbf16>, vector<49x64xf32> -> vector<49x64xf32>
    %106 = arith.addf %98, %105 : vector<49x64xf32>
    %c12 = arith.constant 12 : index
    %c0_92 = arith.constant 0 : index
    %c0_93 = arith.constant 0 : index
    %107 = vector.load %arg3[%c12, %c0_92, %c0_93] : memref<16x49x196xbf16, #tpu.memory_space<vmem>>, vector<1x49x196xbf16>
    %108 = vector.shape_cast %107 : vector<1x49x196xbf16> to vector<49x196xbf16>
    %cst_94 = arith.constant dense<0.000000e+00> : vector<49x32xf32>
    %109 = tpu.matmul %108, %9, %cst_94 {dimension_numbers = #tpu.dot_dimension_numbers<[1], [0], [0], [1], [0, 0, 1, 1], [], []>} : vector<49x196xbf16>, vector<196x32xbf16>, vector<49x32xf32> -> vector<49x32xf32>
    %110 = arith.truncf %109 : vector<49x32xf32> to vector<49x32xbf16>
    %c12_95 = arith.constant 12 : index
    %c0_96 = arith.constant 0 : index
    %c0_97 = arith.constant 0 : index
    %111 = vector.load %arg4[%c12_95, %c0_96, %c0_97] : memref<16x32x64xbf16, #tpu.memory_space<vmem>>, vector<1x32x64xbf16>
    %112 = vector.shape_cast %111 : vector<1x32x64xbf16> to vector<32x64xbf16>
    %cst_98 = arith.constant dense<0.000000e+00> : vector<49x64xf32>
    %113 = tpu.matmul %110, %112, %cst_98 {dimension_numbers = #tpu.dot_dimension_numbers<[1], [0], [0], [1], [0, 0, 1, 1], [], []>} : vector<49x32xbf16>, vector<32x64xbf16>, vector<49x64xf32> -> vector<49x64xf32>
    %114 = arith.addf %106, %113 : vector<49x64xf32>
    %c13 = arith.constant 13 : index
    %c0_99 = arith.constant 0 : index
    %c0_100 = arith.constant 0 : index
    %115 = vector.load %arg3[%c13, %c0_99, %c0_100] : memref<16x49x196xbf16, #tpu.memory_space<vmem>>, vector<1x49x196xbf16>
    %116 = vector.shape_cast %115 : vector<1x49x196xbf16> to vector<49x196xbf16>
    %cst_101 = arith.constant dense<0.000000e+00> : vector<49x32xf32>
    %117 = tpu.matmul %116, %9, %cst_101 {dimension_numbers = #tpu.dot_dimension_numbers<[1], [0], [0], [1], [0, 0, 1, 1], [], []>} : vector<49x196xbf16>, vector<196x32xbf16>, vector<49x32xf32> -> vector<49x32xf32>
    %118 = arith.truncf %117 : vector<49x32xf32> to vector<49x32xbf16>
    %c13_102 = arith.constant 13 : index
    %c0_103 = arith.constant 0 : index
    %c0_104 = arith.constant 0 : index
    %119 = vector.load %arg4[%c13_102, %c0_103, %c0_104] : memref<16x32x64xbf16, #tpu.memory_space<vmem>>, vector<1x32x64xbf16>
    %120 = vector.shape_cast %119 : vector<1x32x64xbf16> to vector<32x64xbf16>
    %cst_105 = arith.constant dense<0.000000e+00> : vector<49x64xf32>
    %121 = tpu.matmul %118, %120, %cst_105 {dimension_numbers = #tpu.dot_dimension_numbers<[1], [0], [0], [1], [0, 0, 1, 1], [], []>} : vector<49x32xbf16>, vector<32x64xbf16>, vector<49x64xf32> -> vector<49x64xf32>
    %122 = arith.addf %114, %121 : vector<49x64xf32>
    %c14 = arith.constant 14 : index
    %c0_106 = arith.constant 0 : index
    %c0_107 = arith.constant 0 : index
    %123 = vector.load %arg3[%c14, %c0_106, %c0_107] : memref<16x49x196xbf16, #tpu.memory_space<vmem>>, vector<1x49x196xbf16>
    %124 = vector.shape_cast %123 : vector<1x49x196xbf16> to vector<49x196xbf16>
    %cst_108 = arith.constant dense<0.000000e+00> : vector<49x32xf32>
    %125 = tpu.matmul %124, %9, %cst_108 {dimension_numbers = #tpu.dot_dimension_numbers<[1], [0], [0], [1], [0, 0, 1, 1], [], []>} : vector<49x196xbf16>, vector<196x32xbf16>, vector<49x32xf32> -> vector<49x32xf32>
    %126 = arith.truncf %125 : vector<49x32xf32> to vector<49x32xbf16>
    %c14_109 = arith.constant 14 : index
    %c0_110 = arith.constant 0 : index
    %c0_111 = arith.constant 0 : index
    %127 = vector.load %arg4[%c14_109, %c0_110, %c0_111] : memref<16x32x64xbf16, #tpu.memory_space<vmem>>, vector<1x32x64xbf16>
    %128 = vector.shape_cast %127 : vector<1x32x64xbf16> to vector<32x64xbf16>
    %cst_112 = arith.constant dense<0.000000e+00> : vector<49x64xf32>
    %129 = tpu.matmul %126, %128, %cst_112 {dimension_numbers = #tpu.dot_dimension_numbers<[1], [0], [0], [1], [0, 0, 1, 1], [], []>} : vector<49x32xbf16>, vector<32x64xbf16>, vector<49x64xf32> -> vector<49x64xf32>
    %130 = arith.addf %122, %129 : vector<49x64xf32>
    %c15 = arith.constant 15 : index
    %c0_113 = arith.constant 0 : index
    %c0_114 = arith.constant 0 : index
    %131 = vector.load %arg3[%c15, %c0_113, %c0_114] : memref<16x49x196xbf16, #tpu.memory_space<vmem>>, vector<1x49x196xbf16>
    %132 = vector.shape_cast %131 : vector<1x49x196xbf16> to vector<49x196xbf16>
    %cst_115 = arith.constant dense<0.000000e+00> : vector<49x32xf32>
    %133 = tpu.matmul %132, %9, %cst_115 {dimension_numbers = #tpu.dot_dimension_numbers<[1], [0], [0], [1], [0, 0, 1, 1], [], []>} : vector<49x196xbf16>, vector<196x32xbf16>, vector<49x32xf32> -> vector<49x32xf32>
    %134 = arith.truncf %133 : vector<49x32xf32> to vector<49x32xbf16>
    %c15_116 = arith.constant 15 : index
    %c0_117 = arith.constant 0 : index
    %c0_118 = arith.constant 0 : index
    %135 = vector.load %arg4[%c15_116, %c0_117, %c0_118] : memref<16x32x64xbf16, #tpu.memory_space<vmem>>, vector<1x32x64xbf16>
    %136 = vector.shape_cast %135 : vector<1x32x64xbf16> to vector<32x64xbf16>
    %cst_119 = arith.constant dense<0.000000e+00> : vector<49x64xf32>
    %137 = tpu.matmul %134, %136, %cst_119 {dimension_numbers = #tpu.dot_dimension_numbers<[1], [0], [0], [1], [0, 0, 1, 1], [], []>} : vector<49x32xbf16>, vector<32x64xbf16>, vector<49x64xf32> -> vector<49x64xf32>
    %138 = arith.addf %130, %137 : vector<49x64xf32>
    %cst_120 = arith.constant dense<0.000000e+00> : vector<64xf32>
    %139 = vector.multi_reduction <add>, %138, %cst_120 [0] : vector<49x64xf32> to vector<64xf32>
    %140 = vector.shape_cast %139 : vector<64xf32> to vector<1x64xf32>
    %cst_121 = arith.constant 4.900000e+01 : f32
    %141 = vector.broadcast %cst_121 : f32 to vector<1x64xf32>
    %142 = arith.divf %140, %141 : vector<1x64xf32>
    %143 = vector.broadcast %142 : vector<1x64xf32> to vector<49x64xf32>
    %144 = arith.subf %138, %143 : vector<49x64xf32>
    %145 = arith.mulf %144, %144 : vector<49x64xf32>
    %cst_122 = arith.constant dense<0.000000e+00> : vector<64xf32>
    %146 = vector.multi_reduction <add>, %145, %cst_122 [0] : vector<49x64xf32> to vector<64xf32>
    %147 = vector.shape_cast %146 : vector<64xf32> to vector<1x64xf32>
    %cst_123 = arith.constant 4.900000e+01 : f32
    %148 = vector.broadcast %cst_123 : f32 to vector<1x64xf32>
    %149 = arith.divf %147, %148 : vector<1x64xf32>
    %150 = vector.broadcast %142 : vector<1x64xf32> to vector<49x64xf32>
    %151 = arith.subf %138, %150 : vector<49x64xf32>
    %cst_124 = arith.constant 9.99999974E-6 : f32
    %152 = vector.broadcast %cst_124 : f32 to vector<1x64xf32>
    %153 = arith.addf %149, %152 : vector<1x64xf32>
    %154 = math.rsqrt %153 : vector<1x64xf32>
    %155 = vector.broadcast %154 : vector<1x64xf32> to vector<49x64xf32>
    %156 = arith.mulf %151, %155 : vector<49x64xf32>
    %cst_125 = arith.constant 0.000000e+00 : f32
    %157 = vector.broadcast %cst_125 : f32 to vector<49x64xf32>
    %158 = arith.cmpf oge, %156, %157 : vector<49x64xf32>
    %cst_126 = arith.constant 2.000000e-01 : f32
    %159 = vector.broadcast %cst_126 : f32 to vector<49x64xf32>
    %160 = arith.mulf %159, %156 : vector<49x64xf32>
    %161 = arith.select %158, %156, %160 : vector<49x64xi1>, vector<49x64xf32>
    %162 = arith.truncf %161 : vector<49x64xf32> to vector<49x64xbf16>
    %cst_127 = arith.constant 0.000000e+00 : f32
    %163 = vector.broadcast %cst_127 : f32 to vector<16x128xf32>
    %c0_128 = arith.constant 0 : index
    %c0_129 = arith.constant 0 : index
    %c0_130 = arith.constant 0 : index
    %164 = vector.load %arg5[%c0_128, %c0_129, %c0_130] : memref<9x16x49xbf16, #tpu.memory_space<vmem>>, vector<1x16x49xbf16>
    %165 = vector.shape_cast %164 : vector<1x16x49xbf16> to vector<16x49xbf16>
    %cst_131 = arith.constant dense<0.000000e+00> : vector<16x64xf32>
    %166 = tpu.matmul %165, %162, %cst_131 {dimension_numbers = #tpu.dot_dimension_numbers<[1], [0], [0], [1], [0, 0, 1, 1], [], []>} : vector<16x49xbf16>, vector<49x64xbf16>, vector<16x64xf32> -> vector<16x64xf32>
    %167 = arith.truncf %166 : vector<16x64xf32> to vector<16x64xbf16>
    %c0_132 = arith.constant 0 : index
    %c0_133 = arith.constant 0 : index
    %c0_134 = arith.constant 0 : index
    %168 = vector.load %arg6[%c0_132, %c0_133, %c0_134] : memref<9x64x128xbf16, #tpu.memory_space<vmem>>, vector<1x64x128xbf16>
    %169 = vector.shape_cast %168 : vector<1x64x128xbf16> to vector<64x128xbf16>
    %cst_135 = arith.constant dense<0.000000e+00> : vector<16x128xf32>
    %170 = tpu.matmul %167, %169, %cst_135 {dimension_numbers = #tpu.dot_dimension_numbers<[1], [0], [0], [1], [0, 0, 1, 1], [], []>} : vector<16x64xbf16>, vector<64x128xbf16>, vector<16x128xf32> -> vector<16x128xf32>
    %171 = arith.addf %163, %170 : vector<16x128xf32>
    %c1_136 = arith.constant 1 : index
    %c0_137 = arith.constant 0 : index
    %c0_138 = arith.constant 0 : index
    %172 = vector.load %arg5[%c1_136, %c0_137, %c0_138] : memref<9x16x49xbf16, #tpu.memory_space<vmem>>, vector<1x16x49xbf16>
    %173 = vector.shape_cast %172 : vector<1x16x49xbf16> to vector<16x49xbf16>
    %cst_139 = arith.constant dense<0.000000e+00> : vector<16x64xf32>
    %174 = tpu.matmul %173, %162, %cst_139 {dimension_numbers = #tpu.dot_dimension_numbers<[1], [0], [0], [1], [0, 0, 1, 1], [], []>} : vector<16x49xbf16>, vector<49x64xbf16>, vector<16x64xf32> -> vector<16x64xf32>
    %175 = arith.truncf %174 : vector<16x64xf32> to vector<16x64xbf16>
    %c1_140 = arith.constant 1 : index
    %c0_141 = arith.constant 0 : index
    %c0_142 = arith.constant 0 : index
    %176 = vector.load %arg6[%c1_140, %c0_141, %c0_142] : memref<9x64x128xbf16, #tpu.memory_space<vmem>>, vector<1x64x128xbf16>
    %177 = vector.shape_cast %176 : vector<1x64x128xbf16> to vector<64x128xbf16>
    %cst_143 = arith.constant dense<0.000000e+00> : vector<16x128xf32>
    %178 = tpu.matmul %175, %177, %cst_143 {dimension_numbers = #tpu.dot_dimension_numbers<[1], [0], [0], [1], [0, 0, 1, 1], [], []>} : vector<16x64xbf16>, vector<64x128xbf16>, vector<16x128xf32> -> vector<16x128xf32>
    %179 = arith.addf %171, %178 : vector<16x128xf32>
    %c2_144 = arith.constant 2 : index
    %c0_145 = arith.constant 0 : index
    %c0_146 = arith.constant 0 : index
    %180 = vector.load %arg5[%c2_144, %c0_145, %c0_146] : memref<9x16x49xbf16, #tpu.memory_space<vmem>>, vector<1x16x49xbf16>
    %181 = vector.shape_cast %180 : vector<1x16x49xbf16> to vector<16x49xbf16>
    %cst_147 = arith.constant dense<0.000000e+00> : vector<16x64xf32>
    %182 = tpu.matmul %181, %162, %cst_147 {dimension_numbers = #tpu.dot_dimension_numbers<[1], [0], [0], [1], [0, 0, 1, 1], [], []>} : vector<16x49xbf16>, vector<49x64xbf16>, vector<16x64xf32> -> vector<16x64xf32>
    %183 = arith.truncf %182 : vector<16x64xf32> to vector<16x64xbf16>
    %c2_148 = arith.constant 2 : index
    %c0_149 = arith.constant 0 : index
    %c0_150 = arith.constant 0 : index
    %184 = vector.load %arg6[%c2_148, %c0_149, %c0_150] : memref<9x64x128xbf16, #tpu.memory_space<vmem>>, vector<1x64x128xbf16>
    %185 = vector.shape_cast %184 : vector<1x64x128xbf16> to vector<64x128xbf16>
    %cst_151 = arith.constant dense<0.000000e+00> : vector<16x128xf32>
    %186 = tpu.matmul %183, %185, %cst_151 {dimension_numbers = #tpu.dot_dimension_numbers<[1], [0], [0], [1], [0, 0, 1, 1], [], []>} : vector<16x64xbf16>, vector<64x128xbf16>, vector<16x128xf32> -> vector<16x128xf32>
    %187 = arith.addf %179, %186 : vector<16x128xf32>
    %c3_152 = arith.constant 3 : index
    %c0_153 = arith.constant 0 : index
    %c0_154 = arith.constant 0 : index
    %188 = vector.load %arg5[%c3_152, %c0_153, %c0_154] : memref<9x16x49xbf16, #tpu.memory_space<vmem>>, vector<1x16x49xbf16>
    %189 = vector.shape_cast %188 : vector<1x16x49xbf16> to vector<16x49xbf16>
    %cst_155 = arith.constant dense<0.000000e+00> : vector<16x64xf32>
    %190 = tpu.matmul %189, %162, %cst_155 {dimension_numbers = #tpu.dot_dimension_numbers<[1], [0], [0], [1], [0, 0, 1, 1], [], []>} : vector<16x49xbf16>, vector<49x64xbf16>, vector<16x64xf32> -> vector<16x64xf32>
    %191 = arith.truncf %190 : vector<16x64xf32> to vector<16x64xbf16>
    %c3_156 = arith.constant 3 : index
    %c0_157 = arith.constant 0 : index
    %c0_158 = arith.constant 0 : index
    %192 = vector.load %arg6[%c3_156, %c0_157, %c0_158] : memref<9x64x128xbf16, #tpu.memory_space<vmem>>, vector<1x64x128xbf16>
    %193 = vector.shape_cast %192 : vector<1x64x128xbf16> to vector<64x128xbf16>
    %cst_159 = arith.constant dense<0.000000e+00> : vector<16x128xf32>
    %194 = tpu.matmul %191, %193, %cst_159 {dimension_numbers = #tpu.dot_dimension_numbers<[1], [0], [0], [1], [0, 0, 1, 1], [], []>} : vector<16x64xbf16>, vector<64x128xbf16>, vector<16x128xf32> -> vector<16x128xf32>
    %195 = arith.addf %187, %194 : vector<16x128xf32>
    %c4_160 = arith.constant 4 : index
    %c0_161 = arith.constant 0 : index
    %c0_162 = arith.constant 0 : index
    %196 = vector.load %arg5[%c4_160, %c0_161, %c0_162] : memref<9x16x49xbf16, #tpu.memory_space<vmem>>, vector<1x16x49xbf16>
    %197 = vector.shape_cast %196 : vector<1x16x49xbf16> to vector<16x49xbf16>
    %cst_163 = arith.constant dense<0.000000e+00> : vector<16x64xf32>
    %198 = tpu.matmul %197, %162, %cst_163 {dimension_numbers = #tpu.dot_dimension_numbers<[1], [0], [0], [1], [0, 0, 1, 1], [], []>} : vector<16x49xbf16>, vector<49x64xbf16>, vector<16x64xf32> -> vector<16x64xf32>
    %199 = arith.truncf %198 : vector<16x64xf32> to vector<16x64xbf16>
    %c4_164 = arith.constant 4 : index
    %c0_165 = arith.constant 0 : index
    %c0_166 = arith.constant 0 : index
    %200 = vector.load %arg6[%c4_164, %c0_165, %c0_166] : memref<9x64x128xbf16, #tpu.memory_space<vmem>>, vector<1x64x128xbf16>
    %201 = vector.shape_cast %200 : vector<1x64x128xbf16> to vector<64x128xbf16>
    %cst_167 = arith.constant dense<0.000000e+00> : vector<16x128xf32>
    %202 = tpu.matmul %199, %201, %cst_167 {dimension_numbers = #tpu.dot_dimension_numbers<[1], [0], [0], [1], [0, 0, 1, 1], [], []>} : vector<16x64xbf16>, vector<64x128xbf16>, vector<16x128xf32> -> vector<16x128xf32>
    %203 = arith.addf %195, %202 : vector<16x128xf32>
    %c5_168 = arith.constant 5 : index
    %c0_169 = arith.constant 0 : index
    %c0_170 = arith.constant 0 : index
    %204 = vector.load %arg5[%c5_168, %c0_169, %c0_170] : memref<9x16x49xbf16, #tpu.memory_space<vmem>>, vector<1x16x49xbf16>
    %205 = vector.shape_cast %204 : vector<1x16x49xbf16> to vector<16x49xbf16>
    %cst_171 = arith.constant dense<0.000000e+00> : vector<16x64xf32>
    %206 = tpu.matmul %205, %162, %cst_171 {dimension_numbers = #tpu.dot_dimension_numbers<[1], [0], [0], [1], [0, 0, 1, 1], [], []>} : vector<16x49xbf16>, vector<49x64xbf16>, vector<16x64xf32> -> vector<16x64xf32>
    %207 = arith.truncf %206 : vector<16x64xf32> to vector<16x64xbf16>
    %c5_172 = arith.constant 5 : index
    %c0_173 = arith.constant 0 : index
    %c0_174 = arith.constant 0 : index
    %208 = vector.load %arg6[%c5_172, %c0_173, %c0_174] : memref<9x64x128xbf16, #tpu.memory_space<vmem>>, vector<1x64x128xbf16>
    %209 = vector.shape_cast %208 : vector<1x64x128xbf16> to vector<64x128xbf16>
    %cst_175 = arith.constant dense<0.000000e+00> : vector<16x128xf32>
    %210 = tpu.matmul %207, %209, %cst_175 {dimension_numbers = #tpu.dot_dimension_numbers<[1], [0], [0], [1], [0, 0, 1, 1], [], []>} : vector<16x64xbf16>, vector<64x128xbf16>, vector<16x128xf32> -> vector<16x128xf32>
    %211 = arith.addf %203, %210 : vector<16x128xf32>
    %c6_176 = arith.constant 6 : index
    %c0_177 = arith.constant 0 : index
    %c0_178 = arith.constant 0 : index
    %212 = vector.load %arg5[%c6_176, %c0_177, %c0_178] : memref<9x16x49xbf16, #tpu.memory_space<vmem>>, vector<1x16x49xbf16>
    %213 = vector.shape_cast %212 : vector<1x16x49xbf16> to vector<16x49xbf16>
    %cst_179 = arith.constant dense<0.000000e+00> : vector<16x64xf32>
    %214 = tpu.matmul %213, %162, %cst_179 {dimension_numbers = #tpu.dot_dimension_numbers<[1], [0], [0], [1], [0, 0, 1, 1], [], []>} : vector<16x49xbf16>, vector<49x64xbf16>, vector<16x64xf32> -> vector<16x64xf32>
    %215 = arith.truncf %214 : vector<16x64xf32> to vector<16x64xbf16>
    %c6_180 = arith.constant 6 : index
    %c0_181 = arith.constant 0 : index
    %c0_182 = arith.constant 0 : index
    %216 = vector.load %arg6[%c6_180, %c0_181, %c0_182] : memref<9x64x128xbf16, #tpu.memory_space<vmem>>, vector<1x64x128xbf16>
    %217 = vector.shape_cast %216 : vector<1x64x128xbf16> to vector<64x128xbf16>
    %cst_183 = arith.constant dense<0.000000e+00> : vector<16x128xf32>
    %218 = tpu.matmul %215, %217, %cst_183 {dimension_numbers = #tpu.dot_dimension_numbers<[1], [0], [0], [1], [0, 0, 1, 1], [], []>} : vector<16x64xbf16>, vector<64x128xbf16>, vector<16x128xf32> -> vector<16x128xf32>
    %219 = arith.addf %211, %218 : vector<16x128xf32>
    %c7_184 = arith.constant 7 : index
    %c0_185 = arith.constant 0 : index
    %c0_186 = arith.constant 0 : index
    %220 = vector.load %arg5[%c7_184, %c0_185, %c0_186] : memref<9x16x49xbf16, #tpu.memory_space<vmem>>, vector<1x16x49xbf16>
    %221 = vector.shape_cast %220 : vector<1x16x49xbf16> to vector<16x49xbf16>
    %cst_187 = arith.constant dense<0.000000e+00> : vector<16x64xf32>
    %222 = tpu.matmul %221, %162, %cst_187 {dimension_numbers = #tpu.dot_dimension_numbers<[1], [0], [0], [1], [0, 0, 1, 1], [], []>} : vector<16x49xbf16>, vector<49x64xbf16>, vector<16x64xf32> -> vector<16x64xf32>
    %223 = arith.truncf %222 : vector<16x64xf32> to vector<16x64xbf16>
    %c7_188 = arith.constant 7 : index
    %c0_189 = arith.constant 0 : index
    %c0_190 = arith.constant 0 : index
    %224 = vector.load %arg6[%c7_188, %c0_189, %c0_190] : memref<9x64x128xbf16, #tpu.memory_space<vmem>>, vector<1x64x128xbf16>
    %225 = vector.shape_cast %224 : vector<1x64x128xbf16> to vector<64x128xbf16>
    %cst_191 = arith.constant dense<0.000000e+00> : vector<16x128xf32>
    %226 = tpu.matmul %223, %225, %cst_191 {dimension_numbers = #tpu.dot_dimension_numbers<[1], [0], [0], [1], [0, 0, 1, 1], [], []>} : vector<16x64xbf16>, vector<64x128xbf16>, vector<16x128xf32> -> vector<16x128xf32>
    %227 = arith.addf %219, %226 : vector<16x128xf32>
    %c8_192 = arith.constant 8 : index
    %c0_193 = arith.constant 0 : index
    %c0_194 = arith.constant 0 : index
    %228 = vector.load %arg5[%c8_192, %c0_193, %c0_194] : memref<9x16x49xbf16, #tpu.memory_space<vmem>>, vector<1x16x49xbf16>
    %229 = vector.shape_cast %228 : vector<1x16x49xbf16> to vector<16x49xbf16>
    %cst_195 = arith.constant dense<0.000000e+00> : vector<16x64xf32>
    %230 = tpu.matmul %229, %162, %cst_195 {dimension_numbers = #tpu.dot_dimension_numbers<[1], [0], [0], [1], [0, 0, 1, 1], [], []>} : vector<16x49xbf16>, vector<49x64xbf16>, vector<16x64xf32> -> vector<16x64xf32>
    %231 = arith.truncf %230 : vector<16x64xf32> to vector<16x64xbf16>
    %c8_196 = arith.constant 8 : index
    %c0_197 = arith.constant 0 : index
    %c0_198 = arith.constant 0 : index
    %232 = vector.load %arg6[%c8_196, %c0_197, %c0_198] : memref<9x64x128xbf16, #tpu.memory_space<vmem>>, vector<1x64x128xbf16>
    %233 = vector.shape_cast %232 : vector<1x64x128xbf16> to vector<64x128xbf16>
    %cst_199 = arith.constant dense<0.000000e+00> : vector<16x128xf32>
    %234 = tpu.matmul %231, %233, %cst_199 {dimension_numbers = #tpu.dot_dimension_numbers<[1], [0], [0], [1], [0, 0, 1, 1], [], []>} : vector<16x64xbf16>, vector<64x128xbf16>, vector<16x128xf32> -> vector<16x128xf32>
    %235 = arith.addf %227, %234 : vector<16x128xf32>
    %cst_200 = arith.constant dense<0.000000e+00> : vector<128xf32>
    %236 = vector.multi_reduction <add>, %235, %cst_200 [0] : vector<16x128xf32> to vector<128xf32>
    %237 = vector.shape_cast %236 : vector<128xf32> to vector<1x128xf32>
    %cst_201 = arith.constant 1.600000e+01 : f32
    %238 = vector.broadcast %cst_201 : f32 to vector<1x128xf32>
    %239 = arith.divf %237, %238 : vector<1x128xf32>
    %240 = vector.broadcast %239 : vector<1x128xf32> to vector<16x128xf32>
    %241 = arith.subf %235, %240 : vector<16x128xf32>
    %242 = arith.mulf %241, %241 : vector<16x128xf32>
    %cst_202 = arith.constant dense<0.000000e+00> : vector<128xf32>
    %243 = vector.multi_reduction <add>, %242, %cst_202 [0] : vector<16x128xf32> to vector<128xf32>
    %244 = vector.shape_cast %243 : vector<128xf32> to vector<1x128xf32>
    %cst_203 = arith.constant 1.600000e+01 : f32
    %245 = vector.broadcast %cst_203 : f32 to vector<1x128xf32>
    %246 = arith.divf %244, %245 : vector<1x128xf32>
    %247 = vector.broadcast %239 : vector<1x128xf32> to vector<16x128xf32>
    %248 = arith.subf %235, %247 : vector<16x128xf32>
    %cst_204 = arith.constant 9.99999974E-6 : f32
    %249 = vector.broadcast %cst_204 : f32 to vector<1x128xf32>
    %250 = arith.addf %246, %249 : vector<1x128xf32>
    %251 = math.rsqrt %250 : vector<1x128xf32>
    %252 = vector.broadcast %251 : vector<1x128xf32> to vector<16x128xf32>
    %253 = arith.mulf %248, %252 : vector<16x128xf32>
    %cst_205 = arith.constant 0.000000e+00 : f32
    %254 = vector.broadcast %cst_205 : f32 to vector<16x128xf32>
    %255 = arith.cmpf oge, %253, %254 : vector<16x128xf32>
    %cst_206 = arith.constant 2.000000e-01 : f32
    %256 = vector.broadcast %cst_206 : f32 to vector<16x128xf32>
    %257 = arith.mulf %256, %253 : vector<16x128xf32>
    %258 = arith.select %255, %253, %257 : vector<16x128xi1>, vector<16x128xf32>
    %c0_207 = arith.constant 0 : index
    %c0_208 = arith.constant 0 : index
    %259 = vector.load %arg7[%c0_207, %c0_208] : memref<16x128xf32, #tpu.memory_space<vmem>>, vector<16x128xf32>
    %260 = arith.mulf %258, %259 : vector<16x128xf32>
    %cst_209 = arith.constant dense<0.000000e+00> : vector<16xf32>
    %261 = vector.multi_reduction <add>, %260, %cst_209 [1] : vector<16x128xf32> to vector<16xf32>
    %262 = vector.shape_cast %261 : vector<16xf32> to vector<16x1xf32>
    %cst_210 = arith.constant dense<0.000000e+00> : vector<1xf32>
    %263 = vector.multi_reduction <add>, %262, %cst_210 [0] : vector<16x1xf32> to vector<1xf32>
    %264 = vector.shape_cast %263 : vector<1xf32> to vector<1x1xf32>
    %cst_211 = arith.constant 0.000000e+00 : f32
    %265 = vector.broadcast %cst_211 : f32 to vector<1x1xf32>
    %266 = arith.subf %265, %264 : vector<1x1xf32>
    %267 = math.exp %266 : vector<1x1xf32>
    %cst_212 = arith.constant 1.000000e+00 : f32
    %268 = vector.broadcast %cst_212 : f32 to vector<1x1xf32>
    %269 = arith.addf %268, %267 : vector<1x1xf32>
    %cst_213 = arith.constant 1.000000e+00 : f32
    %270 = vector.broadcast %cst_213 : f32 to vector<1x1xf32>
    %271 = arith.divf %270, %269 : vector<1x1xf32>
    %272 = vector.shape_cast %271 : vector<1x1xf32> to vector<1x1x1xf32>
    %c0_214 = arith.constant 0 : index
    %c0_215 = arith.constant 0 : index
    %c0_216 = arith.constant 0 : index
    %273 = vector.load %arg8[%c0_214, %c0_215, %c0_216] : memref<1x1x1xf32, #tpu.memory_space<vmem>>, vector<1x1x1xf32>
    tpu.vector_store %arg8[%c0_214, %c0_215, %c0_216], %272 {strides = array<i32>} : memref<1x1x1xf32, #tpu.memory_space<vmem>>, vector<1x1x1xf32>,
    return
  }
  func.func @transform_0(%arg0: i32) -> (i32, i32, i32) {
    %c0_i32 = arith.constant 0 : i32
    %c0_i32_0 = arith.constant 0 : i32
    %c0_i32_1 = arith.constant 0 : i32
    return %arg0, %c0_i32, %c0_i32_0 : i32, i32, i32
  }
  func.func @transform_1(%arg0: i32) -> (i32, i32) {
    %c0_i32 = arith.constant 0 : i32
    %c0_i32_0 = arith.constant 0 : i32
    %c0_i32_1 = arith.constant 0 : i32
    return %c0_i32, %c0_i32_0 : i32, i32
  }
  func.func @transform_2(%arg0: i32) -> (i32, i32, i32) {
    %c0_i32 = arith.constant 0 : i32
    %c0_i32_0 = arith.constant 0 : i32
    %c0_i32_1 = arith.constant 0 : i32
    %c0_i32_2 = arith.constant 0 : i32
    return %c0_i32, %c0_i32_0, %c0_i32_1 : i32, i32, i32
  }
  func.func @transform_3(%arg0: i32) -> (i32, i32, i32) {
    %c0_i32 = arith.constant 0 : i32
    %c0_i32_0 = arith.constant 0 : i32
    %c0_i32_1 = arith.constant 0 : i32
    %c0_i32_2 = arith.constant 0 : i32
    return %c0_i32, %c0_i32_0, %c0_i32_1 : i32, i32, i32
  }
  func.func @transform_4(%arg0: i32) -> (i32, i32, i32) {
    %c0_i32 = arith.constant 0 : i32
    %c0_i32_0 = arith.constant 0 : i32
    %c0_i32_1 = arith.constant 0 : i32
    %c0_i32_2 = arith.constant 0 : i32
    return %c0_i32, %c0_i32_0, %c0_i32_1 : i32, i32, i32
  }
  func.func @transform_5(%arg0: i32) -> (i32, i32, i32) {
    %c0_i32 = arith.constant 0 : i32
    %c0_i32_0 = arith.constant 0 : i32
    %c0_i32_1 = arith.constant 0 : i32
    %c0_i32_2 = arith.constant 0 : i32
    return %c0_i32, %c0_i32_0, %c0_i32_1 : i32, i32, i32
  }
  func.func @transform_6(%arg0: i32) -> (i32, i32) {
    %c0_i32 = arith.constant 0 : i32
    %c0_i32_0 = arith.constant 0 : i32
    %c0_i32_1 = arith.constant 0 : i32
    return %c0_i32, %c0_i32_0 : i32, i32
  }
  func.func @transform_7(%arg0: i32) -> (i32, i32, i32) {
    %c0_i32 = arith.constant 0 : i32
    %c0_i32_0 = arith.constant 0 : i32
    %c0_i32_1 = arith.constant 0 : i32
    return %arg0, %c0_i32, %c0_i32_0 : i32, i32, i32
  }
}

</mosaic_0001>

<bundles_post_ra>
// kernel: tpu_custom_call.1
= control target key start
LH: loop header
LB: loop body
LE: loop exit
PB: predicated region body
PF: predicated region fallthrough
CT: control target
= control target key end

     0   :  { %s7324_s24 = smov 0   ;;  %s9025_s0 = inlined_call_operand.vmem [shape: bf16[2,196,16], index: 0, kind: input, shape index: {}]   ;;  %s9026_s1 = inlined_call_operand.vmem [shape: bf16[16,32], index: 1, kind: input, shape index: {}]   ;;  %s9027_s2 = inlined_call_operand.vmem [shape: bf16[16,49,196], index: 2, kind: input, shape index: {}]   ;;  %s9028_s3 = inlined_call_operand.vmem [shape: bf16[16,32,64], index: 3, kind: input, shape index: {}]   ;;  %s9029_s4 = inlined_call_operand.vmem [shape: bf16[9,16,49], index: 4, kind: input, shape index: {}]   ;;  %s9030_s5 = inlined_call_operand.vmem [shape: bf16[9,64,128], index: 5, kind: input, shape index: {}]   ;;  %s9031_s6 = inlined_call_operand.vmem [shape: f32[16,128], index: 6, kind: input, shape index: {}]   ;;  %s9032_s7 = inlined_call_operand.vmem [shape: f32[2,1,1], index: 7, kind: output, shape index: {}]  }
   0x1 LB: > { %s5543_s25 = sadd.s32 4294967295, %s7279_s24   ;;  %p5547_p0 = scmp.ge.s32.totalorder %s7279_s24, 1  ;;  %s7279_s24 = sphi %s7324_s24, %s17_s24  }
   0x2   : > { %p237_p1 = scmp.lt.s32.totalorder %s7279_s24, 3 }
   0x4   : > { %p238_p2 = pnand %p5547_p0, %p237_p1 }
   0x5   : > { %v6998_v0 = vld [vmem:[%s9026_s1] sm:$0xff] (!%p238_p2)   ;;  %v7281_v1 = vmov (!%p238_p2), 0.0   ;;  %p267_p3 = scmp.lt.s32.totalorder (!%p238_p2), %s5543_s25, 1  ;;  %vm7282_vm0 = vmmov (!%p238_p2), 0   ;;  %vm372_vm1 = vcmask (!%p238_p2), 130048   ;;  %v7283_v14 = vmov (!%p238_p2), 0  }
   0x6   : > { %241 = sbr.rel (%p238_p2) target bundleno = 3265 (0xcc1), region = 48  ;;  %6374 = vmatprep.subr.bf16.mxu0 (!%p238_p2), %v7281_v1  ;;  %6376 = vmatprep.mubr.msk.bf16.mxu0 (!%p238_p2), %vm7282_vm0, %v7281_v1  ;;  %v7014_v16 = vld [vmem:[%s9027_s2 + $0x4] ss:$8 sps:$4 sm:$0xff] (!%p238_p2)   ;;  %vm676_vm2 = vcmask (!%p238_p2), 556032  }
   0x7   : > { %6375 = vmatpush3.bf16.msra.mxu0 (!%p238_p2), %v6998_v0  ;;  %693 = vmatprep.subr.bf16.mxu1 (!%p238_p2), %v7283_v14 }
   0x8   : > { %5584 = vmatprep.mubr.msk.bf16.mxu1 (!%p238_p2), %vm676_vm2, %v7014_v16 }
   0xd   : > { %s9034_s25 = smov (!%p267_p3, %s5543_s25), 1 }
   0xe   : > { %s6986_s28 = smul.u32 100, %s9034_s25  ;;  %s274_s15 = scalar_lea.vmem %s9032_s7, %s9034_s25 }
  0x10   : > { %s7344_s8 = scalar_lea.vmem %s9025_s0, %s6986_s28 }
  0x11   : > { %v6999_v2 = vld [vmem:[%s7344_s8] sm:$0xff]   ;;  %v7000_v3 = vld [vmem:[%s7344_s8 + $0x8] sm:$0xff]   ;;  %v7001_v4 = vld [vmem:[%s7344_s8 + $0x10] sm:$0xff]  }
  0x12   : > { %6377 = vmatmul.mubr.msk.bf16.vlgmr.msra.gmra.mrb[0].mxu0 %vm372_vm1, %v6999_v2  ;;  %v7002_v5 = vld [vmem:[%s7344_s8 + $0x18] sm:$0xff]   ;;  %v7003_v6 = vld [vmem:[%s7344_s8 + $0x20] sm:$0xff]   ;;  %v7004_v7 = vld [vmem:[%s7344_s8 + $0x28] sm:$0xff]  }
  0x13   : > { %6380 = vmatprep.mubr.msk.bf16.mxu0 %vm7282_vm0, %v7281_v1  ;;  %v7005_v8 = vld [vmem:[%s7344_s8 + $0x30] sm:$0xff]   ;;  %v7006_v9 = vld [vmem:[%s7344_s8 + $0x38] sm:$0xff]   ;;  %v7007_v10 = vld [vmem:[%s7344_s8 + $0x40] sm:$0xff]  }
  0x14   : > { %v7008_v11 = vld [vmem:[%s7344_s8 + $0x48] sm:$0xff]   ;;  %v7009_v12 = vld [vmem:[%s7344_s8 + $0x50] sm:$0xff]   ;;  %v7010_v13 = vld [vmem:[%s7344_s8 + $0x58] sm:$0xff]  }
  0x15   : > { %v7011_v15 = vld [vmem:[%s7344_s8 + $0x60] ss:$0 sps:$4 sm:$0x33]  }
  0x1a   : > { %6381 = vmatmul.mubr.msk.bf16.gmra.mrb[4].mxu0 %vm372_vm1, %v7000_v3 }
  0x1b   : > { %6384 = vmatprep.mubr.msk.bf16.mxu0 %vm7282_vm0, %v7281_v1 }
  0x22   : > { %6385 = vmatmul.mubr.msk.bf16.gmra.mrb[8].mxu0 %vm372_vm1, %v7001_v4 }
  0x23   : > { %6388 = vmatprep.mubr.msk.bf16.mxu0 %vm7282_vm0, %v7281_v1 }
  0x2a   : > { %6389 = vmatmul.mubr.msk.bf16.gmra.mrb[12].mxu0 %vm372_vm1, %v7002_v5 }
  0x2b   : > { %6392 = vmatprep.mubr.msk.bf16.mxu0 %vm7282_vm0, %v7281_v1 }
  0x32   : > { %6393 = vmatmul.mubr.msk.bf16.gmra.mrb[16].mxu0 %vm372_vm1, %v7003_v6 }
  0x33   : > { %6396 = vmatprep.mubr.msk.bf16.mxu0 %vm7282_vm0, %v7281_v1 }
  0x3a   : > { %6397 = vmatmul.mubr.msk.bf16.gmra.mrb[20].mxu0 %vm372_vm1, %v7004_v7 }
  0x3b   : > { %6400 = vmatprep.mubr.msk.bf16.mxu0 %vm7282_vm0, %v7281_v1 }
  0x42   : > { %6401 = vmatmul.mubr.msk.bf16.gmra.mrb[24].mxu0 %vm372_vm1, %v7005_v8 }
  0x43   : > { %6404 = vmatprep.mubr.msk.bf16.mxu0 %vm7282_vm0, %v7281_v1 }
  0x4a   : > { %6405 = vmatmul.mubr.msk.bf16.gmra.mrb[28].mxu0 %vm372_vm1, %v7006_v9 }
  0x4b   : > { %6408 = vmatprep.mubr.msk.bf16.mxu0 %vm7282_vm0, %v7281_v1 }
  0x52   : > { %6409 = vmatmul.mubr.msk.bf16.gmra.mrb[32].mxu0 %vm372_vm1, %v7007_v10 }
  0x53   : > { %6412 = vmatprep.mubr.msk.bf16.mxu0 %vm7282_vm0, %v7281_v1 }
  0x5a   : > { %6413 = vmatmul.mubr.msk.bf16.gmra.mrb[36].mxu0 %vm372_vm1, %v7008_v11 }
  0x5b   : > { %6416 = vmatprep.mubr.msk.bf16.mxu0 %vm7282_vm0, %v7281_v1 }
  0x62   : > { %6417 = vmatmul.mubr.msk.bf16.gmra.mrb[40].mxu0 %vm372_vm1, %v7009_v12 }
  0x63   : > { %6420 = vmatprep.mubr.msk.bf16.mxu0 %vm7282_vm0, %v7281_v1 }
  0x6a   : > { %6421 = vmatmul.mubr.msk.bf16.gmra.mrb[44].mxu0 %vm372_vm1, %v7010_v13 }
  0x6b   : > { %6424 = vmatprep.mubr.msk.bf16.mxu0 %vm7282_vm0, %v7281_v1 }
  0x72   : > { %6425 = vmatmul.mubr.msk.bf16.gmra.mrb[48].mxu0 %vm372_vm1, %v7011_v15 }
  0xe5   : > { %v446_v17 = vpop.f32.mrb[0].mxu0 }
  0xe6   : > { %v573_v18 = vmul.f32 0.2, %v446_v17  ;;  %v6378_v19 = vpop.f32.mrb[1].mxu0  ;;  %vm548_vm3 = vcmp.ge.f32.partialorder %v446_v17, 0.0 }
  0xe7   : > { %v449_v20 = vpop.f32.mrb[2].mxu0 }
  0xe8   : > { %vm549_vm4 = vcmp.ge.f32.partialorder %v449_v20, 0.0  ;;  %v574_v21 = vmul.f32 0.2, %v449_v20  ;;  %v6379_v22 = vpop.f32.mrb[3].mxu0  ;;  %v598_v23 = vsel %vm548_vm3, %v446_v17, %v573_v18 }
  0xea   : > { %v599_v24 = vsel %vm549_vm4, %v449_v20, %v574_v21 }
  0xeb   : > { %v7401_v25 = vpack.c.bf16 %v599_v24, %v598_v23 }
  0xed   : > { %v454_v26 = vpop.f32.mrb[4].mxu0  ;;  %694 = vmatpush1.bf16.msra.mxu1 %v7401_v25 }
  0xee   : > { %v575_v27 = vmul.f32 0.2, %v454_v26  ;;  %v6382_v28 = vpop.f32.mrb[5].mxu0  ;;  %695 = vmatprep.subr.bf16.mxu1 %v7283_v14  ;;  %vm550_vm5 = vcmp.ge.f32.partialorder %v454_v26, 0.0 }
  0xef   : > { %v457_v29 = vpop.f32.mrb[6].mxu0 }
  0xf0   : > { %vm551_vm6 = vcmp.ge.f32.partialorder %v457_v29, 0.0  ;;  %v576_v30 = vmul.f32 0.2, %v457_v29  ;;  %v6383_v31 = vpop.f32.mrb[7].mxu0  ;;  %v600_v32 = vsel %vm550_vm5, %v454_v26, %v575_v27 }
  0xf2   : > { %v601_v33 = vsel %vm551_vm6, %v457_v29, %v576_v30 }
  0xf3   : > { %v7405_v34 = vpack.c.bf16 %v601_v33, %v600_v32 }
  0xf5   : > { %v462_v35 = vpop.f32.mrb[8].mxu0  ;;  %696 = vmatpush1.bf16.msra.mxu1 %v7405_v34 }
  0xf6   : > { %v577_v36 = vmul.f32 0.2, %v462_v35  ;;  %v6386_v37 = vpop.f32.mrb[9].mxu0  ;;  %697 = vmatprep.subr.bf16.mxu1 %v7283_v14  ;;  %vm552_vm7 = vcmp.ge.f32.partialorder %v462_v35, 0.0 }
  0xf7   : > { %v465_v38 = vpop.f32.mrb[10].mxu0 }
  0xf8   : > { %vm553_vm8 = vcmp.ge.f32.partialorder %v465_v38, 0.0  ;;  %v578_v39 = vmul.f32 0.2, %v465_v38  ;;  %v6387_v40 = vpop.f32.mrb[11].mxu0  ;;  %v602_v41 = vsel %vm552_vm7, %v462_v35, %v577_v36 }
  0xfa   : > { %v603_v42 = vsel %vm553_vm8, %v465_v38, %v578_v39 }
  0xfb   : > { %v7409_v43 = vpack.c.bf16 %v603_v42, %v602_v41 }
  0xfd   : > { %v470_v44 = vpop.f32.mrb[12].mxu0  ;;  %698 = vmatpush1.bf16.msra.mxu1 %v7409_v43 }
  0xfe   : > { %v579_v45 = vmul.f32 0.2, %v470_v44  ;;  %v6390_v46 = vpop.f32.mrb[13].mxu0  ;;  %699 = vmatprep.subr.bf16.mxu1 %v7283_v14  ;;  %vm554_vm9 = vcmp.ge.f32.partialorder %v470_v44, 0.0 }
  0xff   : > { %v473_v47 = vpop.f32.mrb[14].mxu0 }
 0x100   : > { %vm555_vm10 = vcmp.ge.f32.partialorder %v473_v47, 0.0  ;;  %v580_v48 = vmul.f32 0.2, %v473_v47  ;;  %v6391_v49 = vpop.f32.mrb[15].mxu0  ;;  %v604_v50 = vsel %vm554_vm9, %v470_v44, %v579_v45 }
 0x102   : > { %v605_v51 = vsel %vm555_vm10, %v473_v47, %v580_v48 }
 0x103   : > { %v7413_v52 = vpack.c.bf16 %v605_v51, %v604_v50 }
 0x105   : > { %v478_v53 = vpop.f32.mrb[16].mxu0  ;;  %700 = vmatpush1.bf16.msra.mxu1 %v7413_v52 }
 0x106   : > { %v581_v54 = vmul.f32 0.2, %v478_v53  ;;  %v6394_v55 = vpop.f32.mrb[17].mxu0  ;;  %701 = vmatprep.subr.bf16.mxu1 %v7283_v14  ;;  %vm556_vm11 = vcmp.ge.f32.partialorder %v478_v53, 0.0 }
 0x107   : > { %v481_v56 = vpop.f32.mrb[18].mxu0 }
 0x108   : > { %vm557_vm12 = vcmp.ge.f32.partialorder %v481_v56, 0.0  ;;  %v582_v57 = vmul.f32 0.2, %v481_v56  ;;  %v6395_v58 = vpop.f32.mrb[19].mxu0  ;;  %v606_v59 = vsel %vm556_vm11, %v478_v53, %v581_v54 }
 0x10a   : > { %v607_v60 = vsel %vm557_vm12, %v481_v56, %v582_v57 }
 0x10b   : > { %v7417_v61 = vpack.c.bf16 %v607_v60, %v606_v59 }
 0x10d   : > { %v486_v62 = vpop.f32.mrb[20].mxu0  ;;  %702 = vmatpush1.bf16.msra.mxu1 %v7417_v61 }
 0x10e   : > { %v583_v63 = vmul.f32 0.2, %v486_v62  ;;  %v6398_v0 = vpop.f32.mrb[21].mxu0  ;;  %703 = vmatprep.subr.bf16.mxu1 %v7283_v14  ;;  %vm558_vm13 = vcmp.ge.f32.partialorder %v486_v62, 0.0 }
 0x10f   : > { %v489_v2 = vpop.f32.mrb[22].mxu0 }
 0x110   : > { %vm559_vm14 = vcmp.ge.f32.partialorder %v489_v2, 0.0  ;;  %v584_v3 = vmul.f32 0.2, %v489_v2  ;;  %v6399_v4 = vpop.f32.mrb[23].mxu0  ;;  %v608_v5 = vsel %vm558_vm13, %v486_v62, %v583_v63 }
 0x112   : > { %v609_v6 = vsel %vm559_vm14, %v489_v2, %v584_v3  ;;  %vm689_vm14 = vcmask 1041408  }
 0x113   : > { %v7421_v7 = vpack.c.bf16 %v609_v6, %v608_v5 }
 0x115   : > { %v494_v8 = vpop.f32.mrb[24].mxu0  ;;  %704 = vmatpush1.bf16.msra.mxu1 %v7421_v7 }
 0x116   : > { %v585_v9 = vmul.f32 0.2, %v494_v8  ;;  %v6402_v10 = vpop.f32.mrb[25].mxu0  ;;  %705 = vmatprep.subr.bf16.mxu1 %v7283_v14  ;;  %vm560_vm15 = vcmp.ge.f32.partialorder %v494_v8, 0.0 }
 0x117   : > { %v497_v11 = vpop.f32.mrb[26].mxu0 }
 0x118   : > { %vm561_vm1 = vcmp.ge.f32.partialorder %v497_v11, 0.0  ;;  %v586_v12 = vmul.f32 0.2, %v497_v11  ;;  %v6403_v13 = vpop.f32.mrb[27].mxu0  ;;  %v610_v15 = vsel %vm560_vm15, %v494_v8, %v585_v9  ;;  %vm903_vm15 = vcmask 261120  }
 0x11a   : > { %v611_v16 = vsel %vm561_vm1, %v497_v11, %v586_v12  ;;  %vm4174_vm1 = vcmask 516096  }
 0x11b   : > { %v7425_v17 = vpack.c.bf16 %v611_v16, %v610_v15  ;;  %v7012_v15 = vld [vmem:[%s9027_s2] ss:$8 sps:$4 sm:$0xff]   ;;  %v7015_v16 = vld [vmem:[%s9027_s2 + $0x14] ss:$8 sps:$4 sm:$0xff]  }
 0x11d   : > { %v502_v18 = vpop.f32.mrb[28].mxu0  ;;  %706 = vmatpush1.bf16.msra.mxu1 %v7425_v17 }
 0x11e   : > { %v587_v19 = vmul.f32 0.2, %v502_v18  ;;  %v6406_v20 = vpop.f32.mrb[29].mxu0  ;;  %707 = vmatprep.subr.bf16.mxu1 %v7283_v14  ;;  %vm562_vm3 = vcmp.ge.f32.partialorder %v502_v18, 0.0 }
 0x11f   : > { %v505_v21 = vpop.f32.mrb[30].mxu0  ;;  %v642_v20 = vld [vmem:[%s9027_s2 + $0x30] sm:$0x11] }
 0x120   : > { %vm563_vm4 = vcmp.ge.f32.partialorder %v505_v21, 0.0  ;;  %v588_v22 = vmul.f32 0.2, %v505_v21  ;;  %v6407_v23 = vpop.f32.mrb[31].mxu0  ;;  %v612_v24 = vsel %vm562_vm3, %v502_v18, %v587_v19  ;;  %v7017_v18 = vld [vmem:[%s9027_s2 + $0x10] ss:$8 sps:$4 sm:$0xff]  }
 0x121   : > { %v7018_v19 = vld [vmem:[%s9027_s2 + $0x24] ss:$8 sps:$4 sm:$0xff]   ;;  %v5582_v23 = vcombine.low %v642_v20, %v642_v20 }
 0x122   : > { %v613_v26 = vsel %vm563_vm4, %v505_v21, %v588_v22  ;;  %v7020_v21 = vld [vmem:[%s9027_s2 + $0x20] ss:$8 sps:$4 sm:$0xff]   ;;  %v5583_v22 = vcombine.high %v642_v20, %v642_v20 }
 0x123   : > { %v7429_v27 = vpack.c.bf16 %v613_v26, %v612_v24  ;;  %v7025_v24 = vld [vmem:[%s9027_s2 + $0x3c] ss:$8 sps:$4 sm:$0xff]   ;;  %v7023_v26 = vld [vmem:[%s9027_s2 + $0x38] ss:$8 sps:$4 sm:$0xff]  }
 0x125   : > { %v510_v28 = vpop.f32.mrb[32].mxu0  ;;  %708 = vmatpush1.bf16.msra.mxu1 %v7429_v27 }
 0x126   : > { %v589_v29 = vmul.f32 0.2, %v510_v28  ;;  %v6410_v30 = vpop.f32.mrb[33].mxu0  ;;  %709 = vmatprep.subr.bf16.mxu1 %v7283_v14  ;;  %vm564_vm5 = vcmp.ge.f32.partialorder %v510_v28, 0.0 }
 0x127   : > { %v513_v31 = vpop.f32.mrb[34].mxu0  ;;  %v7029_v30 = vld [vmem:[%s9027_s2 + $0x5c] ss:$8 sps:$4 sm:$0xff]  }
 0x128   : > { %vm565_vm6 = vcmp.ge.f32.partialorder %v513_v31, 0.0  ;;  %v590_v32 = vmul.f32 0.2, %v513_v31  ;;  %v6411_v33 = vpop.f32.mrb[35].mxu0  ;;  %v614_v35 = vsel %vm564_vm5, %v510_v28, %v589_v29  ;;  %v7026_v28 = vld [vmem:[%s9027_s2 + $0x4c] ss:$8 sps:$4 sm:$0xff]  }
 0x129   : > { %v7028_v29 = vld [vmem:[%s9027_s2 + $0x48] ss:$8 sps:$4 sm:$0xff]   ;;  %v7031_v33 = vld [vmem:[%s9027_s2 + $0x58] ss:$8 sps:$4 sm:$0xff]  }
 0x12a   : > { %v615_v36 = vsel %vm565_vm6, %v513_v31, %v590_v32  ;;  %v7051_v31 = vld [vmem:[%s9028_s3 + $0x10] sm:$0xff]   ;;  %v5594_v32 = vld [vmem:[%s9027_s2 + $0x68] sm:$0x11] }
 0x12b   : > { %v7433_v37 = vpack.c.bf16 %v615_v36, %v614_v35  ;;  %6428 = vmatprep.subr.bf16.mxu0 %v7051_v31  ;;  %v5602_v35 = vcombine.high %v5594_v32, %v5594_v32  ;;  %v5601_v36 = vcombine.low %v5594_v32, %v5594_v32 }
 0x12c   : > { %6429 = vmatpush3.bf16.msra.mxu0 %v7051_v31 }
 0x12d   : > { %v518_v38 = vpop.f32.mrb[36].mxu0  ;;  %710 = vmatpush1.bf16.msra.mxu1 %v7433_v37 }
 0x12e   : > { %v591_v39 = vmul.f32 0.2, %v518_v38  ;;  %v6414_v40 = vpop.f32.mrb[37].mxu0  ;;  %711 = vmatprep.subr.bf16.mxu1 %v7283_v14  ;;  %vm566_vm7 = vcmp.ge.f32.partialorder %v518_v38, 0.0 }
 0x12f   : > { %v521_v41 = vpop.f32.mrb[38].mxu0  ;;  %v7037_v40 = vld [vmem:[%s9027_s2 + $0x84] ss:$8 sps:$4 sm:$0xff]  }
 0x130   : > { %vm567_vm8 = vcmp.ge.f32.partialorder %v521_v41, 0.0  ;;  %v592_v42 = vmul.f32 0.2, %v521_v41  ;;  %v6415_v44 = vpop.f32.mrb[39].mxu0  ;;  %v616_v45 = vsel %vm566_vm7, %v518_v38, %v591_v39  ;;  %v7036_v38 = vld [vmem:[%s9027_s2 + $0x74] ss:$8 sps:$4 sm:$0xff]  }
 0x131   : > { %v7034_v39 = vld [vmem:[%s9027_s2 + $0x70] ss:$8 sps:$4 sm:$0xff]  }
 0x132   : > { %v617_v46 = vsel %vm567_vm8, %v521_v41, %v592_v42  ;;  %v7039_v41 = vld [vmem:[%s9027_s2 + $0x80] ss:$8 sps:$4 sm:$0xff]   ;;  %v7040_v42 = vld [vmem:[%s9027_s2 + $0x94] ss:$8 sps:$4 sm:$0xff]  }
 0x133   : > { %v7437_v47 = vpack.c.bf16 %v617_v46, %v616_v45  ;;  %v7063_v44 = vld [vmem:[%s9028_s3 + $0x18] sm:$0xff]   ;;  %v5629_v45 = vld [vmem:[%s9027_s2 + $0xa0] sm:$0x11] }
 0x134   : > { %6430 = vmatprep.subr.bf16.mxu0 %v7063_v44  ;;  %v7042_v46 = vld [vmem:[%s9027_s2 + $0x90] ss:$8 sps:$4 sm:$0xff]  }
 0x135   : > { %v526_v48 = vpop.f32.mrb[40].mxu0  ;;  %712 = vmatpush1.bf16.msra.mxu1 %v7437_v47  ;;  %6431 = vmatpush3.bf16.msra.mxu0 %v7063_v44 }
 0x136   : > { %v593_v49 = vmul.f32 0.2, %v526_v48  ;;  %v6418_v50 = vpop.f32.mrb[41].mxu0  ;;  %713 = vmatprep.subr.bf16.mxu1 %v7283_v14  ;;  %vm568_vm9 = vcmp.ge.f32.partialorder %v526_v48, 0.0 }
 0x137   : > { %v529_v51 = vpop.f32.mrb[42].mxu0  ;;  %v7047_v50 = vld [vmem:[%s9027_s2 + $0xe4] ss:$8 sps:$4 sm:$0xff]  }
 0x138   : > { %vm569_vm10 = vcmp.ge.f32.partialorder %v529_v51, 0.0  ;;  %v594_v53 = vmul.f32 0.2, %v529_v51  ;;  %v6419_v54 = vpop.f32.mrb[43].mxu0  ;;  %v618_v55 = vsel %vm568_vm9, %v526_v48, %v593_v49  ;;  %v5637_v48 = vcombine.high %v5629_v45, %v5629_v45 }
 0x139   : > { %v5636_v49 = vcombine.low %v5629_v45, %v5629_v45  ;;  %v7050_v54 = vld [vmem:[%s9027_s2 + $0xf0] ss:$8 sps:$4 sm:$0xff]   ;;  %v7077_v45 = vld [vmem:[%s9027_s2 + $0x1ac] ss:$8 sps:$4 sm:$0xff]  }
 0x13a   : > { %v619_v56 = vsel %vm569_vm10, %v529_v51, %v594_v53  ;;  %v7045_v51 = vld [vmem:[%s9027_s2 + $0xe0] ss:$8 sps:$4 sm:$0xff]   ;;  %v7048_v53 = vld [vmem:[%s9027_s2 + $0xf4] ss:$8 sps:$4 sm:$0xff]   ;;  %vm4264_vm10 = vcmask 1040384  }
 0x13b   : > { %v7441_v57 = vpack.c.bf16 %v619_v56, %v618_v55  ;;  %v7627_v55 = vld [vmem:[%s9028_s3] sm:$0xff]  }
 0x13c   : > { %v7052_v56 = vld [vmem:[%s9027_s2 + $0x104] ss:$8 sps:$4 sm:$0xff]   ;;  %6440 = vmatprep.subr.bf16.mxu0 %v7627_v55 }
 0x13d   : > { %v534_v58 = vpop.f32.mrb[44].mxu0  ;;  %714 = vmatpush1.bf16.msra.mxu1 %v7441_v57 }
 0x13e   : > { %v595_v59 = vmul.f32 0.2, %v534_v58  ;;  %v6422_v60 = vpop.f32.mrb[45].mxu0  ;;  %715 = vmatprep.subr.bf16.mxu1 %v7283_v14  ;;  %vm570_vm11 = vcmp.ge.f32.partialorder %v534_v58, 0.0 }
 0x13f   : > { %v537_v62 = vpop.f32.mrb[46].mxu0 }
 0x140   : > { %vm571_vm12 = vcmp.ge.f32.partialorder %v537_v62, 0.0  ;;  %v596_v63 = vmul.f32 0.2, %v537_v62  ;;  %v6423_v0 = vpop.f32.mrb[47].mxu0  ;;  %v620_v2 = vsel %vm570_vm11, %v534_v58, %v595_v59  ;;  %v5687_v58 = vld [vmem:[%s9027_s2 + $0x110] sm:$0x11] }
 0x141   : > { %v7054_v59 = vld [vmem:[%s9027_s2 + $0x100] ss:$8 sps:$4 sm:$0xff]   ;;  %v5695_v60 = vcombine.high %v5687_v58, %v5687_v58  ;;  %vm4260_vm11 = vcmask 400384  }
 0x142   : > { %v621_v3 = vsel %vm571_vm12, %v537_v62, %v596_v63  ;;  %v5694_v62 = vcombine.low %v5687_v58, %v5687_v58  ;;  %v7059_v63 = vld [vmem:[%s9027_s2 + $0x11c] ss:$8 sps:$4 sm:$0xff]   ;;  %v7057_v0 = vld [vmem:[%s9027_s2 + $0x118] ss:$8 sps:$4 sm:$0xff]  }
 0x143   : > { %v7445_v4 = vpack.c.bf16 %v621_v3, %v620_v2  ;;  %v7060_v2 = vld [vmem:[%s9027_s2 + $0x12c] ss:$8 sps:$4 sm:$0xff]  }
 0x145   : > { %v542_v5 = vpop.f32.mrb[48].mxu0  ;;  %716 = vmatpush1.bf16.msra.mxu1 %v7445_v4 }
 0x146   : > { %vm572_vm13 = vcmp.ge.f32.partialorder %v542_v5, 0.0  ;;  %v597_v6 = vmul.f32 0.2, %v542_v5  ;;  %v6426_v8 = vpop.f32.mrb[49].mxu0  ;;  %717 = vmatprep.subr.bf16.mxu1 %v7283_v14 }
 0x147   : > { %v545_v9 = vpop.f32.mrb[50].mxu0 }
 0x148   : > { %v622_v10 = vsel %vm572_vm13, %v542_v5, %v597_v6  ;;  %v6427_v11 = vpop.f32.mrb[51].mxu0  ;;  %v7062_v6 = vld [vmem:[%s9027_s2 + $0x128] ss:$8 sps:$4 sm:$0xff]   ;;  %v7064_v9 = vld [vmem:[%s9027_s2 + $0x13c] ss:$8 sps:$4 sm:$0xff]   ;;  %vm5494_vm13 = vcmask 0  }
 0x149   : > { %v635_v12 = vpack.c.bf16 %v622_v10, %v622_v10 }
 0x14b   : > { %v7449_v13 = vsel %vm689_vm14, %v635_v12, 0  ;;  %v5716_v12 = vld [vmem:[%s9027_s2 + $0x148] sm:$0x11] }
 0x14c   : > { %718 = vmatpush1.bf16.msra.mxu1 %v7449_v13  ;;  %v5724_v20 = vcombine.high %v5716_v12, %v5716_v12 }
 0x14d   : > { %818 = vmatprep.subr.bf16.mxu1 %v7283_v14 }
 0x14f   : > { %726 = vmatmul.mubr.bf16.vlgmr.msra.gmra.mrb[0].mxu1 %v7012_v15 }
 0x150   : > { %819 = vmatpush1.bf16.msra.mxu1 %v7401_v25  ;;  %5585 = vmatprep.mubr.msk.bf16.mxu1 %vm676_vm2, %v7015_v16 }
 0x151   : > { %820 = vmatprep.subr.bf16.mxu1 %v7283_v14 }
 0x154   : > { %821 = vmatpush1.bf16.msra.mxu1 %v7405_v34 }
 0x155   : > { %822 = vmatprep.subr.bf16.mxu1 %v7283_v14 }
 0x157   : > { %734 = vmatmul.mubr.bf16.gmra.mrb[4].mxu1 %v7017_v18  ;;  %v7066_v18 = vld [vmem:[%s9027_s2 + $0x138] ss:$8 sps:$4 sm:$0xff]  }
 0x158   : > { %823 = vmatpush1.bf16.msra.mxu1 %v7409_v43  ;;  %5586 = vmatprep.mubr.msk.bf16.mxu1 %vm676_vm2, %v7018_v19 }
 0x159   : > { %824 = vmatprep.subr.bf16.mxu1 %v7283_v14 }
 0x15c   : > { %825 = vmatpush1.bf16.msra.mxu1 %v7413_v52 }
 0x15d   : > { %826 = vmatprep.subr.bf16.mxu1 %v7283_v14 }
 0x15f   : > { %742 = vmatmul.mubr.bf16.gmra.mrb[8].mxu1 %v7020_v21 }
 0x160   : > { %827 = vmatpush1.bf16.msra.mxu1 %v7417_v61  ;;  %5587 = vmatprep.mubr.msk.bf16.mxu1 %vm676_vm2, %v5583_v22 }
 0x161   : > { %828 = vmatprep.subr.bf16.mxu1 %v7283_v14 }
 0x164   : > { %829 = vmatpush1.bf16.msra.mxu1 %v7421_v7 }
 0x165   : > { %830 = vmatprep.subr.bf16.mxu1 %v7283_v14 }
 0x167   : > { %750 = vmatmul.mubr.bf16.gmra.mrb[12].mxu1 %v5582_v23 }
 0x168   : > { %831 = vmatpush1.bf16.msra.mxu1 %v7425_v17  ;;  %5603 = vmatprep.mubr.msk.bf16.mxu1 %vm676_vm2, %v7025_v24 }
 0x169   : > { %832 = vmatprep.subr.bf16.mxu1 %v7283_v14 }
 0x16c   : > { %833 = vmatpush1.bf16.msra.mxu1 %v7429_v27 }
 0x16d   : > { %834 = vmatprep.subr.bf16.mxu1 %v7283_v14 }
 0x170   : > { %835 = vmatpush1.bf16.msra.mxu1 %v7433_v37 }
 0x171   : > { %836 = vmatprep.subr.bf16.mxu1 %v7283_v14 }
 0x174   : > { %837 = vmatpush1.bf16.msra.mxu1 %v7437_v47 }
 0x175   : > { %838 = vmatprep.subr.bf16.mxu1 %v7283_v14 }
 0x178   : > { %839 = vmatpush1.bf16.msra.mxu1 %v7441_v57 }
 0x179   : > { %840 = vmatprep.subr.bf16.mxu1 %v7283_v14 }
 0x17c   : > { %841 = vmatpush1.bf16.msra.mxu1 %v7445_v4 }
 0x17d   : > { %842 = vmatprep.subr.bf16.mxu1 %v7283_v14 }
 0x180   : > { %843 = vmatpush1.bf16.msra.mxu1 %v7449_v13 }
 0x181   : > { %1121 = vmatprep.subr.bf16.mxu1 %v7283_v14 }
 0x183   : > { %851 = vmatmul.mubr.bf16.vlgmr.msra.gmra.mrb[16].mxu1 %v7023_v26  ;;  %v5723_v26 = vcombine.low %v5716_v12, %v5716_v12 }
 0x184   : > { %1122 = vmatpush1.bf16.msra.mxu1 %v7401_v25  ;;  %5604 = vmatprep.mubr.msk.bf16.mxu1 %vm676_vm2, %v7026_v28 }
 0x185   : > { %1123 = vmatprep.subr.bf16.mxu1 %v7283_v14 }
 0x188   : > { %1124 = vmatpush1.bf16.msra.mxu1 %v7405_v34 }
 0x189   : > { %1125 = vmatprep.subr.bf16.mxu1 %v7283_v14 }
 0x18b   : > { %859 = vmatmul.mubr.bf16.gmra.mrb[20].mxu1 %v7028_v29  ;;  %v7071_v29 = vld [vmem:[%s9027_s2 + $0x18c] ss:$8 sps:$4 sm:$0xff]  }
 0x18c   : > { %1126 = vmatpush1.bf16.msra.mxu1 %v7409_v43  ;;  %5605 = vmatprep.mubr.msk.bf16.mxu1 %vm676_vm2, %v7029_v30 }
 0x18d   : > { %1127 = vmatprep.subr.bf16.mxu1 %v7283_v14 }
 0x190   : > { %1128 = vmatpush1.bf16.msra.mxu1 %v7413_v52 }
 0x191   : > { %1129 = vmatprep.subr.bf16.mxu1 %v7283_v14 }
 0x193   : > { %867 = vmatmul.mubr.bf16.gmra.mrb[24].mxu1 %v7031_v33 }
 0x194   : > { %1130 = vmatpush1.bf16.msra.mxu1 %v7417_v61  ;;  %5606 = vmatprep.mubr.msk.bf16.mxu1 %vm676_vm2, %v5602_v35 }
 0x195   : > { %1131 = vmatprep.subr.bf16.mxu1 %v7283_v14 }
 0x198   : > { %1132 = vmatpush1.bf16.msra.mxu1 %v7421_v7 }
 0x199   : > { %1133 = vmatprep.subr.bf16.mxu1 %v7283_v14 }
 0x19b   : > { %875 = vmatmul.mubr.bf16.gmra.mrb[28].mxu1 %v5601_v36 }
 0x19c   : > { %1134 = vmatpush1.bf16.msra.mxu1 %v7425_v17  ;;  %5638 = vmatprep.mubr.msk.bf16.mxu1 %vm676_vm2, %v7036_v38  ;;  %v7069_v38 = vld [vmem:[%s9027_s2 + $0x188] ss:$8 sps:$4 sm:$0xff]  }
 0x19d   : > { %1135 = vmatprep.subr.bf16.mxu1 %v7283_v14 }
 0x1a0   : > { %1136 = vmatpush1.bf16.msra.mxu1 %v7429_v27 }
 0x1a1   : > { %1137 = vmatprep.subr.bf16.mxu1 %v7283_v14 }
 0x1a4   : > { %1138 = vmatpush1.bf16.msra.mxu1 %v7433_v37 }
 0x1a5   : > { %1139 = vmatprep.subr.bf16.mxu1 %v7283_v14 }
 0x1a8   : > { %1140 = vmatpush1.bf16.msra.mxu1 %v7437_v47 }
 0x1a9   : > { %1141 = vmatprep.subr.bf16.mxu1 %v7283_v14 }
 0x1ac   : > { %1142 = vmatpush1.bf16.msra.mxu1 %v7441_v57 }
 0x1ad   : > { %1143 = vmatprep.subr.bf16.mxu1 %v7283_v14 }
 0x1b0   : > { %1144 = vmatpush1.bf16.msra.mxu1 %v7445_v4 }
 0x1b1   : > { %1145 = vmatprep.subr.bf16.mxu1 %v7283_v14 }
 0x1b4   : > { %1146 = vmatpush1.bf16.msra.mxu1 %v7449_v13 }
 0x1b5   : > { %1563 = vmatprep.subr.bf16.mxu1 %v7283_v14 }
 0x1b7   : > { %1154 = vmatmul.mubr.bf16.vlgmr.msra.gmra.mrb[32].mxu1 %v7034_v39  ;;  %v7072_v39 = vld [vmem:[%s9027_s2 + $0x19c] ss:$8 sps:$4 sm:$0xff]  }
 0x1b8   : > { %1564 = vmatpush1.bf16.msra.mxu1 %v7401_v25  ;;  %5639 = vmatprep.mubr.msk.bf16.mxu1 %vm676_vm2, %v7037_v40 }
 0x1b9   : > { %1565 = vmatprep.subr.bf16.mxu1 %v7283_v14 }
 0x1bc   : > { %1566 = vmatpush1.bf16.msra.mxu1 %v7405_v34 }
 0x1bd   : > { %1567 = vmatprep.subr.bf16.mxu1 %v7283_v14 }
 0x1bf   : > { %1162 = vmatmul.mubr.bf16.gmra.mrb[36].mxu1 %v7039_v41 }
 0x1c0   : > { %1568 = vmatpush1.bf16.msra.mxu1 %v7409_v43  ;;  %5640 = vmatprep.mubr.msk.bf16.mxu1 %vm676_vm2, %v7040_v42  ;;  %v7074_v42 = vld [vmem:[%s9027_s2 + $0x198] ss:$8 sps:$4 sm:$0xff]  }
 0x1c1   : > { %1569 = vmatprep.subr.bf16.mxu1 %v7283_v14 }
 0x1c4   : > { %1570 = vmatpush1.bf16.msra.mxu1 %v7413_v52 }
 0x1c5   : > { %1571 = vmatprep.subr.bf16.mxu1 %v7283_v14 }
 0x1c7   : > { %1170 = vmatmul.mubr.bf16.gmra.mrb[40].mxu1 %v7042_v46 }
 0x1c8   : > { %1572 = vmatpush1.bf16.msra.mxu1 %v7417_v61  ;;  %5641 = vmatprep.mubr.msk.bf16.mxu1 %vm676_vm2, %v5637_v48 }
 0x1c9   : > { %1573 = vmatprep.subr.bf16.mxu1 %v7283_v14 }
 0x1cc   : > { %1574 = vmatpush1.bf16.msra.mxu1 %v7421_v7 }
 0x1cd   : > { %1575 = vmatprep.subr.bf16.mxu1 %v7283_v14 }
 0x1cf   : > { %1178 = vmatmul.mubr.bf16.gmra.mrb[44].mxu1 %v5636_v49 }
 0x1d0   : > { %1576 = vmatpush1.bf16.msra.mxu1 %v7425_v17  ;;  %5696 = vmatprep.mubr.msk.bf16.mxu1 %vm676_vm2, %v7047_v50 }
 0x1d1   : > { %1577 = vmatprep.subr.bf16.mxu1 %v7283_v14 }
 0x1d4   : > { %1578 = vmatpush1.bf16.msra.mxu1 %v7429_v27 }
 0x1d5   : > { %1579 = vmatprep.subr.bf16.mxu1 %v7283_v14 }
 0x1d8   : > { %1580 = vmatpush1.bf16.msra.mxu1 %v7433_v37 }
 0x1d9   : > { %1581 = vmatprep.subr.bf16.mxu1 %v7283_v14 }
 0x1dc   : > { %1582 = vmatpush1.bf16.msra.mxu1 %v7437_v47 }
 0x1dd   : > { %1583 = vmatprep.subr.bf16.mxu1 %v7283_v14 }
 0x1e0   : > { %1584 = vmatpush1.bf16.msra.mxu1 %v7441_v57 }
 0x1e1   : > { %1585 = vmatprep.subr.bf16.mxu1 %v7283_v14 }
 0x1e4   : > { %1586 = vmatpush1.bf16.msra.mxu1 %v7445_v4 }
 0x1e5   : > { %1587 = vmatprep.subr.bf16.mxu1 %v7283_v14 }
 0x1e8   : > { %1588 = vmatpush1.bf16.msra.mxu1 %v7449_v13 }
 0x1e9   : > { %1784 = vmatprep.subr.bf16.mxu1 %v7283_v14 }
 0x1eb   : > { %1596 = vmatmul.mubr.bf16.vlgmr.msra.gmra.mrb[48].mxu1 %v7045_v51  ;;  %v7079_v51 = vld [vmem:[%s9027_s2 + $0x1a8] ss:$8 sps:$4 sm:$0xff]  }
 0x1ec   : > { %1785 = vmatpush1.bf16.msra.mxu1 %v7401_v25  ;;  %5697 = vmatprep.mubr.msk.bf16.mxu1 %vm676_vm2, %v7048_v53  ;;  %v5774_v53 = vld [vmem:[%s9027_s2 + $0x1b8] sm:$0x11] }
 0x1ed   : > { %1786 = vmatprep.subr.bf16.mxu1 %v7283_v14 }
 0x1f0   : > { %1787 = vmatpush1.bf16.msra.mxu1 %v7405_v34 }
 0x1f1   : > { %1788 = vmatprep.subr.bf16.mxu1 %v7283_v14 }
 0x1f3   : > { %1604 = vmatmul.mubr.bf16.gmra.mrb[52].mxu1 %v7050_v54 }
 0x1f4   : > { %1789 = vmatpush1.bf16.msra.mxu1 %v7409_v43  ;;  %5698 = vmatprep.mubr.msk.bf16.mxu1 %vm676_vm2, %v7052_v56 }
 0x1f5   : > { %1790 = vmatprep.subr.bf16.mxu1 %v7283_v14 }
 0x1f8   : > { %1791 = vmatpush1.bf16.msra.mxu1 %v7413_v52 }
 0x1f9   : > { %1792 = vmatprep.subr.bf16.mxu1 %v7283_v14 }
 0x1fb   : > { %1612 = vmatmul.mubr.bf16.gmra.mrb[56].mxu1 %v7054_v59  ;;  %v7076_v59 = vld [vmem:[%s9028_s3 + $0x8] sm:$0xff]  }
 0x1fc   : > { %1793 = vmatpush1.bf16.msra.mxu1 %v7417_v61  ;;  %5699 = vmatprep.mubr.msk.bf16.mxu1 %vm676_vm2, %v5695_v60  ;;  %v5782_v60 = vcombine.high %v5774_v53, %v5774_v53 }
 0x1fd   : > { %1794 = vmatprep.subr.bf16.mxu1 %v7283_v14 }
 0x200   : > { %1795 = vmatpush1.bf16.msra.mxu1 %v7421_v7 }
 0x201   : > { %1796 = vmatprep.subr.bf16.mxu1 %v7283_v14 }
 0x203   : > { %1620 = vmatmul.mubr.bf16.gmra.mrb[60].mxu1 %v5694_v62  ;;  %v7082_v62 = vld [vmem:[%s9028_s3 + $0x20] sm:$0xff]  }
 0x204   : > { %1797 = vmatpush1.bf16.msra.mxu1 %v7425_v17  ;;  %5725 = vmatprep.mubr.msk.bf16.mxu1 %vm676_vm2, %v7059_v63 }
 0x205   : > { %1798 = vmatprep.subr.bf16.mxu1 %v7283_v14 }
 0x208   : > { %1799 = vmatpush1.bf16.msra.mxu1 %v7429_v27 }
 0x209   : > { %1800 = vmatprep.subr.bf16.mxu1 %v7283_v14 }
 0x20c   : > { %1801 = vmatpush1.bf16.msra.mxu1 %v7433_v37 }
 0x20d   : > { %1802 = vmatprep.subr.bf16.mxu1 %v7283_v14 }
 0x210   : > { %1803 = vmatpush1.bf16.msra.mxu1 %v7437_v47 }
 0x211   : > { %1804 = vmatprep.subr.bf16.mxu1 %v7283_v14 }
 0x214   : > { %1805 = vmatpush1.bf16.msra.mxu1 %v7441_v57 }
 0x215   : > { %1806 = vmatprep.subr.bf16.mxu1 %v7283_v14 }
 0x218   : > { %1807 = vmatpush1.bf16.msra.mxu1 %v7445_v4 }
 0x219   : > { %1808 = vmatprep.subr.bf16.mxu1 %v7283_v14 }
 0x21c   : > { %1809 = vmatpush1.bf16.msra.mxu1 %v7449_v13 }
 0x21d   : > { %2226 = vmatprep.subr.bf16.mxu1 %v7283_v14 }
 0x21f   : > { %1817 = vmatmul.mubr.bf16.vlgmr.msra.gmra.mrb[64].mxu1 %v7057_v0 }
 0x220   : > { %2227 = vmatpush1.bf16.msra.mxu1 %v7401_v25  ;;  %5726 = vmatprep.mubr.msk.bf16.mxu1 %vm676_vm2, %v7060_v2  ;;  %v5781_v2 = vcombine.low %v5774_v53, %v5774_v53 }
 0x221   : > { %2228 = vmatprep.subr.bf16.mxu1 %v7283_v14 }
 0x222   : > { %v7678_v3 = vpop.f32.mrb[0].mxu1 }
 0x223   : > { %v729_v5 = vpop.f32.mrb[1].mxu1 }
 0x224   : > { %v7683_v8 = vpop.f32.mrb[2].mxu1  ;;  %2229 = vmatpush1.bf16.msra.mxu1 %v7405_v34 }
 0x225   : > { %v757_v10 = vpack.c.bf16 %v7683_v8, %v7678_v3  ;;  %v732_v11 = vpop.f32.mrb[3].mxu1  ;;  %2230 = vmatprep.subr.bf16.mxu1 %v7283_v14  ;;  %v7083_v8 = vld [vmem:[%s9027_s2 + $0x1c0] ss:$8 sps:$4 sm:$0xff]  }
 0x227   : > { %1825 = vmatmul.mubr.bf16.gmra.mrb[68].mxu1 %v7062_v6 }
 0x228   : > { %2231 = vmatpush1.bf16.msra.mxu1 %v7409_v43  ;;  %5727 = vmatprep.mubr.msk.bf16.mxu1 %vm676_vm2, %v7064_v9 }
 0x229   : > { %2232 = vmatprep.subr.bf16.mxu1 %v7283_v14 }
 0x22a   : > { %v7698_v15 = vpop.f32.mrb[4].mxu1 }
 0x22b   : > { %v737_v16 = vpop.f32.mrb[5].mxu1 }
 0x22c   : > { %2233 = vmatpush1.bf16.msra.mxu1 %v7413_v52  ;;  %v7704_v19 = vpop.f32.mrb[6].mxu1 }
 0x22d   : > { %2234 = vmatprep.subr.bf16.mxu1 %v7283_v14  ;;  %v758_v21 = vpack.c.bf16 %v7704_v19, %v7698_v15  ;;  %v740_v22 = vpop.f32.mrb[7].mxu1 }
 0x22e   : > { %v7086_v22 = vld [vmem:[%s9028_s3 + $0x28] sm:$0xff]  }
 0x22f   : > { %1833 = vmatmul.mubr.bf16.gmra.mrb[72].mxu1 %v7066_v18 }
 0x230   : > { %2235 = vmatpush1.bf16.msra.mxu1 %v7417_v61  ;;  %5728 = vmatprep.mubr.msk.bf16.mxu1 %vm676_vm2, %v5724_v20 }
 0x231   : > { %2236 = vmatprep.subr.bf16.mxu1 %v7283_v14 }
 0x232   : > { %v7712_v23 = vpop.f32.mrb[8].mxu1 }
 0x233   : > { %v745_v24 = vpop.f32.mrb[9].mxu1 }
 0x234   : > { %2237 = vmatpush1.bf16.msra.mxu1 %v7421_v7  ;;  %v7715_v28 = vpop.f32.mrb[10].mxu1  ;;  %v7090_v24 = vld [vmem:[%s9027_s2 + $0x1e4] ss:$8 sps:$4 sm:$0xff]  }
 0x235   : > { %2238 = vmatprep.subr.bf16.mxu1 %v7283_v14  ;;  %v759_v30 = vpack.c.bf16 %v7715_v28, %v7712_v23  ;;  %v748_v31 = vpop.f32.mrb[11].mxu1 }
 0x236   : > { %v7092_v31 = vld [vmem:[%s9027_s2 + $0x1e0] ss:$8 sps:$4 sm:$0xff]  }
 0x237   : > { %1841 = vmatmul.mubr.bf16.gmra.mrb[76].mxu1 %v5723_v26 }
 0x238   : > { %2239 = vmatpush1.bf16.msra.mxu1 %v7425_v17  ;;  %5783 = vmatprep.mubr.msk.bf16.mxu1 %vm676_vm2, %v7071_v29 }
 0x239   : > { %2240 = vmatprep.subr.bf16.mxu1 %v7283_v14 }
 0x23a   : > { %v7726_v32 = vpop.f32.mrb[12].mxu1 }
 0x23b   : > { %v753_v33 = vpop.f32.mrb[13].mxu1  ;;  %v760_v3 = vpack.c.bf16 %v7726_v32, %v7726_v32  ;;  %v5803_v32 = vld [vmem:[%s9027_s2 + $0x1f0] sm:$0x11] }
 0x23c   : > { %2241 = vmatpush1.bf16.msra.mxu1 %v7429_v27  ;;  %v754_v35 = vpop.f32.mrb[14].mxu1 }
 0x23d   : > { %2242 = vmatprep.subr.bf16.mxu1 %v7283_v14  ;;  %v755_v36 = vpop.f32.mrb[15].mxu1 }
 0x240   : > { %2243 = vmatpush1.bf16.msra.mxu1 %v7433_v37 }
 0x241   : > { %2244 = vmatprep.subr.bf16.mxu1 %v7283_v14 }
 0x244   : > { %2245 = vmatpush1.bf16.msra.mxu1 %v7437_v47 }
 0x245   : > { %2246 = vmatprep.subr.bf16.mxu1 %v7283_v14 }
 0x248   : > { %2247 = vmatpush1.bf16.msra.mxu1 %v7441_v57 }
 0x249   : > { %2248 = vmatprep.subr.bf16.mxu1 %v7283_v14 }
 0x24c   : > { %2249 = vmatpush1.bf16.msra.mxu1 %v7445_v4 }
 0x24d   : > { %2250 = vmatprep.subr.bf16.mxu1 %v7283_v14 }
 0x250   : > { %2251 = vmatpush1.bf16.msra.mxu1 %v7449_v13 }
 0x251   : > { %2447 = vmatprep.subr.bf16.mxu1 %v7283_v14 }
 0x253   : > { %2259 = vmatmul.mubr.bf16.vlgmr.msra.gmra.mrb[80].mxu1 %v7069_v38  ;;  %v5811_v38 = vcombine.high %v5803_v32, %v5803_v32 }
 0x254   : > { %2448 = vmatpush1.bf16.msra.mxu1 %v7401_v25  ;;  %5784 = vmatprep.mubr.msk.bf16.mxu1 %vm676_vm2, %v7072_v39 }
 0x255   : > { %2449 = vmatprep.subr.bf16.mxu1 %v7283_v14 }
 0x256   : > { %v852_v40 = vpop.f32.mrb[16].mxu1 }
 0x257   : > { %v854_v41 = vpop.f32.mrb[17].mxu1 }
 0x258   : > { %v855_v44 = vpop.f32.mrb[18].mxu1  ;;  %2450 = vmatpush1.bf16.msra.mxu1 %v7405_v34 }
 0x259   : > { %v882_v46 = vpack.c.bf16 %v855_v44, %v852_v40  ;;  %v857_v48 = vpop.f32.mrb[19].mxu1  ;;  %2451 = vmatprep.subr.bf16.mxu1 %v7283_v14  ;;  %v5810_v40 = vcombine.low %v5803_v32, %v5803_v32 }
 0x25b   : > { %6432 = vmatprep.mubr.msk.bf16.mxu0 %vm903_vm15, %v882_v46  ;;  %2267 = vmatmul.mubr.bf16.gmra.mrb[84].mxu1 %v7074_v42  ;;  %v7097_v46 = vld [vmem:[%s9027_s2 + $0x1fc] ss:$8 sps:$4 sm:$0xff]  }
 0x25c   : > { %2452 = vmatpush1.bf16.msra.mxu1 %v7409_v43  ;;  %5785 = vmatprep.mubr.msk.bf16.mxu1 %vm676_vm2, %v7077_v45 }
 0x25d   : > { %2453 = vmatprep.subr.bf16.mxu1 %v7283_v14 }
 0x25e   : > { %v860_v49 = vpop.f32.mrb[20].mxu1 }
 0x25f   : > { %v862_v50 = vpop.f32.mrb[21].mxu1 }
 0x260   : > { %2454 = vmatpush1.bf16.msra.mxu1 %v7413_v52  ;;  %v863_v54 = vpop.f32.mrb[22].mxu1 }
 0x261   : > { %2455 = vmatprep.subr.bf16.mxu1 %v7283_v14  ;;  %v883_v56 = vpack.c.bf16 %v863_v54, %v860_v49  ;;  %v865_v58 = vpop.f32.mrb[23].mxu1 }
 0x262   : > { %v7104_v58 = vld [vmem:[%s9027_s2 + $0x20c] ss:$8 sps:$4 sm:$0xff]  }
 0x263   : > { %6433 = vmatmul.mubr.msk.bf16.vlgmr.msra.gmra.mrb[52].mxu0 %vm903_vm15, %v883_v56  ;;  %2275 = vmatmul.mubr.bf16.gmra.mrb[88].mxu1 %v7079_v51  ;;  %v7100_v51 = vld [vmem:[%s9027_s2 + $0xac] ss:$8 sps:$4 sm:$0xff]   ;;  %v7095_v56 = vld [vmem:[%s9027_s2 + $0x1f8] ss:$8 sps:$4 sm:$0xff]  }
 0x264   : > { %2456 = vmatpush1.bf16.msra.mxu1 %v7417_v61  ;;  %6441 = vmatpush3.bf16.msra.mxu0 %v7627_v55  ;;  %v7085_v55 = vld [vmem:[%s9027_s2 + $0x1c4] ss:$8 sps:$4 sm:$0xff]  }
 0x265   : > { %2457 = vmatprep.subr.bf16.mxu1 %v7283_v14  ;;  %6442 = vmatprep.subr.bf16.mxu0 %v7076_v59 }
 0x266   : > { %v868_v63 = vpop.f32.mrb[24].mxu1  ;;  %5786 = vmatprep.mubr.msk.bf16.mxu1 %vm676_vm2, %v5782_v60  ;;  %v7110_v60 = vld [vmem:[%s9027_s2 + $0x21c] ss:$8 sps:$4 sm:$0xff]  }
 0x267   : > { %v870_v0 = vpop.f32.mrb[25].mxu1 }
 0x268   : > { %2458 = vmatpush1.bf16.msra.mxu1 %v7421_v7  ;;  %v871_v5 = vpop.f32.mrb[26].mxu1  ;;  %6443 = vmatpush3.bf16.msra.mxu0 %v7076_v59  ;;  %v7106_v59 = vld [vmem:[%s9027_s2 + $0x208] ss:$8 sps:$4 sm:$0xff]   ;;  %v7112_v0 = vld [vmem:[%s9027_s2 + $0x218] ss:$8 sps:$4 sm:$0xff]  }
 0x269   : > { %2459 = vmatprep.subr.bf16.mxu1 %v7283_v14  ;;  %v884_v6 = vpack.c.bf16 %v871_v5, %v868_v63  ;;  %v873_v9 = vpop.f32.mrb[27].mxu1  ;;  %6452 = vmatprep.subr.bf16.mxu0 %v7082_v62  ;;  %v7098_v63 = vld [vmem:[%s9027_s2 + $0xa8] ss:$8 sps:$4 sm:$0xff]  }
 0x26a   : > { %v7107_v9 = vld [vmem:[%s9027_s2 + $0xcc] ss:$8 sps:$4 sm:$0xff]  }
 0x26b   : > { %6436 = vmatprep.mubr.msk.bf16.mxu0 %vm903_vm15, %v884_v6  ;;  %2283 = vmatmul.mubr.bf16.gmra.mrb[92].mxu1 %v5781_v2  ;;  %v7101_v2 = vld [vmem:[%s9027_s2 + $0xbc] ss:$8 sps:$4 sm:$0xff]  }
 0x26c   : > { %2460 = vmatpush1.bf16.msra.mxu1 %v7425_v17  ;;  %5812 = vmatprep.mubr.msk.bf16.mxu1 %vm676_vm2, %v7085_v55  ;;  %v7103_v55 = vld [vmem:[%s9027_s2 + $0xb8] ss:$8 sps:$4 sm:$0xff]  }
 0x26d   : > { %2461 = vmatprep.subr.bf16.mxu1 %v7283_v14 }
 0x26e   : > { %v876_v11 = vpop.f32.mrb[28].mxu1 }
 0x26f   : > { %v885_v12 = vpack.c.bf16 %v876_v11, %v876_v11  ;;  %v878_v16 = vpop.f32.mrb[29].mxu1  ;;  %v7119_v11 = vld [vmem:[%s9027_s2 + $0x26c] ss:$8 sps:$4 sm:$0xff]  }
 0x270   : > { %2462 = vmatpush1.bf16.msra.mxu1 %v7429_v27  ;;  %v879_v18 = vpop.f32.mrb[30].mxu1  ;;  %v7109_v16 = vld [vmem:[%s9027_s2 + $0xc8] ss:$8 sps:$4 sm:$0xff]  }
 0x271   : > { %6437 = vmatmul.mubr.msk.bf16.gmra.mrb[56].mxu0 %vm903_vm15, %v885_v12  ;;  %2463 = vmatprep.subr.bf16.mxu1 %v7283_v14  ;;  %v880_v20 = vpop.f32.mrb[31].mxu1  ;;  %v5658_v12 = vld [vmem:[%s9027_s2 + $0xd8] sm:$0x11] }
 0x272   : > { %6444 = vmatprep.mubr.msk.bf16.mxu0 %vm903_vm15, %v757_v10  ;;  %v7087_v10 = vld [vmem:[%s9027_s2 + $0x1d4] ss:$8 sps:$4 sm:$0xff]   ;;  %v5666_v18 = vcombine.high %v5658_v12, %v5658_v12  ;;  %v5665_v20 = vcombine.low %v5658_v12, %v5658_v12 }
 0x274   : > { %2464 = vmatpush1.bf16.msra.mxu1 %v7433_v37 }
 0x275   : > { %2465 = vmatprep.subr.bf16.mxu1 %v7283_v14 }
 0x278   : > { %2466 = vmatpush1.bf16.msra.mxu1 %v7437_v47 }
 0x279   : > { %6445 = vmatmul.mubr.msk.bf16.vlgmr.msra.gmra.mrb[52].mxu0 %vm903_vm15, %v758_v21  ;;  %2467 = vmatprep.subr.bf16.mxu1 %v7283_v14  ;;  %v7089_v21 = vld [vmem:[%s9027_s2 + $0x1d0] ss:$8 sps:$4 sm:$0xff]  }
 0x27a   : > { %6448 = vmatprep.mubr.msk.bf16.mxu0 %vm903_vm15, %v759_v30  ;;  %6453 = vmatpush3.bf16.msra.mxu0 %v7082_v62  ;;  %v5832_v62 = vld [vmem:[%s9027_s2 + $0x228] sm:$0x11] }
 0x27b   : > { %6454 = vmatprep.subr.bf16.mxu0 %v7086_v22  ;;  %v5840_v5 = vcombine.high %v5832_v62, %v5832_v62  ;;  %v5839_v6 = vcombine.low %v5832_v62, %v5832_v62 }
 0x27c   : > { %2468 = vmatpush1.bf16.msra.mxu1 %v7441_v57 }
 0x27d   : > { %2469 = vmatprep.subr.bf16.mxu1 %v7283_v14 }
 0x27e   : > { %6455 = vmatpush3.bf16.msra.mxu0 %v7086_v22  ;;  %v7117_v22 = vld [vmem:[%s9027_s2 + $0x268] ss:$8 sps:$4 sm:$0xff]  }
 0x27f   : > { %1342 = vmatprep.subr.bf16.mxu0 %v7283_v14 }
 0x280   : > { %2470 = vmatpush1.bf16.msra.mxu1 %v7445_v4 }
 0x281   : > { %6449 = vmatmul.mubr.msk.bf16.gmra.mrb[56].mxu0 %vm903_vm15, %v760_v3  ;;  %2471 = vmatprep.subr.bf16.mxu1 %v7283_v14  ;;  %v7120_v3 = vld [vmem:[%s9027_s2 + $0x27c] ss:$8 sps:$4 sm:$0xff]  }
 0x284   : > { %2472 = vmatpush1.bf16.msra.mxu1 %v7449_v13 }
 0x285   : > { %2668 = vmatprep.subr.bf16.mxu1 %v7283_v14 }
 0x287   : > { %2480 = vmatmul.mubr.bf16.vlgmr.msra.gmra.mrb[96].mxu1 %v7083_v8  ;;  %v7122_v8 = vld [vmem:[%s9027_s2 + $0x278] ss:$8 sps:$4 sm:$0xff]  }
 0x288   : > { %2669 = vmatpush1.bf16.msra.mxu1 %v7401_v25  ;;  %5813 = vmatprep.mubr.msk.bf16.mxu1 %vm676_vm2, %v7087_v10  ;;  %v7123_v10 = vld [vmem:[%s9027_s2 + $0x28c] ss:$8 sps:$4 sm:$0xff]  }
 0x289   : > { %2670 = vmatprep.subr.bf16.mxu1 %v7283_v14 }
 0x28a   : > { %v1155_v15 = vpop.f32.mrb[32].mxu1 }
 0x28b   : > { %v1157_v19 = vpop.f32.mrb[33].mxu1 }
 0x28c   : > { %v1158_v23 = vpop.f32.mrb[34].mxu1  ;;  %2671 = vmatpush1.bf16.msra.mxu1 %v7405_v34  ;;  %v7125_v19 = vld [vmem:[%s9027_s2 + $0x288] ss:$8 sps:$4 sm:$0xff]  }
 0x28d   : > { %v1185_v26 = vpack.c.bf16 %v1158_v23, %v1155_v15  ;;  %v1160_v28 = vpop.f32.mrb[35].mxu1  ;;  %2672 = vmatprep.subr.bf16.mxu1 %v7283_v14  ;;  %v5890_v15 = vld [vmem:[%s9027_s2 + $0x298] sm:$0x11] }
 0x28e   : > { %v5897_v23 = vcombine.low %v5890_v15, %v5890_v15  ;;  %v7142_v28 = vld [vmem:[%s9028_s3 + $0x30] sm:$0xff]  }
 0x28f   : > { %6456 = vmatprep.mubr.msk.bf16.mxu0 %vm903_vm15, %v1185_v26  ;;  %2488 = vmatmul.mubr.bf16.gmra.mrb[100].mxu1 %v7089_v21  ;;  %v5898_v21 = vcombine.high %v5890_v15, %v5890_v15 }
 0x290   : > { %2673 = vmatpush1.bf16.msra.mxu1 %v7409_v43  ;;  %5814 = vmatprep.mubr.msk.bf16.mxu1 %vm676_vm2, %v7090_v24  ;;  %v7130_v24 = vld [vmem:[%s9027_s2 + $0x2a4] ss:$8 sps:$4 sm:$0xff]  }
 0x291   : > { %2674 = vmatprep.subr.bf16.mxu1 %v7283_v14 }
 0x292   : > { %v1163_v29 = vpop.f32.mrb[36].mxu1 }
 0x293   : > { %v1165_v30 = vpop.f32.mrb[37].mxu1 }
 0x294   : > { %v1166_v33 = vpop.f32.mrb[38].mxu1  ;;  %2675 = vmatpush1.bf16.msra.mxu1 %v7413_v52 }
 0x295   : > { %v1186_v35 = vpack.c.bf16 %v1166_v33, %v1163_v29  ;;  %v1168_v36 = vpop.f32.mrb[39].mxu1  ;;  %2676 = vmatprep.subr.bf16.mxu1 %v7283_v14  ;;  %v7128_v33 = vld [vmem:[%s9027_s2 + $0x2a0] ss:$8 sps:$4 sm:$0xff]  }
 0x296   : > { %v7143_v36 = vld [vmem:[%s9028_s3 + $0x38] sm:$0xff]  }
 0x297   : > { %6457 = vmatmul.mubr.msk.bf16.vlgmr.msra.gmra.mrb[52].mxu0 %vm903_vm15, %v1186_v35  ;;  %2496 = vmatmul.mubr.bf16.gmra.mrb[104].mxu1 %v7092_v31  ;;  %v7131_v35 = vld [vmem:[%s9027_s2 + $0x2b4] ss:$8 sps:$4 sm:$0xff]  }
 0x298   : > { %1343 = vmatpush1.bf16.msra.mxu0 %v7401_v25  ;;  %2677 = vmatpush1.bf16.msra.mxu1 %v7417_v61 }
 0x299   : > { %1344 = vmatprep.subr.bf16.mxu0 %v7283_v14  ;;  %2678 = vmatprep.subr.bf16.mxu1 %v7283_v14 }
 0x29a   : > { %5815 = vmatprep.mubr.msk.bf16.mxu1 %vm676_vm2, %v5811_v38  ;;  %v1171_v39 = vpop.f32.mrb[40].mxu1  ;;  %v7133_v38 = vld [vmem:[%s9027_s2 + $0x2b0] ss:$8 sps:$4 sm:$0xff]  }
 0x29b   : > { %v1173_v41 = vpop.f32.mrb[41].mxu1 }
 0x29c   : > { %1345 = vmatpush1.bf16.msra.mxu0 %v7405_v34  ;;  %2679 = vmatpush1.bf16.msra.mxu1 %v7421_v7  ;;  %v1174_v42 = vpop.f32.mrb[42].mxu1 }
 0x29d   : > { %1346 = vmatprep.subr.bf16.mxu0 %v7283_v14  ;;  %2680 = vmatprep.subr.bf16.mxu1 %v7283_v14  ;;  %v1187_v44 = vpack.c.bf16 %v1174_v42, %v1171_v39  ;;  %v1176_v45 = vpop.f32.mrb[43].mxu1  ;;  %v7134_v39 = vld [vmem:[%s9027_s2 + $0x2c4] ss:$8 sps:$4 sm:$0xff]  }
 0x29f   : > { %2504 = vmatmul.mubr.bf16.gmra.mrb[108].mxu1 %v5810_v40  ;;  %6460 = vmatprep.mubr.msk.bf16.mxu0 %vm903_vm15, %v1187_v44 }
 0x2a0   : > { %1347 = vmatpush1.bf16.msra.mxu0 %v7409_v43  ;;  %2681 = vmatpush1.bf16.msra.mxu1 %v7425_v17 }
 0x2a1   : > { %1348 = vmatprep.subr.bf16.mxu0 %v7283_v14  ;;  %2682 = vmatprep.subr.bf16.mxu1 %v7283_v14 }
 0x2a2   : > { %5841 = vmatprep.mubr.msk.bf16.mxu1 %vm676_vm2, %v7097_v46  ;;  %v1179_v48 = vpop.f32.mrb[44].mxu1  ;;  %v5919_v46 = vld [vmem:[%s9027_s2 + $0x2d0] sm:$0x11] }
 0x2a3   : > { %v1188_v49 = vpack.c.bf16 %v1179_v48, %v1179_v48  ;;  %v1181_v50 = vpop.f32.mrb[45].mxu1  ;;  %v7136_v48 = vld [vmem:[%s9027_s2 + $0x2c0] ss:$8 sps:$4 sm:$0xff]  }
 0x2a4   : > { %1349 = vmatpush1.bf16.msra.mxu0 %v7413_v52  ;;  %2683 = vmatpush1.bf16.msra.mxu1 %v7429_v27  ;;  %v1182_v53 = vpop.f32.mrb[46].mxu1  ;;  %v8077_v50 = vld [vmem:[%s9028_s3 + $0x40] sm:$0xff]  }
 0x2a5   : > { %1350 = vmatprep.subr.bf16.mxu0 %v7283_v14  ;;  %2684 = vmatprep.subr.bf16.mxu1 %v7283_v14  ;;  %v1183_v54 = vpop.f32.mrb[47].mxu1 }
 0x2a6   : > { %6461 = vmatmul.mubr.msk.bf16.gmra.mrb[56].mxu0 %vm903_vm15, %v1188_v49  ;;  %v5927_v49 = vcombine.high %v5919_v46, %v5919_v46 }
 0x2a7   : > { %5667 = vmatprep.mubr.msk.bf16.mxu0 %vm676_vm2, %v7100_v51 }
 0x2a8   : > { %1351 = vmatpush1.bf16.msra.mxu0 %v7417_v61  ;;  %2685 = vmatpush1.bf16.msra.mxu1 %v7433_v37 }
 0x2a9   : > { %1352 = vmatprep.subr.bf16.mxu0 %v7283_v14  ;;  %2686 = vmatprep.subr.bf16.mxu1 %v7283_v14 }
 0x2ac   : > { %1353 = vmatpush1.bf16.msra.mxu0 %v7421_v7  ;;  %2687 = vmatpush1.bf16.msra.mxu1 %v7437_v47 }
 0x2ad   : > { %1354 = vmatprep.subr.bf16.mxu0 %v7283_v14  ;;  %2688 = vmatprep.subr.bf16.mxu1 %v7283_v14 }
 0x2b0   : > { %1355 = vmatpush1.bf16.msra.mxu0 %v7425_v17  ;;  %2689 = vmatpush1.bf16.msra.mxu1 %v7441_v57 }
 0x2b1   : > { %1356 = vmatprep.subr.bf16.mxu0 %v7283_v14  ;;  %2690 = vmatprep.subr.bf16.mxu1 %v7283_v14 }
 0x2b4   : > { %1357 = vmatpush1.bf16.msra.mxu0 %v7429_v27  ;;  %2691 = vmatpush1.bf16.msra.mxu1 %v7445_v4 }
 0x2b5   : > { %1358 = vmatprep.subr.bf16.mxu0 %v7283_v14  ;;  %2692 = vmatprep.subr.bf16.mxu1 %v7283_v14 }
 0x2b8   : > { %1359 = vmatpush1.bf16.msra.mxu0 %v7433_v37  ;;  %2693 = vmatpush1.bf16.msra.mxu1 %v7449_v13 }
 0x2b9   : > { %1360 = vmatprep.subr.bf16.mxu0 %v7283_v14  ;;  %3110 = vmatprep.subr.bf16.mxu1 %v7283_v14 }
 0x2bb   : > { %2701 = vmatmul.mubr.bf16.vlgmr.msra.gmra.mrb[112].mxu1 %v7095_v56 }
 0x2bc   : > { %1361 = vmatpush1.bf16.msra.mxu0 %v7437_v47  ;;  %3111 = vmatpush1.bf16.msra.mxu1 %v7401_v25 }
 0x2bd   : > { %1362 = vmatprep.subr.bf16.mxu0 %v7283_v14  ;;  %3112 = vmatprep.subr.bf16.mxu1 %v7283_v14 }
 0x2be   : > { %5842 = vmatprep.mubr.msk.bf16.mxu1 %vm676_vm2, %v7104_v58  ;;  %v8015_v26 = vpop.f32.mrb[48].mxu1 }
 0x2bf   : > { %v1599_v29 = vpop.f32.mrb[49].mxu1 }
 0x2c0   : > { %1363 = vmatpush1.bf16.msra.mxu0 %v7441_v57  ;;  %3113 = vmatpush1.bf16.msra.mxu1 %v7405_v34  ;;  %v8021_v30 = vpop.f32.mrb[50].mxu1 }
 0x2c1   : > { %1364 = vmatprep.subr.bf16.mxu0 %v7283_v14  ;;  %3114 = vmatprep.subr.bf16.mxu1 %v7283_v14  ;;  %v1627_v31 = vpack.c.bf16 %v8021_v30, %v8015_v26  ;;  %v1602_v32 = vpop.f32.mrb[51].mxu1 }
 0x2c3   : > { %2709 = vmatmul.mubr.bf16.gmra.mrb[116].mxu1 %v7106_v59  ;;  %v5926_v59 = vcombine.low %v5919_v46, %v5919_v46 }
 0x2c4   : > { %1365 = vmatpush1.bf16.msra.mxu0 %v7445_v4  ;;  %3115 = vmatpush1.bf16.msra.mxu1 %v7409_v43 }
 0x2c5   : > { %1366 = vmatprep.subr.bf16.mxu0 %v7283_v14  ;;  %3116 = vmatprep.subr.bf16.mxu1 %v7283_v14 }
 0x2c6   : > { %5843 = vmatprep.mubr.msk.bf16.mxu1 %vm676_vm2, %v7110_v60  ;;  %v8057_v40 = vpop.f32.mrb[52].mxu1  ;;  %v7141_v60 = vld [vmem:[%s9027_s2 + $0x314] ss:$8 sps:$4 sm:$0xff]  }
 0x2c7   : > { %v1607_v41 = vpop.f32.mrb[53].mxu1 }
 0x2c8   : > { %1367 = vmatpush1.bf16.msra.mxu0 %v7449_v13  ;;  %3117 = vmatpush1.bf16.msra.mxu1 %v7413_v52  ;;  %v8059_v42 = vpop.f32.mrb[54].mxu1 }
 0x2c9   : > { %3118 = vmatprep.subr.bf16.mxu1 %v7283_v14  ;;  %6464 = vmatprep.subr.bf16.mxu0 %v7142_v28  ;;  %v1628_v44 = vpack.c.bf16 %v8059_v42, %v8057_v40  ;;  %v1610_v45 = vpop.f32.mrb[55].mxu1  ;;  %v7159_v40 = vld [vmem:[%s9028_s3 + $0x60] sm:$0xff]   ;;  %v7148_v42 = vld [vmem:[%s9027_s2 + $0x150] ss:$8 sps:$4 sm:$0xff]  }
 0x2cb   : > { %1375 = vmatmul.mubr.bf16.vlgmr.msra.gmra.mrb[60].mxu0 %v7098_v63  ;;  %2717 = vmatmul.mubr.bf16.gmra.mrb[120].mxu1 %v7112_v0 }
 0x2cc   : > { %3119 = vmatpush1.bf16.msra.mxu1 %v7417_v61  ;;  %5668 = vmatprep.mubr.msk.bf16.mxu0 %vm676_vm2, %v7101_v2 }
 0x2cd   : > { %3120 = vmatprep.subr.bf16.mxu1 %v7283_v14  ;;  %5844 = vmatprep.mubr.msk.bf16.mxu1 %vm676_vm2, %v5840_v5 }
 0x2ce   : > { %6465 = vmatpush3.bf16.msra.mxu0 %v7142_v28  ;;  %v8079_v51 = vpop.f32.mrb[56].mxu1 }
 0x2cf   : > { %6466 = vmatprep.subr.bf16.mxu0 %v7143_v36  ;;  %v1615_v53 = vpop.f32.mrb[57].mxu1 }
 0x2d0   : > { %3121 = vmatpush1.bf16.msra.mxu1 %v7421_v7  ;;  %v8082_v54 = vpop.f32.mrb[58].mxu1 }
 0x2d1   : > { %3122 = vmatprep.subr.bf16.mxu1 %v7283_v14  ;;  %v1629_v56 = vpack.c.bf16 %v8082_v54, %v8079_v51  ;;  %v1618_v58 = vpop.f32.mrb[59].mxu1  ;;  %v7153_v51 = vld [vmem:[%s9027_s2 + $0x160] ss:$8 sps:$4 sm:$0xff]   ;;  %v7154_v54 = vld [vmem:[%s9027_s2 + $0x174] ss:$8 sps:$4 sm:$0xff]  }
 0x2d2   : > { %6467 = vmatpush3.bf16.msra.mxu0 %v7143_v36 }
 0x2d3   : > { %1383 = vmatmul.mubr.bf16.gmra.mrb[64].mxu0 %v7103_v55  ;;  %2725 = vmatmul.mubr.bf16.gmra.mrb[124].mxu1 %v5839_v6 }
 0x2d4   : > { %3123 = vmatpush1.bf16.msra.mxu1 %v7425_v17  ;;  %5669 = vmatprep.mubr.msk.bf16.mxu0 %vm676_vm2, %v7107_v9 }
 0x2d5   : > { %3124 = vmatprep.subr.bf16.mxu1 %v7283_v14  ;;  %5899 = vmatprep.mubr.msk.bf16.mxu1 %vm676_vm2, %v7119_v11 }
 0x2d6   : > { %6476 = vmatprep.subr.bf16.mxu0 %v8077_v50  ;;  %v8094_v62 = vpop.f32.mrb[60].mxu1 }
 0x2d7   : > { %v1623_v63 = vpop.f32.mrb[61].mxu1  ;;  %v1630_v26 = vpack.c.bf16 %v8094_v62, %v8094_v62  ;;  %v7156_v62 = vld [vmem:[%s9027_s2 + $0x170] ss:$8 sps:$4 sm:$0xff]  }
 0x2d8   : > { %3125 = vmatpush1.bf16.msra.mxu1 %v7429_v27  ;;  %v1624_v0 = vpop.f32.mrb[62].mxu1 }
 0x2d9   : > { %3126 = vmatprep.subr.bf16.mxu1 %v7283_v14  ;;  %v1625_v2 = vpop.f32.mrb[63].mxu1 }
 0x2db   : > { %1391 = vmatmul.mubr.bf16.gmra.mrb[68].mxu0 %v7109_v16 }
 0x2dc   : > { %3127 = vmatpush1.bf16.msra.mxu1 %v7433_v37  ;;  %5670 = vmatprep.mubr.msk.bf16.mxu0 %vm676_vm2, %v5666_v18 }
 0x2dd   : > { %3128 = vmatprep.subr.bf16.mxu1 %v7283_v14 }
 0x2e0   : > { %3129 = vmatpush1.bf16.msra.mxu1 %v7437_v47 }
 0x2e1   : > { %3130 = vmatprep.subr.bf16.mxu1 %v7283_v14 }
 0x2e3   : > { %1399 = vmatmul.mubr.bf16.gmra.mrb[72].mxu0 %v5665_v20 }
 0x2e4   : > { %3131 = vmatpush1.bf16.msra.mxu1 %v7441_v57 }
 0x2e5   : > { %3132 = vmatprep.subr.bf16.mxu1 %v7283_v14 }
 0x2e8   : > { %3133 = vmatpush1.bf16.msra.mxu1 %v7445_v4 }
 0x2e9   : > { %3134 = vmatprep.subr.bf16.mxu1 %v7283_v14 }
 0x2ec   : > { %3135 = vmatpush1.bf16.msra.mxu1 %v7449_v13 }
 0x2ed   : > { %3331 = vmatprep.subr.bf16.mxu1 %v7283_v14 }
 0x2ef   : > { %3143 = vmatmul.mubr.bf16.vlgmr.msra.gmra.mrb[128].mxu1 %v7117_v22 }
 0x2f0   : > { %3332 = vmatpush1.bf16.msra.mxu1 %v7401_v25  ;;  %5900 = vmatprep.mubr.msk.bf16.mxu1 %vm676_vm2, %v7120_v3  ;;  %v7139_v3 = vld [vmem:[%s9027_s2 + $0x310] ss:$8 sps:$4 sm:$0xff]  }
 0x2f1   : > { %3333 = vmatprep.subr.bf16.mxu1 %v7283_v14 }
 0x2f2   : > { %v8101_v5 = vpop.f32.mrb[64].mxu1 }
 0x2f3   : > { %v1820_v55 = vpop.f32.mrb[65].mxu1 }
 0x2f4   : > { %3334 = vmatpush1.bf16.msra.mxu1 %v7405_v34  ;;  %v8103_v6 = vpop.f32.mrb[66].mxu1 }
 0x2f5   : > { %3335 = vmatprep.subr.bf16.mxu1 %v7283_v14  ;;  %v1848_v9 = vpack.c.bf16 %v8103_v6, %v8101_v5  ;;  %v1823_v11 = vpop.f32.mrb[67].mxu1 }
 0x2f7   : > { %3151 = vmatmul.mubr.bf16.gmra.mrb[132].mxu1 %v7122_v8 }
 0x2f8   : > { %3336 = vmatpush1.bf16.msra.mxu1 %v7409_v43  ;;  %5901 = vmatprep.mubr.msk.bf16.mxu1 %vm676_vm2, %v7123_v10 }
 0x2f9   : > { %3337 = vmatprep.subr.bf16.mxu1 %v7283_v14 }
 0x2fa   : > { %v8111_v12 = vpop.f32.mrb[68].mxu1 }
 0x2fb   : > { %v1828_v16 = vpop.f32.mrb[69].mxu1 }
 0x2fc   : > { %3338 = vmatpush1.bf16.msra.mxu1 %v7413_v52  ;;  %v8113_v18 = vpop.f32.mrb[70].mxu1 }
 0x2fd   : > { %3339 = vmatprep.subr.bf16.mxu1 %v7283_v14  ;;  %v1849_v20 = vpack.c.bf16 %v8113_v18, %v8111_v12  ;;  %v1831_v22 = vpop.f32.mrb[71].mxu1 }
 0x2ff   : > { %3159 = vmatmul.mubr.bf16.gmra.mrb[136].mxu1 %v7125_v19 }
 0x300   : > { %3340 = vmatpush1.bf16.msra.mxu1 %v7417_v61  ;;  %5902 = vmatprep.mubr.msk.bf16.mxu1 %vm676_vm2, %v5898_v21 }
 0x301   : > { %3341 = vmatprep.subr.bf16.mxu1 %v7283_v14 }
 0x302   : > { %v8138_v8 = vpop.f32.mrb[72].mxu1 }
 0x303   : > { %v1836_v10 = vpop.f32.mrb[73].mxu1 }
 0x304   : > { %3342 = vmatpush1.bf16.msra.mxu1 %v7421_v7  ;;  %v8141_v15 = vpop.f32.mrb[74].mxu1 }
 0x305   : > { %3343 = vmatprep.subr.bf16.mxu1 %v7283_v14  ;;  %v1850_v19 = vpack.c.bf16 %v8141_v15, %v8138_v8  ;;  %v1839_v21 = vpop.f32.mrb[75].mxu1 }
 0x307   : > { %3167 = vmatmul.mubr.bf16.gmra.mrb[140].mxu1 %v5897_v23 }
 0x308   : > { %3344 = vmatpush1.bf16.msra.mxu1 %v7425_v17  ;;  %5928 = vmatprep.mubr.msk.bf16.mxu1 %vm676_vm2, %v7130_v24 }
 0x309   : > { %3345 = vmatprep.subr.bf16.mxu1 %v7283_v14 }
 0x30a   : > { %v8148_v23 = vpop.f32.mrb[76].mxu1 }
 0x30b   : > { %v1844_v24 = vpop.f32.mrb[77].mxu1  ;;  %v1851_v30 = vpack.c.bf16 %v8148_v23, %v8148_v23 }
 0x30c   : > { %3346 = vmatpush1.bf16.msra.mxu1 %v7429_v27  ;;  %v1845_v28 = vpop.f32.mrb[78].mxu1  ;;  %v7145_v24 = vld [vmem:[%s9028_s3 + $0x48] sm:$0xff]  }
 0x30d   : > { %3347 = vmatprep.subr.bf16.mxu1 %v7283_v14  ;;  %v1846_v29 = vpop.f32.mrb[79].mxu1 }
 0x310   : > { %3348 = vmatpush1.bf16.msra.mxu1 %v7433_v37 }
 0x311   : > { %3349 = vmatprep.subr.bf16.mxu1 %v7283_v14 }
 0x314   : > { %3350 = vmatpush1.bf16.msra.mxu1 %v7437_v47 }
 0x315   : > { %3351 = vmatprep.subr.bf16.mxu1 %v7283_v14 }
 0x318   : > { %3352 = vmatpush1.bf16.msra.mxu1 %v7441_v57 }
 0x319   : > { %3353 = vmatprep.subr.bf16.mxu1 %v7283_v14 }
 0x31c   : > { %3354 = vmatpush1.bf16.msra.mxu1 %v7445_v4 }
 0x31d   : > { %3355 = vmatprep.subr.bf16.mxu1 %v7283_v14 }
 0x320   : > { %3356 = vmatpush1.bf16.msra.mxu1 %v7449_v13 }
 0x321   : > { %3773 = vmatprep.subr.bf16.mxu1 %v7283_v14 }
 0x323   : > { %3364 = vmatmul.mubr.bf16.vlgmr.msra.gmra.mrb[144].mxu1 %v7128_v33 }
 0x324   : > { %3774 = vmatpush1.bf16.msra.mxu1 %v7401_v25  ;;  %5929 = vmatprep.mubr.msk.bf16.mxu1 %vm676_vm2, %v7131_v35 }
 0x325   : > { %3775 = vmatprep.subr.bf16.mxu1 %v7283_v14 }
 0x326   : > { %v8160_v32 = vpop.f32.mrb[80].mxu1 }
 0x327   : > { %v2262_v35 = vpop.f32.mrb[81].mxu1 }
 0x328   : > { %3776 = vmatpush1.bf16.msra.mxu1 %v7405_v34 }
 0x329   : > { %3777 = vmatprep.subr.bf16.mxu1 %v7283_v14 }
 0x32b   : > { %3372 = vmatmul.mubr.bf16.gmra.mrb[148].mxu1 %v7133_v38  ;;  %v8162_v38 = vpop.f32.mrb[82].mxu1 }
 0x32c   : > { %3778 = vmatpush1.bf16.msra.mxu1 %v7409_v43  ;;  %5930 = vmatprep.mubr.msk.bf16.mxu1 %vm676_vm2, %v7134_v39  ;;  %v2290_v41 = vpack.c.bf16 %v8162_v38, %v8160_v32  ;;  %v2265_v45 = vpop.f32.mrb[83].mxu1  ;;  %v7165_v32 = vld [vmem:[%s9028_s3 + $0x90] sm:$0xff]  }
 0x32d   : > { %3779 = vmatprep.subr.bf16.mxu1 %v7283_v14 }
 0x330   : > { %3780 = vmatpush1.bf16.msra.mxu1 %v7413_v52 }
 0x331   : > { %3781 = vmatprep.subr.bf16.mxu1 %v7283_v14 }
 0x333   : > { %3380 = vmatmul.mubr.bf16.gmra.mrb[152].mxu1 %v7136_v48 }
 0x334   : > { %3782 = vmatpush1.bf16.msra.mxu1 %v7417_v61  ;;  %5931 = vmatprep.mubr.msk.bf16.mxu1 %vm676_vm2, %v5927_v49  ;;  %v8166_v49 = vpop.f32.mrb[84].mxu1 }
 0x335   : > { %3783 = vmatprep.subr.bf16.mxu1 %v7283_v14  ;;  %v2270_v53 = vpop.f32.mrb[85].mxu1 }
 0x336   : > { %v8169_v58 = vpop.f32.mrb[86].mxu1 }
 0x338   : > { %3784 = vmatpush1.bf16.msra.mxu1 %v7421_v7 }
 0x339   : > { %3785 = vmatprep.subr.bf16.mxu1 %v7283_v14 }
 0x33b   : > { %3388 = vmatmul.mubr.bf16.gmra.mrb[156].mxu1 %v5926_v59  ;;  %v2291_v59 = vpack.c.bf16 %v8169_v58, %v8166_v49 }
 0x33c   : > { %3786 = vmatpush1.bf16.msra.mxu1 %v7425_v17  ;;  %5986 = vmatprep.mubr.msk.bf16.mxu1 %vm676_vm2, %v7141_v60  ;;  %v2273_v60 = vpop.f32.mrb[87].mxu1 }
 0x33d   : > { %3787 = vmatprep.subr.bf16.mxu1 %v7283_v14  ;;  %v8173_v63 = vpop.f32.mrb[88].mxu1 }
 0x33e   : > { %v2278_v2 = vpop.f32.mrb[89].mxu1 }
 0x33f   : > { %v8175_v11 = vpop.f32.mrb[90].mxu1 }
 0x340   : > { %3788 = vmatpush1.bf16.msra.mxu1 %v7429_v27  ;;  %v2292_v22 = vpack.c.bf16 %v8175_v11, %v8173_v63  ;;  %v7178_v63 = vld [vmem:[%s9028_s3 + $0xa0] sm:$0xff]   ;;  %v7167_v11 = vld [vmem:[%s9027_s2 + $0x230] ss:$8 sps:$4 sm:$0xff]  }
 0x341   : > { %3789 = vmatprep.subr.bf16.mxu1 %v7283_v14 }
 0x344   : > { %3790 = vmatpush1.bf16.msra.mxu1 %v7433_v37 }
 0x345   : > { %3791 = vmatprep.subr.bf16.mxu1 %v7283_v14 }
 0x348   : > { %3792 = vmatpush1.bf16.msra.mxu1 %v7437_v47 }
 0x349   : > { %3793 = vmatprep.subr.bf16.mxu1 %v7283_v14 }
 0x34c   : > { %3794 = vmatpush1.bf16.msra.mxu1 %v7441_v57 }
 0x34d   : > { %3795 = vmatprep.subr.bf16.mxu1 %v7283_v14 }
 0x350   : > { %3796 = vmatpush1.bf16.msra.mxu1 %v7445_v4 }
 0x351   : > { %3797 = vmatprep.subr.bf16.mxu1 %v7283_v14 }
 0x354   : > { %3798 = vmatpush1.bf16.msra.mxu1 %v7449_v13 }
 0x355   : > { %3994 = vmatprep.subr.bf16.mxu1 %v7283_v14 }
 0x357   : > { %3806 = vmatmul.mubr.bf16.vlgmr.msra.gmra.mrb[160].mxu1 %v7139_v3  ;;  %v2281_v3 = vpop.f32.mrb[91].mxu1 }
 0x358   : > { %3995 = vmatpush1.bf16.msra.mxu1 %v7401_v25  ;;  %v8182_v28 = vpop.f32.mrb[92].mxu1 }
 0x359   : > { %3996 = vmatprep.subr.bf16.mxu1 %v7283_v14  ;;  %v2286_v29 = vpop.f32.mrb[93].mxu1  ;;  %v2293_v38 = vpack.c.bf16 %v8182_v28, %v8182_v28  ;;  %v7172_v28 = vld [vmem:[%s9027_s2 + $0x240] ss:$8 sps:$4 sm:$0xff]  }
 0x35c   : > { %3997 = vmatpush1.bf16.msra.mxu1 %v7405_v34 }
 0x35d   : > { %3998 = vmatprep.subr.bf16.mxu1 %v7283_v14 }
 0x360   : > { %3999 = vmatpush1.bf16.msra.mxu1 %v7409_v43 }
 0x361   : > { %4000 = vmatprep.subr.bf16.mxu1 %v7283_v14 }
 0x364   : > { %4001 = vmatpush1.bf16.msra.mxu1 %v7413_v52 }
 0x365   : > { %4002 = vmatprep.subr.bf16.mxu1 %v7283_v14 }
 0x368   : > { %4003 = vmatpush1.bf16.msra.mxu1 %v7417_v61 }
 0x369   : > { %4004 = vmatprep.subr.bf16.mxu1 %v7283_v14 }
 0x36c   : > { %4005 = vmatpush1.bf16.msra.mxu1 %v7421_v7 }
 0x36d   : > { %4006 = vmatprep.subr.bf16.mxu1 %v7283_v14 }
 0x370   : > { %4007 = vmatpush1.bf16.msra.mxu1 %v7425_v17 }
 0x371   : > { %4008 = vmatprep.subr.bf16.mxu1 %v7283_v14 }
 0x374   : > { %4009 = vmatpush1.bf16.msra.mxu1 %v7429_v27 }
 0x375   : > { %4010 = vmatprep.subr.bf16.mxu1 %v7283_v14 }
 0x378   : > { %4011 = vmatpush1.bf16.msra.mxu1 %v7433_v37 }
 0x379   : > { %4012 = vmatprep.subr.bf16.mxu1 %v7283_v14 }
 0x37c   : > { %4013 = vmatpush1.bf16.msra.mxu1 %v7437_v47 }
 0x37d   : > { %4014 = vmatprep.subr.bf16.mxu1 %v7283_v14 }
 0x380   : > { %4015 = vmatpush1.bf16.msra.mxu1 %v7441_v57 }
 0x381   : > { %4016 = vmatprep.subr.bf16.mxu1 %v7283_v14 }
 0x384   : > { %4017 = vmatpush1.bf16.msra.mxu1 %v7445_v4 }
 0x385   : > { %4018 = vmatprep.subr.bf16.mxu1 %v7283_v14 }
 0x388   : > { %4019 = vmatpush1.bf16.msra.mxu1 %v7449_v13 }
 0x389   : > { %6656 = vmatprep.subr.bf16.mxu1 %v7281_v1 }
 0x39e   : > { %v1376_v33 = vpop.f32.mrb[60].mxu0 }
 0x39f   : > { %v1378_v36 = vpop.f32.mrb[61].mxu0 }
 0x3a0   : > { %v1379_v39 = vpop.f32.mrb[62].mxu0  ;;  %v7146_v36 = vld [vmem:[%s9028_s3 + $0x50] sm:$0xff]  }
 0x3a1   : > { %v1406_v46 = vpack.c.bf16 %v1379_v39, %v1376_v33  ;;  %v1381_v48 = vpop.f32.mrb[63].mxu0  ;;  %v2287_v33 = vpop.f32.mrb[94].mxu1 }
 0x3a2   : > { %v2288_v35 = vpop.f32.mrb[95].mxu1 }
 0x3a3   : > { %6468 = vmatprep.mubr.msk.bf16.mxu0 %vm903_vm15, %v1406_v46 }
 0x3a6   : > { %v1384_v0 = vpop.f32.mrb[64].mxu0 }
 0x3a7   : > { %v1386_v55 = vpop.f32.mrb[65].mxu0 }
 0x3a8   : > { %v1387_v16 = vpop.f32.mrb[66].mxu0 }
 0x3a9   : > { %v1407_v10 = vpack.c.bf16 %v1387_v16, %v1384_v0  ;;  %v1389_v21 = vpop.f32.mrb[67].mxu0  ;;  %v7147_v16 = vld [vmem:[%s9028_s3 + $0x58] sm:$0xff]  }
 0x3ab   : > { %6469 = vmatmul.mubr.msk.bf16.vlgmr.msra.gmra.mrb[52].mxu0 %vm903_vm15, %v1407_v10 }
 0x3ac   : > { %6477 = vmatpush3.bf16.msra.mxu0 %v8077_v50 }
 0x3ad   : > { %6478 = vmatprep.subr.bf16.mxu0 %v7145_v24 }
 0x3ae   : > { %v1392_v39 = vpop.f32.mrb[68].mxu0 }
 0x3af   : > { %v1394_v45 = vpop.f32.mrb[69].mxu0 }
 0x3b0   : > { %v1395_v46 = vpop.f32.mrb[70].mxu0  ;;  %6479 = vmatpush3.bf16.msra.mxu0 %v7145_v24 }
 0x3b1   : > { %v1408_v48 = vpack.c.bf16 %v1395_v46, %v1392_v39  ;;  %v1397_v53 = vpop.f32.mrb[71].mxu0  ;;  %6488 = vmatprep.subr.bf16.mxu0 %v7146_v36 }
 0x3b3   : > { %6472 = vmatprep.mubr.msk.bf16.mxu0 %vm903_vm15, %v1408_v48 }
 0x3b6   : > { %v1400_v60 = vpop.f32.mrb[72].mxu0 }
 0x3b7   : > { %v1409_v0 = vpack.c.bf16 %v1400_v60, %v1400_v60  ;;  %v1402_v2 = vpop.f32.mrb[73].mxu0 }
 0x3b8   : > { %v1403_v55 = vpop.f32.mrb[74].mxu0 }
 0x3b9   : > { %v1404_v50 = vpop.f32.mrb[75].mxu0  ;;  %6473 = vmatmul.mubr.msk.bf16.gmra.mrb[56].mxu0 %vm903_vm15, %v1409_v0 }
 0x3ba   : > { %6480 = vmatprep.mubr.msk.bf16.mxu0 %vm903_vm15, %v1627_v31  ;;  %v7150_v31 = vld [vmem:[%s9027_s2 + $0x154] ss:$8 sps:$4 sm:$0xff]  }
 0x3c1   : > { %6481 = vmatmul.mubr.msk.bf16.vlgmr.msra.gmra.mrb[52].mxu0 %vm903_vm15, %v1628_v44  ;;  %v7151_v44 = vld [vmem:[%s9027_s2 + $0x164] ss:$8 sps:$4 sm:$0xff]  }
 0x3c2   : > { %6489 = vmatpush3.bf16.msra.mxu0 %v7146_v36  ;;  %6484 = vmatprep.mubr.msk.bf16.mxu0 %vm903_vm15, %v1629_v56  ;;  %v5745_v56 = vld [vmem:[%s9027_s2 + $0x180] sm:$0x11] }
 0x3c3   : > { %6490 = vmatprep.subr.bf16.mxu0 %v7147_v16  ;;  %v5753_v5 = vcombine.high %v5745_v56, %v5745_v56  ;;  %v5752_v6 = vcombine.low %v5745_v56, %v5745_v56 }
 0x3c6   : > { %6491 = vmatpush3.bf16.msra.mxu0 %v7147_v16 }
 0x3c7   : > { %2005 = vmatprep.subr.bf16.mxu0 %v7283_v14 }
 0x3c9   : > { %6485 = vmatmul.mubr.msk.bf16.gmra.mrb[56].mxu0 %vm903_vm15, %v1630_v26 }
 0x3ca   : > { %6492 = vmatprep.mubr.msk.bf16.mxu0 %vm903_vm15, %v1848_v9  ;;  %v8278_v9 = vpop.f32.mrb[96].mxu1 }
 0x3cb   : > { %v2483_v12 = vpop.f32.mrb[97].mxu1 }
 0x3cc   : > { %v8280_v18 = vpop.f32.mrb[98].mxu1 }
 0x3cd   : > { %v2511_v8 = vpack.c.bf16 %v8280_v18, %v8278_v9  ;;  %v2486_v15 = vpop.f32.mrb[99].mxu1  ;;  %v7173_v9 = vld [vmem:[%s9027_s2 + $0x254] ss:$8 sps:$4 sm:$0xff]   ;;  %v5861_v18 = vld [vmem:[%s9027_s2 + $0x260] sm:$0x11] }
 0x3ce   : > { %v8290_v23 = vpop.f32.mrb[100].mxu1 }
 0x3cf   : > { %v2491_v3 = vpop.f32.mrb[101].mxu1 }
 0x3d0   : > { %v8292_v10 = vpop.f32.mrb[102].mxu1 }
 0x3d1   : > { %6493 = vmatmul.mubr.msk.bf16.vlgmr.msra.gmra.mrb[52].mxu0 %vm903_vm15, %v1849_v20  ;;  %v7160_v20 = vld [vmem:[%s9028_s3 + $0x68] sm:$0xff]   ;;  %v2512_v21 = vpack.c.bf16 %v8292_v10, %v8290_v23  ;;  %v2494_v24 = vpop.f32.mrb[103].mxu1  ;;  %v5869_v23 = vcombine.high %v5861_v18, %v5861_v18  ;;  %v5868_v10 = vcombine.low %v5861_v18, %v5861_v18 }
 0x3d2   : > { %2006 = vmatpush1.bf16.msra.mxu0 %v7401_v25  ;;  %6496 = vmatprep.mubr.msk.bf16.mxu0 %vm903_vm15, %v1850_v19  ;;  %v7161_v19 = vld [vmem:[%s9028_s3 + $0x70] sm:$0xff]   ;;  %v8296_v29 = vpop.f32.mrb[104].mxu1 }
 0x3d3   : > { %2007 = vmatprep.subr.bf16.mxu0 %v7283_v14  ;;  %v2499_v33 = vpop.f32.mrb[105].mxu1  ;;  %v7203_v18 = vld [vmem:[%s9027_s2 + $0x348] ss:$8 sps:$4 sm:$0xff]  }
 0x3d4   : > { %v8298_v35 = vpop.f32.mrb[106].mxu1 }
 0x3d5   : > { %v2513_v36 = vpack.c.bf16 %v8298_v35, %v8296_v29  ;;  %v2502_v39 = vpop.f32.mrb[107].mxu1 }
 0x3d6   : > { %2008 = vmatpush1.bf16.msra.mxu0 %v7405_v34  ;;  %v8302_v45 = vpop.f32.mrb[108].mxu1 }
 0x3d7   : > { %2009 = vmatprep.subr.bf16.mxu0 %v7283_v14  ;;  %v2507_v46 = vpop.f32.mrb[109].mxu1  ;;  %v2514_v49 = vpack.c.bf16 %v8302_v45, %v8302_v45 }
 0x3d8   : > { %v2508_v48 = vpop.f32.mrb[110].mxu1 }
 0x3d9   : > { %6497 = vmatmul.mubr.msk.bf16.gmra.mrb[56].mxu0 %vm903_vm15, %v1851_v30  ;;  %v2509_v53 = vpop.f32.mrb[111].mxu1 }
 0x3da   : > { %2010 = vmatpush1.bf16.msra.mxu0 %v7409_v43  ;;  %5754 = vmatprep.mubr.msk.bf16.mxu0 %vm676_vm2, %v7150_v31  ;;  %v8304_v60 = vpop.f32.mrb[112].mxu1 }
 0x3db   : > { %2011 = vmatprep.subr.bf16.mxu0 %v7283_v14  ;;  %v2704_v0 = vpop.f32.mrb[113].mxu1 }
 0x3dc   : > { %v8306_v2 = vpop.f32.mrb[114].mxu1 }
 0x3dd   : > { %v2732_v55 = vpack.c.bf16 %v8306_v2, %v8304_v60  ;;  %v2707_v50 = vpop.f32.mrb[115].mxu1  ;;  %v8460_v2 = vld [vmem:[%s9028_s3 + $0xb0] sm:$0xff]  }
 0x3de   : > { %2012 = vmatpush1.bf16.msra.mxu0 %v7413_v52  ;;  %v8310_v16 = vpop.f32.mrb[116].mxu1  ;;  %v7162_v50 = vld [vmem:[%s9028_s3 + $0x78] sm:$0xff]  }
 0x3df   : > { %2013 = vmatprep.subr.bf16.mxu0 %v7283_v14  ;;  %v2712_v26 = vpop.f32.mrb[117].mxu1 }
 0x3e0   : > { %v8312_v30 = vpop.f32.mrb[118].mxu1  ;;  %v7163_v26 = vld [vmem:[%s9028_s3 + $0x80] sm:$0xff]  }
 0x3e1   : > { %v2733_v31 = vpack.c.bf16 %v8312_v30, %v8310_v16 }
 0x3e2   : > { %2014 = vmatpush1.bf16.msra.mxu0 %v7417_v61 }
 0x3e3   : > { %2015 = vmatprep.subr.bf16.mxu0 %v7283_v14 }
 0x3e6   : > { %2016 = vmatpush1.bf16.msra.mxu0 %v7421_v7 }
 0x3e7   : > { %2017 = vmatprep.subr.bf16.mxu0 %v7283_v14 }
 0x3ea   : > { %2018 = vmatpush1.bf16.msra.mxu0 %v7425_v17 }
 0x3eb   : > { %2019 = vmatprep.subr.bf16.mxu0 %v7283_v14 }
 0x3ee   : > { %2020 = vmatpush1.bf16.msra.mxu0 %v7429_v27 }
 0x3ef   : > { %2021 = vmatprep.subr.bf16.mxu0 %v7283_v14 }
 0x3f2   : > { %2022 = vmatpush1.bf16.msra.mxu0 %v7433_v37 }
 0x3f3   : > { %2023 = vmatprep.subr.bf16.mxu0 %v7283_v14 }
 0x3f6   : > { %2024 = vmatpush1.bf16.msra.mxu0 %v7437_v47 }
 0x3f7   : > { %2025 = vmatprep.subr.bf16.mxu0 %v7283_v14 }
 0x3fa   : > { %2026 = vmatpush1.bf16.msra.mxu0 %v7441_v57 }
 0x3fb   : > { %2027 = vmatprep.subr.bf16.mxu0 %v7283_v14 }
 0x3fe   : > { %2028 = vmatpush1.bf16.msra.mxu0 %v7445_v4 }
 0x3ff   : > { %2029 = vmatprep.subr.bf16.mxu0 %v7283_v14 }
 0x402   : > { %2030 = vmatpush1.bf16.msra.mxu0 %v7449_v13 }
 0x403   : > { %6500 = vmatprep.subr.bf16.mxu0 %v7159_v40 }
 0x405   : > { %2038 = vmatmul.mubr.bf16.vlgmr.msra.gmra.mrb[76].mxu0 %v7148_v42 }
 0x406   : > { %5755 = vmatprep.mubr.msk.bf16.mxu0 %vm676_vm2, %v7151_v44  ;;  %6501 = vmatpush3.bf16.msra.mxu0 %v7159_v40  ;;  %v2715_v40 = vpop.f32.mrb[119].mxu1 }
 0x407   : > { %6502 = vmatprep.subr.bf16.mxu0 %v7160_v20  ;;  %v8316_v42 = vpop.f32.mrb[120].mxu1 }
 0x408   : > { %v2720_v44 = vpop.f32.mrb[121].mxu1 }
 0x40a   : > { %6503 = vmatpush3.bf16.msra.mxu0 %v7160_v20 }
 0x40b   : > { %6512 = vmatprep.subr.bf16.mxu0 %v7161_v19 }
 0x40d   : > { %2046 = vmatmul.mubr.bf16.gmra.mrb[80].mxu0 %v7153_v51  ;;  %v8318_v51 = vpop.f32.mrb[122].mxu1 }
 0x40e   : > { %5756 = vmatprep.mubr.msk.bf16.mxu0 %vm676_vm2, %v7154_v54  ;;  %v2734_v54 = vpack.c.bf16 %v8318_v51, %v8316_v42  ;;  %v2723_v56 = vpop.f32.mrb[123].mxu1 }
 0x415   : > { %2054 = vmatmul.mubr.bf16.gmra.mrb[84].mxu0 %v7156_v62  ;;  %v8322_v62 = vpop.f32.mrb[124].mxu1 }
 0x416   : > { %5757 = vmatprep.mubr.msk.bf16.mxu0 %vm676_vm2, %v5753_v5  ;;  %v2728_v5 = vpop.f32.mrb[125].mxu1  ;;  %v2735_v58 = vpack.c.bf16 %v8322_v62, %v8322_v62 }
 0x41d   : > { %2062 = vmatmul.mubr.bf16.gmra.mrb[88].mxu0 %v5752_v6  ;;  %v2729_v6 = vpop.f32.mrb[126].mxu1 }
 0x41e   : > { %v2730_v12 = vpop.f32.mrb[127].mxu1 }
 0x41f   : > { %v8332_v40 = vpop.f32.mrb[128].mxu1 }
 0x420   : > { %v3146_v56 = vpop.f32.mrb[129].mxu1 }
 0x421   : > { %v8334_v6 = vpop.f32.mrb[130].mxu1 }
 0x4d8   : > { %v2039_v20 = vpop.f32.mrb[76].mxu0 }
 0x4d9   : > { %v2041_v15 = vpop.f32.mrb[77].mxu0 }
 0x4da   : > { %v2042_v3 = vpop.f32.mrb[78].mxu0  ;;  %v3149_v15 = vpop.f32.mrb[131].mxu1 }
 0x4db   : > { %v2069_v24 = vpack.c.bf16 %v2042_v3, %v2039_v20  ;;  %v2044_v33 = vpop.f32.mrb[79].mxu0  ;;  %v3174_v20 = vpack.c.bf16 %v8334_v6, %v8332_v40  ;;  %v8451_v29 = vpop.f32.mrb[132].mxu1 }
 0x4dc   : > { %v3154_v35 = vpop.f32.mrb[133].mxu1 }
 0x4dd   : > { %6504 = vmatprep.mubr.msk.bf16.mxu0 %vm903_vm15, %v2069_v24 }
 0x4e0   : > { %v2047_v39 = vpop.f32.mrb[80].mxu0 }
 0x4e1   : > { %v2049_v46 = vpop.f32.mrb[81].mxu0 }
 0x4e2   : > { %v2050_v48 = vpop.f32.mrb[82].mxu0 }
 0x4e3   : > { %v2070_v53 = vpack.c.bf16 %v2050_v48, %v2047_v39  ;;  %v2052_v0 = vpop.f32.mrb[83].mxu0 }
 0x4e5   : > { %6505 = vmatmul.mubr.msk.bf16.vlgmr.msra.gmra.mrb[52].mxu0 %vm903_vm15, %v2070_v53  ;;  %v7164_v53 = vld [vmem:[%s9028_s3 + $0x88] sm:$0xff]  }
 0x4e6   : > { %6513 = vmatpush3.bf16.msra.mxu0 %v7161_v19 }
 0x4e7   : > { %6514 = vmatprep.subr.bf16.mxu0 %v7162_v50 }
 0x4e8   : > { %v2055_v44 = vpop.f32.mrb[84].mxu0 }
 0x4e9   : > { %v2057_v5 = vpop.f32.mrb[85].mxu0 }
 0x4ea   : > { %v2058_v12 = vpop.f32.mrb[86].mxu0  ;;  %6515 = vmatpush3.bf16.msra.mxu0 %v7162_v50 }
 0x4eb   : > { %v2071_v3 = vpack.c.bf16 %v2058_v12, %v2055_v44  ;;  %v2060_v19 = vpop.f32.mrb[87].mxu0  ;;  %6524 = vmatprep.subr.bf16.mxu0 %v7163_v26 }
 0x4ed   : > { %6508 = vmatprep.mubr.msk.bf16.mxu0 %vm903_vm15, %v2071_v3 }
 0x4f0   : > { %v2063_v24 = vpop.f32.mrb[88].mxu0 }
 0x4f1   : > { %v2072_v33 = vpack.c.bf16 %v2063_v24, %v2063_v24  ;;  %v2065_v39 = vpop.f32.mrb[89].mxu0 }
 0x4f2   : > { %v2066_v46 = vpop.f32.mrb[90].mxu0 }
 0x4f3   : > { %v2067_v48 = vpop.f32.mrb[91].mxu0  ;;  %6509 = vmatmul.mubr.msk.bf16.gmra.mrb[56].mxu0 %vm903_vm15, %v2072_v33 }
 0x4f4   : > { %6516 = vmatprep.mubr.msk.bf16.mxu0 %vm903_vm15, %v2290_v41  ;;  %v7166_v41 = vld [vmem:[%s9028_s3 + $0x98] sm:$0xff]  }
 0x4fb   : > { %6517 = vmatmul.mubr.msk.bf16.vlgmr.msra.gmra.mrb[52].mxu0 %vm903_vm15, %v2291_v59  ;;  %v7169_v59 = vld [vmem:[%s9027_s2 + $0x234] ss:$8 sps:$4 sm:$0xff]  }
 0x4fc   : > { %6525 = vmatpush3.bf16.msra.mxu0 %v7163_v26  ;;  %6520 = vmatprep.mubr.msk.bf16.mxu0 %vm903_vm15, %v2292_v22  ;;  %v7170_v22 = vld [vmem:[%s9027_s2 + $0x244] ss:$8 sps:$4 sm:$0xff]  }
 0x4fd   : > { %6526 = vmatprep.subr.bf16.mxu0 %v7164_v53 }
 0x500   : > { %6527 = vmatpush3.bf16.msra.mxu0 %v7164_v53 }
 0x501   : > { %6536 = vmatprep.subr.bf16.mxu0 %v7165_v32 }
 0x503   : > { %6521 = vmatmul.mubr.msk.bf16.gmra.mrb[56].mxu0 %vm903_vm15, %v2293_v38 }
 0x504   : > { %6528 = vmatprep.mubr.msk.bf16.mxu0 %vm903_vm15, %v2511_v8  ;;  %v7175_v8 = vld [vmem:[%s9027_s2 + $0x250] ss:$8 sps:$4 sm:$0xff]  }
 0x50b   : > { %6529 = vmatmul.mubr.msk.bf16.vlgmr.msra.gmra.mrb[52].mxu0 %vm903_vm15, %v2512_v21  ;;  %v7179_v21 = vld [vmem:[%s9028_s3 + $0xa8] sm:$0xff]  }
 0x50c   : > { %6537 = vmatpush3.bf16.msra.mxu0 %v7165_v32  ;;  %6532 = vmatprep.mubr.msk.bf16.mxu0 %vm903_vm15, %v2513_v36  ;;  %v8453_v36 = vpop.f32.mrb[134].mxu1 }
 0x50d   : > { %6538 = vmatprep.subr.bf16.mxu0 %v7166_v41  ;;  %v3175_v45 = vpack.c.bf16 %v8453_v36, %v8451_v29  ;;  %v3157_v60 = vpop.f32.mrb[135].mxu1 }
 0x510   : > { %6539 = vmatpush3.bf16.msra.mxu0 %v7166_v41 }
 0x511   : > { %2889 = vmatprep.subr.bf16.mxu0 %v7283_v14 }
 0x513   : > { %6533 = vmatmul.mubr.msk.bf16.gmra.mrb[56].mxu0 %vm903_vm15, %v2514_v49 }
 0x514   : > { %6540 = vmatprep.mubr.msk.bf16.mxu0 %vm903_vm15, %v2732_v55  ;;  %v8462_v55 = vpop.f32.mrb[136].mxu1 }
 0x515   : > { %v3162_v16 = vpop.f32.mrb[137].mxu1 }
 0x516   : > { %v8465_v30 = vpop.f32.mrb[138].mxu1 }
 0x517   : > { %v3165_v42 = vpop.f32.mrb[139].mxu1 }
 0x518   : > { %v8469_v51 = vpop.f32.mrb[140].mxu1 }
 0x519   : > { %v3177_v40 = vpack.c.bf16 %v8469_v51, %v8469_v51 }
 0x51b   : > { %6541 = vmatmul.mubr.msk.bf16.vlgmr.msra.gmra.mrb[52].mxu0 %vm903_vm15, %v2733_v31  ;;  %v3176_v31 = vpack.c.bf16 %v8465_v30, %v8462_v55 }
 0x51c   : > { %2890 = vmatpush1.bf16.msra.mxu0 %v7401_v25  ;;  %6544 = vmatprep.mubr.msk.bf16.mxu0 %vm903_vm15, %v2734_v54  ;;  %v3170_v54 = vpop.f32.mrb[141].mxu1 }
 0x51d   : > { %2891 = vmatprep.subr.bf16.mxu0 %v7283_v14  ;;  %v3171_v62 = vpop.f32.mrb[142].mxu1 }
 0x51e   : > { %v3172_v0 = vpop.f32.mrb[143].mxu1 }
 0x51f   : > { %v8471_v50 = vpop.f32.mrb[144].mxu1 }
 0x520   : > { %2892 = vmatpush1.bf16.msra.mxu0 %v7405_v34  ;;  %v3367_v26 = vpop.f32.mrb[145].mxu1 }
 0x521   : > { %2893 = vmatprep.subr.bf16.mxu0 %v7283_v14  ;;  %v8473_v44 = vpop.f32.mrb[146].mxu1 }
 0x522   : > { %v3395_v56 = vpack.c.bf16 %v8473_v44, %v8471_v50  ;;  %v3370_v5 = vpop.f32.mrb[147].mxu1  ;;  %v7216_v50 = vld [vmem:[%s9028_s3 + $0xe0] sm:$0xff]  }
 0x523   : > { %6545 = vmatmul.mubr.msk.bf16.gmra.mrb[56].mxu0 %vm903_vm15, %v2735_v58  ;;  %v8477_v12 = vpop.f32.mrb[148].mxu1  ;;  %v7187_v58 = vld [vmem:[%s9027_s2 + $0x324] ss:$8 sps:$4 sm:$0xff]   ;;  %v7208_v5 = vld [vmem:[%s9027_s2 + $0x358] ss:$8 sps:$4 sm:$0xff]  }
 0x524   : > { %2894 = vmatpush1.bf16.msra.mxu0 %v7409_v43  ;;  %5870 = vmatprep.mubr.msk.bf16.mxu0 %vm676_vm2, %v7169_v59  ;;  %v3375_v15 = vpop.f32.mrb[149].mxu1  ;;  %v7189_v59 = vld [vmem:[%s9027_s2 + $0x320] ss:$8 sps:$4 sm:$0xff]  }
 0x525   : > { %2895 = vmatprep.subr.bf16.mxu0 %v7283_v14  ;;  %v8479_v3 = vpop.f32.mrb[150].mxu1  ;;  %5987 = vmatprep.mubr.msk.bf16.mxu1 %vm676_vm2, %v7187_v58  ;;  %v6006_v58 = vld [vmem:[%s9027_s2 + $0x378] sm:$0x11] }
 0x526   : > { %v3396_v19 = vpack.c.bf16 %v8479_v3, %v8477_v12  ;;  %v3378_v24 = vpop.f32.mrb[151].mxu1  ;;  %3814 = vmatmul.mubr.bf16.gmra.mrb[164].mxu1 %v7189_v59  ;;  %v7182_v59 = vld [vmem:[%s9028_s3 + $0xc0] sm:$0xff]  }
 0x527   : > { %v8483_v33 = vpop.f32.mrb[152].mxu1  ;;  %v7209_v24 = vld [vmem:[%s9027_s2 + $0x36c] ss:$8 sps:$4 sm:$0xff]  }
 0x528   : > { %2896 = vmatpush1.bf16.msra.mxu0 %v7413_v52  ;;  %v3383_v39 = vpop.f32.mrb[153].mxu1 }
 0x529   : > { %2897 = vmatprep.subr.bf16.mxu0 %v7283_v14  ;;  %v8485_v46 = vpop.f32.mrb[154].mxu1 }
 0x52a   : > { %v3397_v48 = vpack.c.bf16 %v8485_v46, %v8483_v33  ;;  %v3386_v53 = vpop.f32.mrb[155].mxu1 }
 0x52b   : > { %v8489_v32 = vpop.f32.mrb[156].mxu1 }
 0x52c   : > { %2898 = vmatpush1.bf16.msra.mxu0 %v7417_v61  ;;  %v3391_v38 = vpop.f32.mrb[157].mxu1  ;;  %v3398_v6 = vpack.c.bf16 %v8489_v32, %v8489_v32 }
 0x52d   : > { %2899 = vmatprep.subr.bf16.mxu0 %v7283_v14  ;;  %v3392_v41 = vpop.f32.mrb[158].mxu1 }
 0x52e   : > { %v3393_v49 = vpop.f32.mrb[159].mxu1 }
 0x52f   : > { %v7181_v49 = vld [vmem:[%s9028_s3 + $0xb8] sm:$0xff]  }
 0x530   : > { %2900 = vmatpush1.bf16.msra.mxu0 %v7421_v7 }
 0x531   : > { %2901 = vmatprep.subr.bf16.mxu0 %v7283_v14 }
 0x534   : > { %2902 = vmatpush1.bf16.msra.mxu0 %v7425_v17 }
 0x535   : > { %2903 = vmatprep.subr.bf16.mxu0 %v7283_v14 }
 0x538   : > { %2904 = vmatpush1.bf16.msra.mxu0 %v7429_v27 }
 0x539   : > { %2905 = vmatprep.subr.bf16.mxu0 %v7283_v14 }
 0x53c   : > { %2906 = vmatpush1.bf16.msra.mxu0 %v7433_v37 }
 0x53d   : > { %2907 = vmatprep.subr.bf16.mxu0 %v7283_v14 }
 0x540   : > { %2908 = vmatpush1.bf16.msra.mxu0 %v7437_v47 }
 0x541   : > { %2909 = vmatprep.subr.bf16.mxu0 %v7283_v14 }
 0x544   : > { %2910 = vmatpush1.bf16.msra.mxu0 %v7441_v57 }
 0x545   : > { %2911 = vmatprep.subr.bf16.mxu0 %v7283_v14 }
 0x548   : > { %2912 = vmatpush1.bf16.msra.mxu0 %v7445_v4 }
 0x549   : > { %2913 = vmatprep.subr.bf16.mxu0 %v7283_v14 }
 0x54c   : > { %2914 = vmatpush1.bf16.msra.mxu0 %v7449_v13 }
 0x54d   : > { %6548 = vmatprep.subr.bf16.mxu0 %v7178_v63 }
 0x54f   : > { %2922 = vmatmul.mubr.bf16.vlgmr.msra.gmra.mrb[92].mxu0 %v7167_v11  ;;  %v7195_v11 = vld [vmem:[%s9027_s2 + $0x330] ss:$8 sps:$4 sm:$0xff]  }
 0x550   : > { %5871 = vmatprep.mubr.msk.bf16.mxu0 %vm676_vm2, %v7170_v22  ;;  %6549 = vmatpush3.bf16.msra.mxu0 %v7178_v63  ;;  %v7193_v63 = vld [vmem:[%s9027_s2 + $0x334] ss:$8 sps:$4 sm:$0xff]   ;;  %v5977_v22 = vld [vmem:[%s9027_s2 + $0x340] sm:$0x11] }
 0x551   : > { %6550 = vmatprep.subr.bf16.mxu0 %v7179_v21  ;;  %5988 = vmatprep.mubr.msk.bf16.mxu1 %vm676_vm2, %v7193_v63  ;;  %v7211_v63 = vld [vmem:[%s9027_s2 + $0x368] ss:$8 sps:$4 sm:$0xff]  }
 0x552   : > { %3822 = vmatmul.mubr.bf16.gmra.mrb[168].mxu1 %v7195_v11 }
 0x554   : > { %6551 = vmatpush3.bf16.msra.mxu0 %v7179_v21  ;;  %v8518_v21 = vpop.f32.mrb[160].mxu1 }
 0x555   : > { %6560 = vmatprep.subr.bf16.mxu0 %v8460_v2  ;;  %v3809_v60 = vpop.f32.mrb[161].mxu1 }
 0x556   : > { %v8521_v42 = vpop.f32.mrb[162].mxu1 }
 0x557   : > { %2930 = vmatmul.mubr.bf16.gmra.mrb[96].mxu0 %v7172_v28  ;;  %v5985_v28 = vcombine.high %v5977_v22, %v5977_v22  ;;  %v3837_v0 = vpack.c.bf16 %v8521_v42, %v8518_v21  ;;  %v3812_v26 = vpop.f32.mrb[163].mxu1  ;;  %v7222_v42 = vld [vmem:[%s9030_s5] sm:$0xff]  }
 0x558   : > { %5872 = vmatprep.mubr.msk.bf16.mxu0 %vm676_vm2, %v7173_v9  ;;  %v5984_v9 = vcombine.low %v5977_v22, %v5977_v22  ;;  %v6014_v22 = vcombine.high %v6006_v58, %v6006_v58 }
 0x559   : > { %5989 = vmatprep.mubr.msk.bf16.mxu1 %vm676_vm2, %v5985_v28 }
 0x55a   : > { %3830 = vmatmul.mubr.bf16.gmra.mrb[172].mxu1 %v5984_v9 }
 0x55f   : > { %2938 = vmatmul.mubr.bf16.gmra.mrb[100].mxu0 %v7175_v8  ;;  %v7205_v8 = vld [vmem:[%s9027_s2 + $0x34c] ss:$8 sps:$4 sm:$0xff]  }
 0x560   : > { %5873 = vmatprep.mubr.msk.bf16.mxu0 %vm676_vm2, %v5869_v23  ;;  %6015 = vmatprep.mubr.msk.bf16.mxu1 %vm676_vm2, %v7205_v8 }
 0x562   : > { %4027 = vmatmul.mubr.bf16.vlgmr.msra.gmra.mrb[176].mxu1 %v7203_v18 }
 0x563   : > { %6657 = vmatpush3.bf16.msra.mxu1 %v7222_v42 }
 0x564   : > { %6658 = vmatprep.subr.bf16.mxu1 %v7281_v1 }
 0x567   : > { %2946 = vmatmul.mubr.bf16.gmra.mrb[104].mxu0 %v5868_v10  ;;  %v7206_v10 = vld [vmem:[%s9027_s2 + $0x35c] ss:$8 sps:$4 sm:$0xff]  }
 0x568   : > { %6016 = vmatprep.mubr.msk.bf16.mxu1 %vm676_vm2, %v7206_v10 }
 0x56a   : > { %4035 = vmatmul.mubr.bf16.gmra.mrb[180].mxu1 %v7208_v5 }
 0x56b   : > { %6017 = vmatprep.mubr.msk.bf16.mxu1 %vm676_vm2, %v7209_v24 }
 0x572   : > { %4043 = vmatmul.mubr.bf16.gmra.mrb[184].mxu1 %v7211_v63 }
 0x573   : > { %6018 = vmatprep.mubr.msk.bf16.mxu1 %vm676_vm2, %v6014_v22 }
 0x622   : > { %v2923_v23 = vpop.f32.mrb[92].mxu0 }
 0x623   : > { %v2925_v35 = vpop.f32.mrb[93].mxu0 }
 0x624   : > { %v2926_v16 = vpop.f32.mrb[94].mxu0 }
 0x625   : > { %v2953_v54 = vpack.c.bf16 %v2926_v16, %v2923_v23  ;;  %v2928_v62 = vpop.f32.mrb[95].mxu0 }
 0x627   : > { %6552 = vmatprep.mubr.msk.bf16.mxu0 %vm903_vm15, %v2953_v54  ;;  %v7183_v54 = vld [vmem:[%s9028_s3 + $0xc8] sm:$0xff]  }
 0x62a   : > { %v2931_v15 = vpop.f32.mrb[96].mxu0 }
 0x62b   : > { %v2933_v39 = vpop.f32.mrb[97].mxu0 }
 0x62c   : > { %v2934_v53 = vpop.f32.mrb[98].mxu0 }
 0x62d   : > { %v2954_v38 = vpack.c.bf16 %v2934_v53, %v2931_v15  ;;  %v2936_v41 = vpop.f32.mrb[99].mxu0 }
 0x62f   : > { %6553 = vmatmul.mubr.msk.bf16.vlgmr.msra.gmra.mrb[52].mxu0 %vm903_vm15, %v2954_v38 }
 0x630   : > { %6561 = vmatpush3.bf16.msra.mxu0 %v8460_v2  ;;  %v6013_v2 = vcombine.low %v6006_v58, %v6006_v58 }
 0x631   : > { %6562 = vmatprep.subr.bf16.mxu0 %v7181_v49 }
 0x632   : > { %v2939_v11 = vpop.f32.mrb[100].mxu0  ;;  %4051 = vmatmul.mubr.bf16.gmra.mrb[188].mxu1 %v6013_v2 }
 0x633   : > { %v2941_v28 = vpop.f32.mrb[101].mxu0  ;;  %6664 = vmatprep.mubr.msk.bf16.mxu1 %vm7282_vm0, %v7281_v1 }
 0x634   : > { %v2942_v9 = vpop.f32.mrb[102].mxu0  ;;  %6563 = vmatpush3.bf16.msra.mxu0 %v7181_v49 }
 0x635   : > { %v2955_v18 = vpack.c.bf16 %v2942_v9, %v2939_v11  ;;  %v2944_v8 = vpop.f32.mrb[103].mxu0  ;;  %6572 = vmatprep.subr.bf16.mxu0 %v7182_v59 }
 0x637   : > { %6556 = vmatprep.mubr.msk.bf16.mxu0 %vm903_vm15, %v2955_v18 }
 0x63a   : > { %v2947_v23 = vpop.f32.mrb[104].mxu0 }
 0x63b   : > { %v2956_v10 = vpack.c.bf16 %v2947_v23, %v2947_v23  ;;  %v2949_v35 = vpop.f32.mrb[105].mxu0 }
 0x63c   : > { %v2950_v60 = vpop.f32.mrb[106].mxu0 }
 0x63d   : > { %v2951_v16 = vpop.f32.mrb[107].mxu0  ;;  %6557 = vmatmul.mubr.msk.bf16.gmra.mrb[56].mxu0 %vm903_vm15, %v2956_v10 }
 0x63e   : > { %6564 = vmatprep.mubr.msk.bf16.mxu0 %vm903_vm15, %v3174_v20  ;;  %v7186_v20 = vld [vmem:[%s9027_s2 + $0x2dc] ss:$8 sps:$4 sm:$0xff]   ;;  %v7217_v16 = vld [vmem:[%s9028_s3 + $0xe8] sm:$0xff]  }
 0x645   : > { %6565 = vmatmul.mubr.msk.bf16.vlgmr.msra.gmra.mrb[52].mxu0 %vm903_vm15, %v3175_v45 }
 0x646   : > { %6573 = vmatpush3.bf16.msra.mxu0 %v7182_v59  ;;  %6568 = vmatprep.mubr.msk.bf16.mxu0 %vm903_vm15, %v3176_v31 }
 0x647   : > { %6574 = vmatprep.subr.bf16.mxu0 %v7183_v54 }
 0x64a   : > { %6575 = vmatpush3.bf16.msra.mxu0 %v7183_v54  ;;  %v7218_v54 = vld [vmem:[%s9028_s3 + $0xf0] sm:$0xff]  }
 0x64b   : > { %3552 = vmatprep.subr.bf16.mxu0 %v7283_v14 }
 0x64d   : > { %6569 = vmatmul.mubr.msk.bf16.gmra.mrb[56].mxu0 %vm903_vm15, %v3177_v40 }
 0x64e   : > { %6576 = vmatprep.mubr.msk.bf16.mxu0 %vm903_vm15, %v3395_v56 }
 0x655   : > { %6577 = vmatmul.mubr.msk.bf16.vlgmr.msra.gmra.mrb[52].mxu0 %vm903_vm15, %v3396_v19 }
 0x656   : > { %3553 = vmatpush1.bf16.msra.mxu0 %v7401_v25  ;;  %6580 = vmatprep.mubr.msk.bf16.mxu0 %vm903_vm15, %v3397_v48  ;;  %v7214_v25 = vld [vmem:[%s9028_s3 + $0xd0] sm:$0xff]  }
 0x657   : > { %3554 = vmatprep.subr.bf16.mxu0 %v7283_v14 }
 0x65a   : > { %3555 = vmatpush1.bf16.msra.mxu0 %v7405_v34  ;;  %v7184_v34 = vld [vmem:[%s9027_s2 + $0x2d8] ss:$8 sps:$4 sm:$0xff]  }
 0x65b   : > { %3556 = vmatprep.subr.bf16.mxu0 %v7283_v14 }
 0x65d   : > { %6581 = vmatmul.mubr.msk.bf16.gmra.mrb[56].mxu0 %vm903_vm15, %v3398_v6 }
 0x65e   : > { %3557 = vmatpush1.bf16.msra.mxu0 %v7409_v43  ;;  %5957 = vmatprep.mubr.msk.bf16.mxu0 %vm676_vm2, %v7186_v20  ;;  %v7190_v43 = vld [vmem:[%s9027_s2 + $0x2ec] ss:$8 sps:$4 sm:$0xff]  }
 0x65f   : > { %3558 = vmatprep.subr.bf16.mxu0 %v7283_v14 }
 0x662   : > { %3559 = vmatpush1.bf16.msra.mxu0 %v7413_v52  ;;  %v7192_v52 = vld [vmem:[%s9027_s2 + $0x2e8] ss:$8 sps:$4 sm:$0xff]  }
 0x663   : > { %3560 = vmatprep.subr.bf16.mxu0 %v7283_v14 }
 0x666   : > { %3561 = vmatpush1.bf16.msra.mxu0 %v7417_v61  ;;  %v7196_v61 = vld [vmem:[%s9027_s2 + $0x2fc] ss:$8 sps:$4 sm:$0xff]  }
 0x667   : > { %3562 = vmatprep.subr.bf16.mxu0 %v7283_v14 }
 0x66a   : > { %3563 = vmatpush1.bf16.msra.mxu0 %v7421_v7  ;;  %v5948_v7 = vld [vmem:[%s9027_s2 + $0x308] sm:$0x11] }
 0x66b   : > { %3564 = vmatprep.subr.bf16.mxu0 %v7283_v14 }
 0x66e   : > { %3565 = vmatpush1.bf16.msra.mxu0 %v7425_v17  ;;  %v7198_v17 = vld [vmem:[%s9027_s2 + $0x2f8] ss:$8 sps:$4 sm:$0xff]  }
 0x66f   : > { %3566 = vmatprep.subr.bf16.mxu0 %v7283_v14 }
 0x672   : > { %3567 = vmatpush1.bf16.msra.mxu0 %v7429_v27  ;;  %v5956_v27 = vcombine.high %v5948_v7, %v5948_v7 }
 0x673   : > { %3568 = vmatprep.subr.bf16.mxu0 %v7283_v14 }
 0x676   : > { %3569 = vmatpush1.bf16.msra.mxu0 %v7433_v37  ;;  %v5955_v37 = vcombine.low %v5948_v7, %v5948_v7 }
 0x677   : > { %3570 = vmatprep.subr.bf16.mxu0 %v7283_v14 }
 0x67a   : > { %3571 = vmatpush1.bf16.msra.mxu0 %v7437_v47  ;;  %v7215_v47 = vld [vmem:[%s9028_s3 + $0xd8] sm:$0xff]  }
 0x67b   : > { %3572 = vmatprep.subr.bf16.mxu0 %v7283_v14 }
 0x67e   : > { %3573 = vmatpush1.bf16.msra.mxu0 %v7441_v57  ;;  %v8643_v57 = vpop.f32.mrb[164].mxu1 }
 0x67f   : > { %3574 = vmatprep.subr.bf16.mxu0 %v7283_v14 }
 0x682   : > { %3575 = vmatpush1.bf16.msra.mxu0 %v7445_v4  ;;  %v3817_v4 = vpop.f32.mrb[165].mxu1 }
 0x683   : > { %3576 = vmatprep.subr.bf16.mxu0 %v7283_v14 }
 0x686   : > { %3577 = vmatpush1.bf16.msra.mxu0 %v7449_v13  ;;  %v8645_v13 = vpop.f32.mrb[166].mxu1 }
 0x687   : > { %6584 = vmatprep.subr.bf16.mxu0 %v7214_v25  ;;  %v3838_v29 = vpack.c.bf16 %v8645_v13, %v8643_v57  ;;  %v3820_v36 = vpop.f32.mrb[167].mxu1 }
 0x688   : > { %v8649_v45 = vpop.f32.mrb[168].mxu1 }
 0x689   : > { %3585 = vmatmul.mubr.bf16.vlgmr.msra.gmra.mrb[108].mxu0 %v7184_v34  ;;  %v3825_v55 = vpop.f32.mrb[169].mxu1 }
 0x68a   : > { %5958 = vmatprep.mubr.msk.bf16.mxu0 %vm676_vm2, %v7190_v43  ;;  %6585 = vmatpush3.bf16.msra.mxu0 %v7214_v25  ;;  %v8651_v30 = vpop.f32.mrb[170].mxu1 }
 0x68b   : > { %6586 = vmatprep.subr.bf16.mxu0 %v7215_v47  ;;  %v3839_v31 = vpack.c.bf16 %v8651_v30, %v8649_v45  ;;  %v3828_v51 = vpop.f32.mrb[171].mxu1 }
 0x68c   : > { %v8658_v44 = vpop.f32.mrb[172].mxu1 }
 0x68d   : > { %v3833_v56 = vpop.f32.mrb[173].mxu1 }
 0x68e   : > { %6587 = vmatpush3.bf16.msra.mxu0 %v7215_v47  ;;  %v3834_v12 = vpop.f32.mrb[174].mxu1  ;;  %v7224_v47 = vld [vmem:[%s9030_s5 + $0x10] sm:$0xff]  }
 0x68f   : > { %6596 = vmatprep.subr.bf16.mxu0 %v7216_v50  ;;  %v3835_v3 = vpop.f32.mrb[175].mxu1 }
 0x690   : > { %v4028_v19 = vpop.f32.mrb[176].mxu1 }
 0x691   : > { %3593 = vmatmul.mubr.bf16.gmra.mrb[112].mxu0 %v7192_v52  ;;  %v4030_v33 = vpop.f32.mrb[177].mxu1 }
 0x692   : > { %5959 = vmatprep.mubr.msk.bf16.mxu0 %vm676_vm2, %v7196_v61  ;;  %v4031_v46 = vpop.f32.mrb[178].mxu1 }
 0x693   : > { %v4058_v48 = vpack.c.bf16 %v4031_v46, %v4028_v19  ;;  %v4033_v32 = vpop.f32.mrb[179].mxu1 }
 0x694   : > { %v4036_v62 = vpop.f32.mrb[180].mxu1 }
 0x695   : > { %v4038_v26 = vpop.f32.mrb[181].mxu1 }
 0x696   : > { %v4039_v5 = vpop.f32.mrb[182].mxu1 }
 0x697   : > { %v4059_v15 = vpack.c.bf16 %v4039_v5, %v4036_v62  ;;  %v4041_v24 = vpop.f32.mrb[183].mxu1 }
 0x698   : > { %v4044_v39 = vpop.f32.mrb[184].mxu1 }
 0x699   : > { %3601 = vmatmul.mubr.bf16.gmra.mrb[116].mxu0 %v7198_v17  ;;  %v4046_v53 = vpop.f32.mrb[185].mxu1 }
 0x69a   : > { %5960 = vmatprep.mubr.msk.bf16.mxu0 %vm676_vm2, %v5956_v27  ;;  %v4047_v38 = vpop.f32.mrb[186].mxu1  ;;  %v7219_v27 = vld [vmem:[%s9028_s3 + $0xf8] sm:$0xff]   ;;  %vm4162_vm2 = vcmask 523264  }
 0x69b   : > { %v4060_v41 = vpack.c.bf16 %v4047_v38, %v4044_v39  ;;  %v4049_v49 = vpop.f32.mrb[187].mxu1 }
 0x6a1   : > { %3609 = vmatmul.mubr.bf16.gmra.mrb[120].mxu0 %v5955_v37  ;;  %v3840_v37 = vpack.c.bf16 %v8658_v44, %v8658_v44 }
 0x705   : > { %v4052_v58 = vpop.f32.mrb[188].mxu1 }
 0x706   : > { %v4054_v59 = vpop.f32.mrb[189].mxu1  ;;  %v4061_v21 = vpack.c.bf16 %v4052_v58, %v4052_v58 }
 0x707   : > { %v4055_v63 = vpop.f32.mrb[190].mxu1 }
 0x708   : > { %v4056_v11 = vpop.f32.mrb[191].mxu1 }
 0x75c   : > { %v3586_v22 = vpop.f32.mrb[108].mxu0 }
 0x75d   : > { %v3588_v28 = vpop.f32.mrb[109].mxu0 }
 0x75e   : > { %v3589_v9 = vpop.f32.mrb[110].mxu0 }
 0x75f   : > { %v3616_v18 = vpack.c.bf16 %v3589_v9, %v3586_v22  ;;  %v3591_v8 = vpop.f32.mrb[111].mxu0 }
 0x761   : > { %6588 = vmatprep.mubr.msk.bf16.mxu0 %vm903_vm15, %v3616_v18 }
 0x764   : > { %v3594_v2 = vpop.f32.mrb[112].mxu0 }
 0x765   : > { %v3596_v23 = vpop.f32.mrb[113].mxu0 }
 0x766   : > { %v3597_v10 = vpop.f32.mrb[114].mxu0 }
 0x767   : > { %v3617_v35 = vpack.c.bf16 %v3597_v10, %v3594_v2  ;;  %v3599_v60 = vpop.f32.mrb[115].mxu0 }
 0x769   : > { %6589 = vmatmul.mubr.msk.bf16.vlgmr.msra.gmra.mrb[52].mxu0 %vm903_vm15, %v3617_v35 }
 0x76a   : > { %6597 = vmatpush3.bf16.msra.mxu0 %v7216_v50 }
 0x76b   : > { %6598 = vmatprep.subr.bf16.mxu0 %v7217_v16 }
 0x76c   : > { %v3602_v40 = vpop.f32.mrb[116].mxu0 }
 0x76d   : > { %v3604_v6 = vpop.f32.mrb[117].mxu0 }
 0x76e   : > { %v3605_v20 = vpop.f32.mrb[118].mxu0  ;;  %6599 = vmatpush3.bf16.msra.mxu0 %v7217_v16 }
 0x76f   : > { %v3618_v25 = vpack.c.bf16 %v3605_v20, %v3602_v40  ;;  %v3607_v34 = vpop.f32.mrb[119].mxu0  ;;  %6608 = vmatprep.subr.bf16.mxu0 %v7218_v54 }
 0x771   : > { %6592 = vmatprep.mubr.msk.bf16.mxu0 %vm903_vm15, %v3618_v25 }
 0x774   : > { %v3610_v43 = vpop.f32.mrb[120].mxu0 }
 0x775   : > { %v3619_v52 = vpack.c.bf16 %v3610_v43, %v3610_v43  ;;  %v3612_v61 = vpop.f32.mrb[121].mxu0 }
 0x776   : > { %v3613_v7 = vpop.f32.mrb[122].mxu0 }
 0x777   : > { %v3614_v17 = vpop.f32.mrb[123].mxu0  ;;  %6593 = vmatmul.mubr.msk.bf16.gmra.mrb[56].mxu0 %vm903_vm15, %v3619_v52 }
 0x778   : > { %6600 = vmatprep.mubr.msk.bf16.mxu0 %vm903_vm15, %v3837_v0  ;;  %v7223_v0 = vld [vmem:[%s9030_s5 + $0x8] sm:$0xff]  }
 0x779   : > { %6659 = vmatpush3.bf16.msra.mxu1 %v7223_v0 }
 0x77a   : > { %6660 = vmatprep.subr.bf16.mxu1 %v7281_v1 }
 0x77d   : > { %6661 = vmatpush3.bf16.msra.mxu1 %v7224_v47 }
 0x77e   : > { %6662 = vmatprep.subr.bf16.mxu1 %v7281_v1 }
 0x77f   : > { %6601 = vmatmul.mubr.msk.bf16.vlgmr.msra.gmra.mrb[52].mxu0 %vm903_vm15, %v3838_v29 }
 0x780   : > { %6609 = vmatpush3.bf16.msra.mxu0 %v7218_v54  ;;  %6604 = vmatprep.mubr.msk.bf16.mxu0 %vm903_vm15, %v3839_v31 }
 0x781   : > { %6610 = vmatprep.subr.bf16.mxu0 %v7219_v27 }
 0x784   : > { %6611 = vmatpush3.bf16.msra.mxu0 %v7219_v27 }
 0x785   : > { %6620 = vmatprep.subr.bf16.mxu0 %v7281_v1 }
 0x787   : > { %6605 = vmatmul.mubr.msk.bf16.gmra.mrb[56].mxu0 %vm903_vm15, %v3840_v37 }
 0x788   : > { %6612 = vmatprep.mubr.msk.bf16.mxu0 %vm903_vm15, %v4058_v48 }
 0x78f   : > { %6613 = vmatmul.mubr.msk.bf16.vlgmr.msra.gmra.mrb[52].mxu0 %vm903_vm15, %v4059_v15 }
 0x790   : > { %6616 = vmatprep.mubr.msk.bf16.mxu0 %vm903_vm15, %v4060_v41 }
 0x797   : > { %6617 = vmatmul.mubr.msk.bf16.gmra.mrb[56].mxu0 %vm903_vm15, %v4061_v21 }
 0x798   : > { %6628 = vmatprep.mubr.msk.bf16.mxu0 %vm7282_vm0, %v7281_v1 }
 0x862   : > { %v6614_v57 = vpop.f32.mrb[52].mxu0 }
 0x863   : > { %v4125_v4 = vpop.f32.mrb[53].mxu0  ;;  %v4166_v30 = vsel %vm4162_vm2, %v6614_v57, 0.0 }
 0x864   : > { %v6615_v13 = vpop.f32.mrb[54].mxu0  ;;  %v4163_v36 = vsel %vm4162_vm2, %v4125_v4, 0.0 }
 0x865   : > { %v4128_v29 = vpop.f32.mrb[55].mxu0  ;;  %v4168_v51 = vsel %vm4162_vm2, %v6615_v13, 0.0 }
 0x866   : > { %v4164_v45 = vsel %vm4162_vm2, %v4128_v29, 0.0 }
 0x867   : > { %v4165_v55 = vadd.f32 %v4164_v45, %v4163_v36 }
 0x869   : > { %v4167_v31 = vadd.f32 %v4166_v30, %v4165_v55 }
 0x86a   : > { %v6618_v50 = vpop.f32.mrb[56].mxu0 }
 0x86b   : > { %v4141_v44 = vpop.f32.mrb[57].mxu0  ;;  %v4169_v56 = vadd.f32 %v4168_v51, %v4167_v31  ;;  %v4175_v32 = vsel %vm4174_vm1, %v6618_v50, 0.0 }
 0x86c   : > { %v4170_v12 = vsel %vm4162_vm2, %v4141_v44, 0.0  ;;  %v6619_v3 = vpop.f32.mrb[58].mxu0 }
 0x86d   : > { %v4171_v19 = vadd.f32 %v4170_v12, %v4169_v56  ;;  %v4144_v33 = vpop.f32.mrb[59].mxu0 }
 0x86e   : > { %v4172_v46 = vsel %vm4162_vm2, %v4144_v33, 0.0 }
 0x86f   : > { %v4173_v48 = vadd.f32 %v4172_v46, %v4171_v19 }
 0x871   : > { %v4176_v62 = vadd.f32 %v4175_v32, %v4173_v48 }
 0x873   : > { %v4177_v26 = vrot.slane %v4176_v62, 4 }
 0x875   : > { %v4178_v5 = vadd.f32 %v4177_v26, %v4176_v62 }
 0x877   : > { %v4179_v15 = vrot.slane %v4178_v5, 2 }
 0x879   : > { %v4180_v24 = vadd.f32 %v4179_v15, %v4178_v5 }
 0x87b   : > { %v4181_v39 = vrot.slane %v4180_v24, 1 }
 0x87d   : > { %v4182_v53 = vadd.f32 %v4181_v39, %v4180_v24 }
 0x87f   : > { %v4184_v38 = vmul.f32 0.020408163, %v4182_v53 }
 0x881   : > { %v4185_v41 = vsub.f32 %v4125_v4, %v4184_v38  ;;  %v4186_v49 = vsub.f32 %v4128_v29, %v4184_v38  ;;  %v4187_v58 = vsub.f32 %v6614_v57, %v4184_v38  ;;  %v4188_v59 = vsub.f32 %v6615_v13, %v4184_v38 }
 0x882   : > { %v4189_v63 = vsub.f32 %v4141_v44, %v4184_v38  ;;  %v4190_v11 = vsub.f32 %v4144_v33, %v4184_v38  ;;  %v4191_v22 = vsub.f32 %v6618_v50, %v4184_v38  ;;  %v4266_v38 = vsel %vm4264_vm10, 65535, %v7283_v14  ;;  %v7221_v14 = vld [vmem:[%s9029_s4 + $0x8] sm:$0xff]  }
 0x883   : > { %v4192_v28 = vmul.f32 %v4185_v41, %v4185_v41  ;;  %v4193_v9 = vmul.f32 %v4186_v49, %v4186_v49  ;;  %v4194_v18 = vmul.f32 %v4187_v58, %v4187_v58  ;;  %v4195_v8 = vmul.f32 %v4188_v59, %v4188_v59 }
 0x884   : > { %v4196_v35 = vmul.f32 %v4189_v63, %v4189_v63  ;;  %v4197_v54 = vmul.f32 %v4190_v11, %v4190_v11  ;;  %v4198_v20 = vmul.f32 %v4191_v22, %v4191_v22 }
 0x885   : > { %v4199_v2 = vsel %vm4162_vm2, %v4192_v28, 0.0  ;;  %v4200_v23 = vsel %vm4162_vm2, %v4193_v9, 0.0  ;;  %v4202_v60 = vsel %vm4162_vm2, %v4194_v18, 0.0  ;;  %v4204_v40 = vsel %vm4162_vm2, %v4195_v8, 0.0 }
 0x886   : > { %v4201_v10 = vadd.f32 %v4200_v23, %v4199_v2  ;;  %v4206_v25 = vsel %vm4162_vm2, %v4196_v35, 0.0  ;;  %v4208_v43 = vsel %vm4162_vm2, %v4197_v54, 0.0  ;;  %v4210_v61 = vsel %vm4174_vm1, %v4198_v20, 0.0  ;;  %v7230_v54 = vld [vmem:[%s9029_s4 + $0x10] sm:$0xff]   ;;  %v7233_v20 = vld [vmem:[%s9029_s4 + $0x28] sm:$0xff]  }
 0x888   : > { %v4203_v16 = vadd.f32 %v4202_v60, %v4201_v10 }
 0x88a   : > { %v4205_v6 = vadd.f32 %v4204_v40, %v4203_v16  ;;  %v7231_v40 = vld [vmem:[%s9029_s4 + $0x18] sm:$0xff]  }
 0x88c   : > { %v4207_v34 = vadd.f32 %v4206_v25, %v4205_v6  ;;  %v7232_v6 = vld [vmem:[%s9029_s4 + $0x20] sm:$0xff]   ;;  %v7234_v25 = vld [vmem:[%s9029_s4 + $0x30] sm:$0xff]  }
 0x88e   : > { %v4209_v52 = vadd.f32 %v4208_v43, %v4207_v34  ;;  %v7237_v34 = vld [vmem:[%s9030_s5 + $0x40] sm:$0xff]   ;;  %v7238_v43 = vld [vmem:[%s9030_s5 + $0x48] sm:$0xff]  }
 0x890   : > { %v4211_v7 = vadd.f32 %v4210_v61, %v4209_v52  ;;  %v7235_v52 = vld [vmem:[%s9029_s4 + $0x38] sm:$0xff]   ;;  %v7239_v61 = vld [vmem:[%s9030_s5 + $0x50] sm:$0xff]  }
 0x892   : > { %v4212_v17 = vrot.slane %v4211_v7, 4 }
 0x894   : > { %v4213_v27 = vadd.f32 %v4212_v17, %v4211_v7  ;;  %v7240_v7 = vld [vmem:[%s9030_s5 + $0x58] sm:$0xff]   ;;  %v7236_v17 = vld [vmem:[%s9029_s4 + $0x40] sm:$0xff]  }
 0x896   : > { %v4214_v37 = vrot.slane %v4213_v27, 2 }
 0x898   : > { %v4215_v21 = vadd.f32 %v4214_v37, %v4213_v27 }
 0x89a   : > { %v4216_v42 = vrot.slane %v4215_v21, 1 }
 0x89c   : > { %v4217_v0 = vadd.f32 %v4216_v42, %v4215_v21 }
 0x89e   : > { %v4218_v47 = vmul.f32 0.020408163, %v4217_v0 }
 0x8a0   : > { %v4219_v57 = vadd.f32 1e-05, %v4218_v47 }
 0x8a2   : > { %7265 = vrsqrt.f32 %v4219_v57 }
 0x8ac   : > { %v7266_v4 = vpop.eup %7265 }
 0x8ad   : > { %v4221_v13 = vmul.f32 %v7266_v4, %v4185_v41  ;;  %v4222_v29 = vmul.f32 %v7266_v4, %v4186_v49  ;;  %v4223_v36 = vmul.f32 %v7266_v4, %v4187_v58  ;;  %v4224_v45 = vmul.f32 %v7266_v4, %v4188_v59  ;;  %v7220_v49 = vld [vmem:[%s9029_s4] sm:$0xff]   ;;  %v7225_v58 = vld [vmem:[%s9030_s5 + $0x18] sm:$0xff]  }
 0x8ae   : > { %v4225_v55 = vmul.f32 %v7266_v4, %v4189_v63  ;;  %v4226_v30 = vmul.f32 %v7266_v4, %v4190_v11  ;;  %v4227_v31 = vmul.f32 %v7266_v4, %v4191_v22  ;;  %6663 = vmatpush3.bf16.msra.mxu1 %v7225_v58  ;;  %v7226_v59 = vld [vmem:[%s9030_s5 + $0x20] sm:$0xff]   ;;  %v7227_v63 = vld [vmem:[%s9030_s5 + $0x28] sm:$0xff]   ;;  %v7228_v11 = vld [vmem:[%s9030_s5 + $0x30] sm:$0xff]  }
 0x8af   : > { %vm4228_vm3 = vcmp.ge.f32.partialorder %v4221_v13, 0.0  ;;  %vm4229_vm4 = vcmp.ge.f32.partialorder %v4222_v29, 0.0  ;;  %vm4230_vm5 = vcmp.ge.f32.partialorder %v4223_v36, 0.0  ;;  %vm4231_vm6 = vcmp.ge.f32.partialorder %v4224_v45, 0.0  ;;  %6680 = vmatprep.subr.bf16.mxu1 %v7281_v1  ;;  %v7229_v22 = vld [vmem:[%s9030_s5 + $0x38] sm:$0xff]   ;;  %v7241_v4 = vld [vmem:[%s9030_s5 + $0x60] sm:$0xff]  }
 0x8b0   : > { %vm4232_vm7 = vcmp.ge.f32.partialorder %v4225_v55, 0.0  ;;  %vm4233_vm8 = vcmp.ge.f32.partialorder %v4226_v30, 0.0  ;;  %v4235_v51 = vmul.f32 0.2, %v4221_v13  ;;  %v4236_v50 = vmul.f32 0.2, %v4222_v29 }
 0x8b1   : > { %v4237_v44 = vmul.f32 0.2, %v4223_v36  ;;  %v4238_v56 = vmul.f32 0.2, %v4224_v45  ;;  %v4239_v12 = vmul.f32 0.2, %v4225_v55 }
 0x8b2   : > { %v4240_v3 = vmul.f32 0.2, %v4226_v30  ;;  %v4242_v19 = vsel %vm4228_vm3, %v4221_v13, %v4235_v51  ;;  %v4243_v33 = vsel %vm4229_vm4, %v4222_v29, %v4236_v50  ;;  %v4241_v5 = vmul.f32 0.2, %v4227_v31  ;;  %v7245_v50 = vld [vmem:[%s9030_s5 + $0x80] sm:$0xff]   ;;  %v7254_v58 = vld [vmem:[%s9030_s5 + $0xc8] sm:$0xff]  }
 0x8b3   : > { %v4244_v46 = vsel %vm4230_vm5, %v4223_v36, %v4237_v44  ;;  %v4245_v48 = vsel %vm4231_vm6, %v4224_v45, %v4238_v56  ;;  %v4246_v32 = vsel %vm4232_vm7, %v4225_v55, %v4239_v12  ;;  %v8718_v26 = vpack.c.bf16 %v4243_v33, %v4242_v19  ;;  %v7242_v36 = vld [vmem:[%s9030_s5 + $0x68] sm:$0xff]   ;;  %v7243_v45 = vld [vmem:[%s9030_s5 + $0x70] sm:$0xff]   ;;  %v7244_v55 = vld [vmem:[%s9030_s5 + $0x78] sm:$0xff]  }
 0x8b4   : > { %v4247_v62 = vsel %vm4233_vm8, %v4226_v30, %v4240_v3  ;;  %v8720_v15 = vpack.c.bf16 %v4245_v48, %v4244_v46  ;;  %vm4234_vm9 = vcmp.ge.f32.partialorder %v4227_v31, 0.0  ;;  %v7246_v12 = vld [vmem:[%s9030_s5 + $0x88] sm:$0xff]   ;;  %v7247_v3 = vld [vmem:[%s9030_s5 + $0x90] sm:$0xff]   ;;  %v7248_v19 = vld [vmem:[%s9030_s5 + $0x98] sm:$0xff]  }
 0x8b5   : > { %v8722_v24 = vpack.c.bf16 %v4247_v62, %v4246_v32  ;;  %6621 = vmatpush3.bf16.msra.mxu0 %v8718_v26  ;;  %v4248_v39 = vsel %vm4234_vm9, %v4227_v31, %v4241_v5  ;;  %v7249_v32 = vld [vmem:[%s9030_s5 + $0xa0] sm:$0xff]   ;;  %v7250_v5 = vld [vmem:[%s9030_s5 + $0xa8] sm:$0xff]  }
 0x8b6   : > { %6622 = vmatprep.subr.bf16.mxu0 %v7281_v1  ;;  %v4252_v53 = vpack.c.bf16 %v4248_v39, %v4248_v39 }
 0x8b8   : > { %v8731_v41 = vand.u32 %v4266_v38, %v4252_v53 }
 0x8b9   : > { %6623 = vmatpush3.bf16.msra.mxu0 %v8720_v15 }
 0x8ba   : > { %6624 = vmatprep.subr.bf16.mxu0 %v7281_v1 }
 0x8bd   : > { %6625 = vmatpush3.bf16.msra.mxu0 %v8722_v24 }
 0x8be   : > { %6626 = vmatprep.subr.bf16.mxu0 %v7281_v1 }
 0x8c1   : > { %6627 = vmatpush3.bf16.msra.mxu0 %v8731_v41 }
 0x8c2   : > { %6632 = vmatprep.subr.bf16.mxu0 %v7281_v1 }
 0x8c4   : > { %6629 = vmatmul.mubr.msk.bf16.vlgmr.msra.gmra.mrb[124].mxu0 %vm4260_vm11, %v7220_v49 }
 0x8c5   : > { %6633 = vmatpush3.bf16.msra.mxu0 %v8718_v26  ;;  %6640 = vmatprep.mubr.msk.bf16.mxu0 %vm7282_vm0, %v7281_v1 }
 0x8c6   : > { %6634 = vmatprep.subr.bf16.mxu0 %v7281_v1 }
 0x8c9   : > { %6635 = vmatpush3.bf16.msra.mxu0 %v8720_v15 }
 0x8ca   : > { %6636 = vmatprep.subr.bf16.mxu0 %v7281_v1 }
 0x8cd   : > { %6637 = vmatpush3.bf16.msra.mxu0 %v8722_v24 }
 0x8ce   : > { %6638 = vmatprep.subr.bf16.mxu0 %v7281_v1 }
 0x8d1   : > { %6639 = vmatpush3.bf16.msra.mxu0 %v8731_v41 }
 0x8d2   : > { %6644 = vmatprep.subr.bf16.mxu0 %v7281_v1 }
 0x8d4   : > { %6641 = vmatmul.mubr.msk.bf16.vlgmr.msra.gmra.mrb[128].mxu0 %vm4260_vm11, %v7221_v14 }
 0x8d5   : > { %6652 = vmatprep.mubr.msk.bf16.mxu0 %vm7282_vm0, %v7281_v1  ;;  %6645 = vmatpush3.bf16.msra.mxu0 %v7226_v59  ;;  %v7255_v59 = vld [vmem:[%s9030_s5 + $0xd0] sm:$0xff]  }
 0x8d6   : > { %6646 = vmatprep.subr.bf16.mxu0 %v7281_v1 }
 0x8d9   : > { %6647 = vmatpush3.bf16.msra.mxu0 %v7227_v63  ;;  %v7256_v63 = vld [vmem:[%s9030_s5 + $0xd8] sm:$0xff]  }
 0x8da   : > { %6648 = vmatprep.subr.bf16.mxu0 %v7281_v1 }
 0x8dd   : > { %6649 = vmatpush3.bf16.msra.mxu0 %v7228_v11 }
 0x8de   : > { %6650 = vmatprep.subr.bf16.mxu0 %v7281_v1 }
 0x8e1   : > { %6651 = vmatpush3.bf16.msra.mxu0 %v7229_v22 }
 0x8e2   : > { %6668 = vmatprep.subr.bf16.mxu0 %v7281_v1 }
 0x997   : > { %v4304_v28 = vpop.f32.mrb[124].mxu0 }
 0x998   : > { %v6630_v9 = vpop.f32.mrb[125].mxu0 }
 0x999   : > { %v4307_v18 = vpop.f32.mrb[126].mxu0  ;;  %v7257_v9 = vld [vmem:[%s9030_s5 + $0xe0] sm:$0xff]  }
 0x99a   : > { %v4311_v8 = vpack.c.bf16 %v4307_v18, %v4304_v28  ;;  %v6631_v2 = vpop.f32.mrb[127].mxu0 }
 0x99b   : > { %v7258_v2 = vld [vmem:[%s9030_s5 + $0xe8] sm:$0xff]  }
 0x99c   : > { %6665 = vmatmul.mubr.msk.bf16.vlgmr.msra.gmra.mrb[192].mxu1 %vm4162_vm2, %v4311_v8 }
 0x99d   : > { %6688 = vmatprep.mubr.msk.bf16.mxu1 %vm7282_vm0, %v7281_v1  ;;  %6681 = vmatpush3.bf16.msra.mxu1 %v7237_v34  ;;  %v7264_v34 = vld [vmem:[%s9030_s5 + $0x118] sm:$0xff]  }
 0x99e   : > { %6682 = vmatprep.subr.bf16.mxu1 %v7281_v1 }
 0x9a1   : > { %6683 = vmatpush3.bf16.msra.mxu1 %v7238_v43 }
 0x9a2   : > { %6684 = vmatprep.subr.bf16.mxu1 %v7281_v1 }
 0x9a5   : > { %6685 = vmatpush3.bf16.msra.mxu1 %v7239_v61 }
 0x9a6   : > { %6686 = vmatprep.subr.bf16.mxu1 %v7281_v1 }
 0x9a7   : > { %v4365_v23 = vpop.f32.mrb[128].mxu0 }
 0x9a8   : > { %v6642_v10 = vpop.f32.mrb[129].mxu0 }
 0x9a9   : > { %v4368_v35 = vpop.f32.mrb[130].mxu0  ;;  %6687 = vmatpush3.bf16.msra.mxu1 %v7240_v7  ;;  %v7260_v10 = vld [vmem:[%s9030_s5 + $0xf8] sm:$0xff]  }
 0x9aa   : > { %v4372_v60 = vpack.c.bf16 %v4368_v35, %v4365_v23  ;;  %v6643_v16 = vpop.f32.mrb[131].mxu0  ;;  %6704 = vmatprep.subr.bf16.mxu1 %v7281_v1  ;;  %v7259_v23 = vld [vmem:[%s9030_s5 + $0xf0] sm:$0xff]  }
 0x9ac   : > { %6653 = vmatmul.mubr.msk.bf16.vlgmr.msra.gmra.mrb[132].mxu0 %vm4162_vm2, %v4372_v60 }
 0x9ad   : > { %6669 = vmatpush3.bf16.msra.mxu0 %v8718_v26  ;;  %6676 = vmatprep.mubr.msk.bf16.mxu0 %vm7282_vm0, %v7281_v1 }
 0x9ae   : > { %6670 = vmatprep.subr.bf16.mxu0 %v7281_v1 }
 0x9b1   : > { %6671 = vmatpush3.bf16.msra.mxu0 %v8720_v15 }
 0x9b2   : > { %6672 = vmatprep.subr.bf16.mxu0 %v7281_v1 }
 0x9b5   : > { %6673 = vmatpush3.bf16.msra.mxu0 %v8722_v24 }
 0x9b6   : > { %6674 = vmatprep.subr.bf16.mxu0 %v7281_v1 }
 0x9b9   : > { %6675 = vmatpush3.bf16.msra.mxu0 %v8731_v41 }
 0x9ba   : > { %6692 = vmatprep.subr.bf16.mxu0 %v7281_v1 }
 0x9bc   : > { %6677 = vmatmul.mubr.msk.bf16.vlgmr.msra.gmra.mrb[136].mxu0 %vm4260_vm11, %v7230_v54  ;;  %v7261_v54 = vld [vmem:[%s9030_s5 + $0x100] sm:$0xff]  }
 0x9bd   : > { %6693 = vmatpush3.bf16.msra.mxu0 %v8718_v26  ;;  %6700 = vmatprep.mubr.msk.bf16.mxu0 %vm7282_vm0, %v7281_v1 }
 0x9be   : > { %6694 = vmatprep.subr.bf16.mxu0 %v7281_v1 }
 0x9c1   : > { %6695 = vmatpush3.bf16.msra.mxu0 %v8720_v15 }
 0x9c2   : > { %6696 = vmatprep.subr.bf16.mxu0 %v7281_v1 }
 0x9c5   : > { %6697 = vmatpush3.bf16.msra.mxu0 %v8722_v24 }
 0x9c6   : > { %6698 = vmatprep.subr.bf16.mxu0 %v7281_v1 }
 0x9c9   : > { %6699 = vmatpush3.bf16.msra.mxu0 %v8731_v41 }
 0x9ca   : > { %6716 = vmatprep.subr.bf16.mxu0 %v7281_v1 }
 0x9cc   : > { %6701 = vmatmul.mubr.msk.bf16.vlgmr.msra.gmra.mrb[140].mxu0 %vm4260_vm11, %v7231_v40 }
 0x9cd   : > { %6717 = vmatpush3.bf16.msra.mxu0 %v8718_v26  ;;  %6724 = vmatprep.mubr.msk.bf16.mxu0 %vm7282_vm0, %v7281_v1 }
 0x9ce   : > { %6718 = vmatprep.subr.bf16.mxu0 %v7281_v1 }
 0x9d1   : > { %6719 = vmatpush3.bf16.msra.mxu0 %v8720_v15 }
 0x9d2   : > { %6720 = vmatprep.subr.bf16.mxu0 %v7281_v1 }
 0x9d5   : > { %6721 = vmatpush3.bf16.msra.mxu0 %v8722_v24 }
 0x9d6   : > { %6722 = vmatprep.subr.bf16.mxu0 %v7281_v1 }
 0x9d9   : > { %6723 = vmatpush3.bf16.msra.mxu0 %v8731_v41 }
 0x9da   : > { %6740 = vmatprep.subr.bf16.mxu0 %v7281_v1 }
 0x9dc   : > { %6725 = vmatmul.mubr.msk.bf16.vlgmr.msra.gmra.mrb[144].mxu0 %vm4260_vm11, %v7232_v6 }
 0x9dd   : > { %6741 = vmatpush3.bf16.msra.mxu0 %v8718_v26  ;;  %6748 = vmatprep.mubr.msk.bf16.mxu0 %vm7282_vm0, %v7281_v1 }
 0x9de   : > { %6742 = vmatprep.subr.bf16.mxu0 %v7281_v1 }
 0x9e1   : > { %6743 = vmatpush3.bf16.msra.mxu0 %v8720_v15 }
 0x9e2   : > { %6744 = vmatprep.subr.bf16.mxu0 %v7281_v1 }
 0x9e5   : > { %6745 = vmatpush3.bf16.msra.mxu0 %v8722_v24 }
 0x9e6   : > { %6746 = vmatprep.subr.bf16.mxu0 %v7281_v1 }
 0x9e9   : > { %6747 = vmatpush3.bf16.msra.mxu0 %v8731_v41 }
 0x9ea   : > { %6764 = vmatprep.subr.bf16.mxu0 %v7281_v1 }
 0x9ec   : > { %6749 = vmatmul.mubr.msk.bf16.vlgmr.msra.gmra.mrb[148].mxu0 %vm4260_vm11, %v7233_v20  ;;  %v7262_v20 = vld [vmem:[%s9030_s5 + $0x108] sm:$0xff]  }
 0x9ed   : > { %6765 = vmatpush3.bf16.msra.mxu0 %v8718_v26  ;;  %6772 = vmatprep.mubr.msk.bf16.mxu0 %vm7282_vm0, %v7281_v1 }
 0x9ee   : > { %6766 = vmatprep.subr.bf16.mxu0 %v7281_v1 }
 0x9f1   : > { %6767 = vmatpush3.bf16.msra.mxu0 %v8720_v15 }
 0x9f2   : > { %6768 = vmatprep.subr.bf16.mxu0 %v7281_v1 }
 0x9f5   : > { %6769 = vmatpush3.bf16.msra.mxu0 %v8722_v24 }
 0x9f6   : > { %6770 = vmatprep.subr.bf16.mxu0 %v7281_v1 }
 0x9f9   : > { %6771 = vmatpush3.bf16.msra.mxu0 %v8731_v41 }
 0x9fa   : > { %6788 = vmatprep.subr.bf16.mxu0 %v7281_v1 }
 0x9fc   : > { %6773 = vmatmul.mubr.msk.bf16.vlgmr.msra.gmra.mrb[152].mxu0 %vm4260_vm11, %v7234_v25  ;;  %v7263_v25 = vld [vmem:[%s9030_s5 + $0x110] sm:$0xff]  }
 0x9fd   : > { %6789 = vmatpush3.bf16.msra.mxu0 %v8718_v26  ;;  %6796 = vmatprep.mubr.msk.bf16.mxu0 %vm7282_vm0, %v7281_v1 }
 0x9fe   : > { %6790 = vmatprep.subr.bf16.mxu0 %v7281_v1 }
 0xa01   : > { %6791 = vmatpush3.bf16.msra.mxu0 %v8720_v15 }
 0xa02   : > { %6792 = vmatprep.subr.bf16.mxu0 %v7281_v1 }
 0xa05   : > { %6793 = vmatpush3.bf16.msra.mxu0 %v8722_v24 }
 0xa06   : > { %6794 = vmatprep.subr.bf16.mxu0 %v7281_v1 }
 0xa09   : > { %6795 = vmatpush3.bf16.msra.mxu0 %v8731_v41 }
 0xa0a   : > { %6812 = vmatprep.subr.bf16.mxu0 %v7281_v1 }
 0xa0c   : > { %6797 = vmatmul.mubr.msk.bf16.vlgmr.msra.gmra.mrb[156].mxu0 %vm4260_vm11, %v7235_v52 }
 0xa0d   : > { %6813 = vmatpush3.bf16.msra.mxu0 %v8718_v26  ;;  %6820 = vmatprep.mubr.msk.bf16.mxu0 %vm7282_vm0, %v7281_v1 }
 0xa0e   : > { %6814 = vmatprep.subr.bf16.mxu0 %v7281_v1 }
 0xa11   : > { %6815 = vmatpush3.bf16.msra.mxu0 %v8720_v15  ;;  %v7251_v15 = vld [vmem:[%s9030_s5 + $0xb0] sm:$0xff]  }
 0xa12   : > { %6816 = vmatprep.subr.bf16.mxu0 %v7281_v1 }
 0xa15   : > { %6817 = vmatpush3.bf16.msra.mxu0 %v8722_v24  ;;  %v7252_v24 = vld [vmem:[%s9030_s5 + $0xb8] sm:$0xff]  }
 0xa16   : > { %6818 = vmatprep.subr.bf16.mxu0 %v7281_v1 }
 0xa19   : > { %6819 = vmatpush3.bf16.msra.mxu0 %v8731_v41  ;;  %v7253_v41 = vld [vmem:[%s9030_s5 + $0xc0] sm:$0xff]  }
 0xa1c   : > { %6821 = vmatmul.mubr.msk.bf16.vlgmr.msra.gmra.mrb[160].mxu0 %vm4260_vm11, %v7236_v17 }
 0xa7f   : > { %v8892_v27 = vpop.f32.mrb[132].mxu0 }
 0xa80   : > { %v6654_v37 = vpop.f32.mrb[133].mxu0 }
 0xa81   : > { %v8894_v21 = vpop.f32.mrb[134].mxu0 }
 0xa82   : > { %v6655_v42 = vpop.f32.mrb[135].mxu0 }
 0xa8f   : > { %v4563_v0 = vpop.f32.mrb[136].mxu0 }
 0xa90   : > { %v6678_v47 = vpop.f32.mrb[137].mxu0 }
 0xa91   : > { %v4566_v57 = vpop.f32.mrb[138].mxu0 }
 0xa92   : > { %v4570_v13 = vpack.c.bf16 %v4566_v57, %v4563_v0  ;;  %v6679_v29 = vpop.f32.mrb[139].mxu0 }
 0xa94   : > { %6689 = vmatmul.mubr.msk.bf16.vlgmr.msra.gmra.mrb[192].mxu1 %vm4162_vm2, %v4570_v13 }
 0xa95   : > { %6705 = vmatpush3.bf16.msra.mxu1 %v7241_v4  ;;  %6712 = vmatprep.mubr.msk.bf16.mxu1 %vm7282_vm0, %v7281_v1 }
 0xa96   : > { %6706 = vmatprep.subr.bf16.mxu1 %v7281_v1 }
 0xa99   : > { %6707 = vmatpush3.bf16.msra.mxu1 %v7242_v36 }
 0xa9a   : > { %6708 = vmatprep.subr.bf16.mxu1 %v7281_v1 }
 0xa9d   : > { %6709 = vmatpush3.bf16.msra.mxu1 %v7243_v45 }
 0xa9e   : > { %6710 = vmatprep.subr.bf16.mxu1 %v7281_v1 }
 0xa9f   : > { %v4695_v30 = vpop.f32.mrb[140].mxu0 }
 0xaa0   : > { %v6702_v31 = vpop.f32.mrb[141].mxu0 }
 0xaa1   : > { %v4698_v51 = vpop.f32.mrb[142].mxu0  ;;  %6711 = vmatpush3.bf16.msra.mxu1 %v7244_v55 }
 0xaa2   : > { %v4702_v44 = vpack.c.bf16 %v4698_v51, %v4695_v30  ;;  %v6703_v56 = vpop.f32.mrb[143].mxu0  ;;  %6728 = vmatprep.subr.bf16.mxu1 %v7281_v1 }
 0xaa4   : > { %6713 = vmatmul.mubr.msk.bf16.vlgmr.msra.gmra.mrb[192].mxu1 %vm4162_vm2, %v4702_v44 }
 0xaa5   : > { %6729 = vmatpush3.bf16.msra.mxu1 %v7245_v50  ;;  %6736 = vmatprep.mubr.msk.bf16.mxu1 %vm7282_vm0, %v7281_v1 }
 0xaa6   : > { %6730 = vmatprep.subr.bf16.mxu1 %v7281_v1 }
 0xaa9   : > { %6731 = vmatpush3.bf16.msra.mxu1 %v7246_v12 }
 0xaaa   : > { %6732 = vmatprep.subr.bf16.mxu1 %v7281_v1 }
 0xaad   : > { %6733 = vmatpush3.bf16.msra.mxu1 %v7247_v3 }
 0xaae   : > { %6734 = vmatprep.subr.bf16.mxu1 %v7281_v1 }
 0xaaf   : > { %v4827_v33 = vpop.f32.mrb[144].mxu0 }
 0xab0   : > { %v6726_v46 = vpop.f32.mrb[145].mxu0 }
 0xab1   : > { %v4830_v48 = vpop.f32.mrb[146].mxu0  ;;  %6735 = vmatpush3.bf16.msra.mxu1 %v7248_v19 }
 0xab2   : > { %v4834_v62 = vpack.c.bf16 %v4830_v48, %v4827_v33  ;;  %v6727_v26 = vpop.f32.mrb[147].mxu0  ;;  %6752 = vmatprep.subr.bf16.mxu1 %v7281_v1 }
 0xab4   : > { %6737 = vmatmul.mubr.msk.bf16.vlgmr.msra.gmra.mrb[192].mxu1 %vm4162_vm2, %v4834_v62 }
 0xab5   : > { %6753 = vmatpush3.bf16.msra.mxu1 %v7249_v32  ;;  %6760 = vmatprep.mubr.msk.bf16.mxu1 %vm7282_vm0, %v7281_v1 }
 0xab6   : > { %6754 = vmatprep.subr.bf16.mxu1 %v7281_v1 }
 0xab9   : > { %6755 = vmatpush3.bf16.msra.mxu1 %v7250_v5 }
 0xaba   : > { %6756 = vmatprep.subr.bf16.mxu1 %v7281_v1 }
 0xabd   : > { %6757 = vmatpush3.bf16.msra.mxu1 %v7251_v15 }
 0xabe   : > { %6758 = vmatprep.subr.bf16.mxu1 %v7281_v1 }
 0xabf   : > { %v4959_v39 = vpop.f32.mrb[148].mxu0 }
 0xac0   : > { %v6750_v53 = vpop.f32.mrb[149].mxu0 }
 0xac1   : > { %v4962_v38 = vpop.f32.mrb[150].mxu0  ;;  %6759 = vmatpush3.bf16.msra.mxu1 %v7252_v24  ;;  %v5473_v24 = vld [vmem:[%s9031_s6] sm:$0xff] }
 0xac2   : > { %v4966_v49 = vpack.c.bf16 %v4962_v38, %v4959_v39  ;;  %v6751_v14 = vpop.f32.mrb[151].mxu0  ;;  %6776 = vmatprep.subr.bf16.mxu1 %v7281_v1 }
 0xac4   : > { %6761 = vmatmul.mubr.msk.bf16.vlgmr.msra.gmra.mrb[192].mxu1 %vm4162_vm2, %v4966_v49  ;;  %v5474_v49 = vld [vmem:[%s9031_s6 + $0x8] sm:$0xff] }
 0xac5   : > { %6777 = vmatpush3.bf16.msra.mxu1 %v7253_v41  ;;  %6784 = vmatprep.mubr.msk.bf16.mxu1 %vm7282_vm0, %v7281_v1 }
 0xac6   : > { %6778 = vmatprep.subr.bf16.mxu1 %v7281_v1 }
 0xac9   : > { %6779 = vmatpush3.bf16.msra.mxu1 %v7254_v58 }
 0xaca   : > { %6780 = vmatprep.subr.bf16.mxu1 %v7281_v1 }
 0xacd   : > { %6781 = vmatpush3.bf16.msra.mxu1 %v7255_v59 }
 0xace   : > { %6782 = vmatprep.subr.bf16.mxu1 %v7281_v1 }
 0xacf   : > { %v5091_v11 = vpop.f32.mrb[152].mxu0 }
 0xad0   : > { %v6774_v22 = vpop.f32.mrb[153].mxu0 }
 0xad1   : > { %v5094_v28 = vpop.f32.mrb[154].mxu0  ;;  %6783 = vmatpush3.bf16.msra.mxu1 %v7256_v63 }
 0xad2   : > { %v5098_v18 = vpack.c.bf16 %v5094_v28, %v5091_v11  ;;  %v6775_v8 = vpop.f32.mrb[155].mxu0  ;;  %6800 = vmatprep.subr.bf16.mxu1 %v7281_v1 }
 0xad4   : > { %6785 = vmatmul.mubr.msk.bf16.vlgmr.msra.gmra.mrb[192].mxu1 %vm4162_vm2, %v5098_v18 }
 0xad5   : > { %6801 = vmatpush3.bf16.msra.mxu1 %v7257_v9  ;;  %6808 = vmatprep.mubr.msk.bf16.mxu1 %vm7282_vm0, %v7281_v1 }
 0xad6   : > { %6802 = vmatprep.subr.bf16.mxu1 %v7281_v1 }
 0xad9   : > { %6803 = vmatpush3.bf16.msra.mxu1 %v7258_v2 }
 0xada   : > { %6804 = vmatprep.subr.bf16.mxu1 %v7281_v1 }
 0xadd   : > { %6805 = vmatpush3.bf16.msra.mxu1 %v7259_v23 }
 0xade   : > { %6806 = vmatprep.subr.bf16.mxu1 %v7281_v1 }
 0xadf   : > { %v5223_v35 = vpop.f32.mrb[156].mxu0 }
 0xae0   : > { %v6798_v60 = vpop.f32.mrb[157].mxu0 }
 0xae1   : > { %v5226_v16 = vpop.f32.mrb[158].mxu0  ;;  %6807 = vmatpush3.bf16.msra.mxu1 %v7260_v10 }
 0xae2   : > { %v5230_v40 = vpack.c.bf16 %v5226_v16, %v5223_v35  ;;  %v6799_v6 = vpop.f32.mrb[159].mxu0  ;;  %6824 = vmatprep.subr.bf16.mxu1 %v7281_v1 }
 0xae4   : > { %6809 = vmatmul.mubr.msk.bf16.vlgmr.msra.gmra.mrb[192].mxu1 %vm4162_vm2, %v5230_v40 }
 0xae5   : > { %6825 = vmatpush3.bf16.msra.mxu1 %v7261_v54  ;;  %6832 = vmatprep.mubr.msk.bf16.mxu1 %vm7282_vm0, %v7281_v1 }
 0xae6   : > { %6826 = vmatprep.subr.bf16.mxu1 %v7281_v1 }
 0xae9   : > { %6827 = vmatpush3.bf16.msra.mxu1 %v7262_v20 }
 0xaea   : > { %6828 = vmatprep.subr.bf16.mxu1 %v7281_v1 }
 0xaed   : > { %6829 = vmatpush3.bf16.msra.mxu1 %v7263_v25 }
 0xaee   : > { %6830 = vmatprep.subr.bf16.mxu1 %v7281_v1 }
 0xaef   : > { %v5355_v43 = vpop.f32.mrb[160].mxu0 }
 0xaf0   : > { %v6822_v52 = vpop.f32.mrb[161].mxu0 }
 0xaf1   : > { %v5358_v61 = vpop.f32.mrb[162].mxu0  ;;  %6831 = vmatpush3.bf16.msra.mxu1 %v7264_v34 }
 0xaf2   : > { %v5362_v7 = vpack.c.bf16 %v5358_v61, %v5355_v43  ;;  %v6823_v17 = vpop.f32.mrb[163].mxu0 }
 0xaf4   : > { %6833 = vmatmul.mubr.msk.bf16.vlgmr.msra.gmra.mrb[192].mxu1 %vm4162_vm2, %v5362_v7 }
 0xbc7   : > { %v5433_v37 = vpop.f32.mrb[192].mxu1 }
 0xbc8   : > { %v6836_v42 = vadd.f32 %v5433_v37, %v8892_v27  ;;  %v6834_v0 = vpop.f32.mrb[193].mxu1 }
 0xbc9   : > { %v5436_v47 = vpop.f32.mrb[194].mxu1 }
 0xbca   : > { %v6837_v57 = vadd.f32 %v5436_v47, %v8894_v21  ;;  %v6835_v4 = vpop.f32.mrb[195].mxu1 }
 0xbcc   : > { %v5442_v13 = vadd.f32 %v6837_v57, %v6836_v42 }
 0xbce   : > { %v5443_v29 = vrot.slane %v5442_v13, 4 }
 0xbd0   : > { %v5444_v36 = vadd.f32 %v5443_v29, %v5442_v13 }
 0xbd2   : > { %v5445_v1 = vrot.slane %v5444_v36, 2 }
 0xbd4   : > { %v5446_v45 = vadd.f32 %v5445_v1, %v5444_v36 }
 0xbd6   : > { %v5447_v55 = vrot.slane %v5446_v45, 1 }
 0xbd8   : > { %v5448_v30 = vadd.f32 %v5447_v55, %v5446_v45 }
 0xbda   : > { %v5450_v31 = vmul.f32 0.0625, %v5448_v30 }
 0xbdc   : > { %v5451_v51 = vsub.f32 %v6836_v42, %v5450_v31  ;;  %v5452_v50 = vsub.f32 %v6837_v57, %v5450_v31 }
 0xbde   : > { %v5453_v44 = vmul.f32 %v5451_v51, %v5451_v51  ;;  %v5454_v56 = vmul.f32 %v5452_v50, %v5452_v50 }
 0xbe0   : > { %v5455_v12 = vadd.f32 %v5454_v56, %v5453_v44 }
 0xbe2   : > { %v5456_v3 = vrot.slane %v5455_v12, 4 }
 0xbe4   : > { %v5457_v27 = vadd.f32 %v5456_v3, %v5455_v12 }
 0xbe6   : > { %v5458_v19 = vrot.slane %v5457_v27, 2 }
 0xbe8   : > { %v5459_v33 = vadd.f32 %v5458_v19, %v5457_v27 }
 0xbea   : > { %v5460_v46 = vrot.slane %v5459_v33, 1 }
 0xbec   : > { %v5461_v21 = vadd.f32 %v5460_v46, %v5459_v33 }
 0xbee   : > { %v5462_v48 = vmul.f32 0.0625, %v5461_v21 }
 0xbf0   : > { %v5463_v32 = vadd.f32 1e-05, %v5462_v48 }
 0xbf2   : > { %7267 = vrsqrt.f32 %v5463_v32 }
 0xbfc   : > { %v7268_v62 = vpop.eup %7267 }
 0xbfd   : > { %v5466_v26 = vmul.f32 %v7268_v62, %v5452_v50  ;;  %v5465_v5 = vmul.f32 %v7268_v62, %v5451_v51 }
 0xbff   : > { %vm5467_vm0 = vcmp.ge.f32.partialorder %v5465_v5, 0.0  ;;  %v5469_v15 = vmul.f32 0.2, %v5465_v5  ;;  %v5470_v39 = vmul.f32 0.2, %v5466_v26  ;;  %vm5468_vm12 = vcmp.ge.f32.partialorder %v5466_v26, 0.0 }
 0xc01   : > { %v5471_v53 = vsel %vm5467_vm0, %v5465_v5, %v5469_v15  ;;  %v5472_v41 = vsel %vm5468_vm12, %v5466_v26, %v5470_v39 }
 0xc02   : > { %v5475_v38 = vmul.f32 %v5473_v24, %v5471_v53  ;;  %v5476_v14 = vmul.f32 %v5474_v49, %v5472_v41 }
 0xc04   : > { %5477 = vadd.xlane.f32.xlu0 %v5475_v38 }
 0xc08   : > { %5479 = vadd.xlane.f32.xlu0 %v5476_v14 }
 0xc91   : > { %v5478_v58 = vpop.xlane.xlu0 %5477 }
 0xc95   : > { %v5480_v59 = vpop.xlane.xlu0 %5479 }
 0xc96   : > { %v5481_v63 = vadd.f32 %v5480_v59, %v5478_v58 }
 0xc98   : > { %v5482_v11 = vrot.slane %v5481_v63, 4 }
 0xc9a   : > { %v5483_v22 = vadd.f32 %v5482_v11, %v5481_v63 }
 0xc9c   : > { %v5484_v28 = vrot.slane %v5483_v22, 2 }
 0xc9e   : > { %v5485_v9 = vadd.f32 %v5484_v28, %v5483_v22 }
 0xca0   : > { %v5486_v18 = vrot.slane %v5485_v9, 1 }
 0xca2   : > { %v5487_v8 = vadd.f32 %v5486_v18, %v5485_v9 }
 0xca4   : > { %v5488_v2 = vsub.f32 0.0, %v5487_v8 }
 0xca6   : > { %v5489_v23 = vmul.f32 1.442695, %v5488_v2 }
 0xca8   : > { %7269 = vpow2.f32 %v5489_v23 }
 0xcb2   : > { %v7270_v10 = vpop.eup %7269 }
 0xcb3   : > { %v5491_v35 = vadd.f32 1.0, %v7270_v10 }
 0xcb5   : > { %7271 = vrcp.f32 %v5491_v35 }
 0xcbf   : > { %v7272_v60 = vpop.eup %7271 }
 0xcc0   : > { %5495 = vst.msk [vmem:[%s274_s15] sm:$0x1] %vm5494_vm13, %v7272_v60 }
 0xcc1 PF: > { %s17_s24 = sadd.s32 1, %s7279_s24  }
 0xcc2   : > { %p14_p4 = scmp.ge.s32.totalorder %s17_s24, 4  }
 0xcc4   :  { %16 = sbr.rel (!%p14_p4) target bundleno = 1 (0x1), region = 124 }

</bundles_post_ra>
